<compile_context>
chip_gen: v5e
topology: v5e:2x2
jax: 0.10.0
libtpu: 0.0.40
codegen_flags: <defaults>
</compile_context>

<pallas_src>
import functools

import jax
import jax.numpy as jnp
from jax import lax
from jax.experimental import pallas as pl
from jax.experimental.pallas import tpu as pltpu


def cnn_ngram_kernel(xw_ref, w_ref, b_ref, out_ref, *, chunk):
    # xw_ref : (1, E+2, W)  VMEM; W = Lb + 2.  Lanes = (batch-in-block, padded seq)
    #                       segments packed side by side (each segment carries its own
    #                       zero seq pads), plus one zero edge lane on the left and
    #                       zero lanes on the right up to the 128-aligned Lb + 1 edge.
    # w_ref  : (9, C)       SMEM; conv taps with eval-BN scale folded in, k = kh*3 + kw.
    # b_ref  : (C,)         SMEM; folded BN bias.
    # out_ref: (1, C, Lb)   VMEM; per-channel max-over-embedding rows (lane-dense).
    _, C, Lb = out_ref.shape
    E = xw_ref.shape[1] - 2
    n_chunks = Lb // chunk

    # Hoist every SMEM scalar read above the loops (JAX does not CSE repeated reads):
    # emitted once per grid step, not once per chunk/channel.
    w = [[w_ref[k, c] for k in range(9)] for c in range(C)]
    b = [b_ref[c] for c in range(C)]

    # Static lane-chunk loop: only nine (E, chunk) tap views + one accumulator are live
    # at a time, so Lb can grow (step-overhead/DMA amortization) without vreg spills.
    for ci in range(n_chunks):
        start = ci * chunk
        # Nine 3x3 tap views for this chunk, built once and reused for every channel:
        #   kw (embedding tap) -> sublane offset, kh (sequence tap) -> lane offset.
        views = [
            xw_ref[0, pl.ds(kw, E), pl.ds(start + kh, chunk)]
            for kh in range(3) for kw in range(3)
        ]
        for c in range(C):                       # C small & static -> unrolled VPU path
            acc = views[0] * w[c][0]
            for k in range(1, 9):
                acc = acc + views[k] * w[c][k]
            # adaptive_max_pool2d((S,1)) == max over embedding == sublane (XLU) reduce.
            # Per-channel BN bias + ReLU commute with the max -> apply to pooled row.
            pooled = jnp.max(acc, axis=0, keepdims=True)          # (1, chunk)
            # Direct lane-dense per-channel store (no C-way sublane concat at step end).
            out_ref[0, pl.ds(c, 1), pl.ds(start, chunk)] = jnp.maximum(pooled + b[c], 0.0)


def _round_up(x, m):
    return ((x + m - 1) // m) * m


def _vmem_capacity_bytes():
    try:
        cap = getattr(pltpu.get_tpu_info(), "vmem_capacity_bytes", None)
        if cap:
            return int(cap)
    except Exception:
        pass
    return 64 << 20           # conservative fallback: v7x has the smallest per-TC VMEM


def _pick_chunk(E):
    # Keep ~10 live (E, chunk) f32 temporaries (9 tap views + accumulator) inside the
    # 64-vreg file: 10 * ceil(E/8) * (chunk/128) <= ~48 vregs.
    groups = max(1, 48 // (10 * pl.cdiv(E, 8)))
    return 128 * min(4, groups)


def _pick_block(B, S, E, C, chunk):
    """Pick (batch-per-block bb, num_blocks nb)."""
    seg = S + 2
    max_chunks = 8                                   # cap the static chunk-loop unroll
    bb = min(B, max(1, (chunk * max_chunks) // seg))

    budget = min(_vmem_capacity_bytes() // 4, 24 << 20)

    def ws_bytes(bb_):
        lb = _round_up(bb_ * seg, chunk)
        # double-buffered input + output blocks (f32)
        return 4 * 2 * ((E + 2) * (lb + 2) + C * lb)

    while bb > 1 and ws_bytes(bb) > budget:
        bb -= 1
    nb = pl.cdiv(B, bb)
    bb = pl.cdiv(B, nb)                              # rebalance -> less batch padding
    # Split into two grid steps only when each half still gets lane-dense work
    # (>= 1024 output lanes): gives both v7x TensorCores a block without turning
    # small-B cases into two lane-sparse steps (pure overhead on 1-TC v5e/v6e).
    if nb == 1 and B > 1:
        half = pl.cdiv(B, 2)
        if half * seg >= 1024:
            nb, bb = 2, half
    return bb, nb


def cnn_ngram_encoder(x, conv_w, gamma, beta, run_mean, run_var, eps=1e-5):
    """x: (B, S, E) f32; conv_w: (C, 1, 3, 3); BN params: (C,). Returns (B, S, C)."""
    B, S, E = x.shape
    C = conv_w.shape[0]
    x = x.astype(jnp.float32)

    chunk = _pick_chunk(E)
    bb, nb = _pick_block(B, S, E, C, chunk)
    B_pad = bb * nb
    seg = S + 2
    Lb_data = bb * seg
    Lb = _round_up(Lb_data, chunk)                   # lane-dense output (128-multiple)
    W = Lb + 2

    # ---- wrapper-side pack: one transpose (the only relayout) + zero pads ----
    xp = x if B_pad == B else jnp.pad(x, ((0, B_pad - B), (0, 0), (0, 0)))
    x4 = xp.reshape(nb, bb, S, E).transpose(0, 3, 1, 2)         # (nb, E, bb, S)
    x4 = jnp.pad(x4, ((0, 0), (1, 1), (0, 0), (1, 1)))          # (nb, E+2, bb, S+2)
    xw = x4.reshape(nb, E + 2, Lb_data)                         # free collapse
    xw = jnp.pad(xw, ((0, 0), (0, 0), (1, W - 1 - Lb_data)))    # edge + lane-align zeros

    # Fold eval-mode BN: scale into the conv taps, bias applied post-pool in-kernel
    # (exact: scaling happens before the max in both, ReLU is monotone, bias constant).
    scale = (gamma / jnp.sqrt(run_var + eps)).astype(jnp.float32)
    w9 = (conv_w.reshape(C, 9).astype(jnp.float32) * scale[:, None]).T   # (9, C)
    bias = (beta - run_mean * scale).astype(jnp.float32)

    in_bytes = 4 * (E + 2) * W
    out_bytes = 4 * C * Lb
    ws = 2 * (in_bytes + out_bytes)                             # double-buffered blocks
    vmem_limit = int(min(max(2 * ws, 8 << 20), _vmem_capacity_bytes() // 2))

    out = pl.pallas_call(
        functools.partial(cnn_ngram_kernel, chunk=chunk),
        out_shape=jax.ShapeDtypeStruct((nb, C, Lb), jnp.float32),
        grid_spec=pltpu.PrefetchScalarGridSpec(
            num_scalar_prefetch=0,
            grid=(nb,),
            in_specs=[
                pl.BlockSpec((1, E + 2, W), lambda g: (g, 0, 0)),
                pl.BlockSpec(memory_space=pltpu.MemorySpace.SMEM),
                pl.BlockSpec(memory_space=pltpu.MemorySpace.SMEM),
            ],
            out_specs=pl.BlockSpec((1, C, Lb), lambda g: (g, 0, 0)),
        ),
        compiler_params=pltpu.CompilerParams(
            dimension_semantics=("parallel",),
            vmem_limit_bytes=vmem_limit,
        ),
    )(xw, w9, bias)

    # ---- unpack (nb, C, Lb) -> (B, S, C); drop lane padding, seq pads, batch pad ----
    out = out[:, :, :Lb_data].reshape(nb, C, bb, seg)
    out = out.transpose(0, 2, 3, 1).reshape(B_pad, seg, C)
    return out[:B, 1:S + 1, :]


def reference(x, conv_w, gamma, beta, run_mean, run_var, eps=1e-5):
    """Pure-JAX reference matching the PyTorch forward (eval-mode BN)."""
    x4 = x[:, None, :, :]                                 # (B, 1, S, E)  NCHW
    y = lax.conv_general_dilated(
        x4, conv_w, window_strides=(1, 1), padding=((1, 1), (1, 1)),
        dimension_numbers=("NCHW", "OIHW", "NCHW"))       # (B, C, S, E)
    scale = gamma / jnp.sqrt(run_var + eps)
    bias = beta - run_mean * scale
    y = y * scale[None, :, None, None] + bias[None, :, None, None]
    y = jnp.maximum(y, 0.0)
    y = jnp.max(y, axis=3)                                # adaptive pool (S,1) + squeeze
    return jnp.transpose(y, (0, 2, 1))                    # (B, S, C)


if __name__ == "__main__":
    # dims = [1, C]: a single CNNBlock2D(1 -> C, kernel=3, padding=1, relu=True, pool=None)
    B, S, E, C = 2, 8, 16, 8

    key = jax.random.PRNGKey(0)
    k1, k2, k3, k4, k5, k6 = jax.random.split(key, 6)
    x = jax.random.normal(k1, (B, S, E), jnp.float32)
    fan_in = 1 * 3 * 3
    bound = 1.0 / (fan_in ** 0.5)
    conv_w = jax.random.uniform(k2, (C, 1, 3, 3), jnp.float32, -bound, bound)
    gamma = jax.random.uniform(k3, (C,), jnp.float32, 0.5, 1.5)
    beta = 0.1 * jax.random.normal(k4, (C,), jnp.float32)
    run_mean = 0.1 * jax.random.normal(k5, (C,), jnp.float32)
    run_var = jax.random.uniform(k6, (C,), jnp.float32, 0.5, 1.5)

    out = jax.block_until_ready(
        cnn_ngram_encoder(x, conv_w, gamma, beta, run_mean, run_var))
    ref = reference(x, conv_w, gamma, beta, run_mean, run_var)

    assert out.shape == (B, S, C), out.shape
    assert jnp.allclose(out, ref, atol=1e-4, rtol=1e-4), float(jnp.max(jnp.abs(out - ref)))
    print("KERNEL_OK")
</pallas_src>

<mosaic_0001>
module attributes {stable_mosaic.version = 11 : i64} {
  func.func @cnn_ngram_kernel(%arg0: i32, %arg1: memref<1x18x258xf32, #tpu.memory_space<vmem>>, %arg2: memref<9x8xf32, #tpu.memory_space<smem>>, %arg3: memref<8xf32, #tpu.memory_space<smem>>, %arg4: memref<1x8x256xf32, #tpu.memory_space<vmem>>) attributes {dimension_semantics = [#tpu.dimension_semantics<parallel>], iteration_bounds = array<i64: 1>, scalar_prefetch = 0 : i64, scratch_operands = 0 : i64, tpu.core_type = #tpu.core_type<tc>, window_params = [{transform_indices = @transform_0, window_bounds = array<i64: 1, 18, 258>}, {transform_indices = @transform_1, window_bounds = array<i64: 9, 8>}, {transform_indices = @transform_2, window_bounds = array<i64: 8>}, {transform_indices = @transform_3, window_bounds = array<i64: 1, 8, 256>}]} {
    %c0 = arith.constant 0 : index
    %c0_0 = arith.constant 0 : index
    %0 = memref.load %arg2[%c0, %c0_0] : memref<9x8xf32, #tpu.memory_space<smem>>
    %c1 = arith.constant 1 : index
    %c0_1 = arith.constant 0 : index
    %1 = memref.load %arg2[%c1, %c0_1] : memref<9x8xf32, #tpu.memory_space<smem>>
    %c2 = arith.constant 2 : index
    %c0_2 = arith.constant 0 : index
    %2 = memref.load %arg2[%c2, %c0_2] : memref<9x8xf32, #tpu.memory_space<smem>>
    %c3 = arith.constant 3 : index
    %c0_3 = arith.constant 0 : index
    %3 = memref.load %arg2[%c3, %c0_3] : memref<9x8xf32, #tpu.memory_space<smem>>
    %c4 = arith.constant 4 : index
    %c0_4 = arith.constant 0 : index
    %4 = memref.load %arg2[%c4, %c0_4] : memref<9x8xf32, #tpu.memory_space<smem>>
    %c5 = arith.constant 5 : index
    %c0_5 = arith.constant 0 : index
    %5 = memref.load %arg2[%c5, %c0_5] : memref<9x8xf32, #tpu.memory_space<smem>>
    %c6 = arith.constant 6 : index
    %c0_6 = arith.constant 0 : index
    %6 = memref.load %arg2[%c6, %c0_6] : memref<9x8xf32, #tpu.memory_space<smem>>
    %c7 = arith.constant 7 : index
    %c0_7 = arith.constant 0 : index
    %7 = memref.load %arg2[%c7, %c0_7] : memref<9x8xf32, #tpu.memory_space<smem>>
    %c8 = arith.constant 8 : index
    %c0_8 = arith.constant 0 : index
    %8 = memref.load %arg2[%c8, %c0_8] : memref<9x8xf32, #tpu.memory_space<smem>>
    %c0_9 = arith.constant 0 : index
    %c1_10 = arith.constant 1 : index
    %9 = memref.load %arg2[%c0_9, %c1_10] : memref<9x8xf32, #tpu.memory_space<smem>>
    %c1_11 = arith.constant 1 : index
    %c1_12 = arith.constant 1 : index
    %10 = memref.load %arg2[%c1_11, %c1_12] : memref<9x8xf32, #tpu.memory_space<smem>>
    %c2_13 = arith.constant 2 : index
    %c1_14 = arith.constant 1 : index
    %11 = memref.load %arg2[%c2_13, %c1_14] : memref<9x8xf32, #tpu.memory_space<smem>>
    %c3_15 = arith.constant 3 : index
    %c1_16 = arith.constant 1 : index
    %12 = memref.load %arg2[%c3_15, %c1_16] : memref<9x8xf32, #tpu.memory_space<smem>>
    %c4_17 = arith.constant 4 : index
    %c1_18 = arith.constant 1 : index
    %13 = memref.load %arg2[%c4_17, %c1_18] : memref<9x8xf32, #tpu.memory_space<smem>>
    %c5_19 = arith.constant 5 : index
    %c1_20 = arith.constant 1 : index
    %14 = memref.load %arg2[%c5_19, %c1_20] : memref<9x8xf32, #tpu.memory_space<smem>>
    %c6_21 = arith.constant 6 : index
    %c1_22 = arith.constant 1 : index
    %15 = memref.load %arg2[%c6_21, %c1_22] : memref<9x8xf32, #tpu.memory_space<smem>>
    %c7_23 = arith.constant 7 : index
    %c1_24 = arith.constant 1 : index
    %16 = memref.load %arg2[%c7_23, %c1_24] : memref<9x8xf32, #tpu.memory_space<smem>>
    %c8_25 = arith.constant 8 : index
    %c1_26 = arith.constant 1 : index
    %17 = memref.load %arg2[%c8_25, %c1_26] : memref<9x8xf32, #tpu.memory_space<smem>>
    %c0_27 = arith.constant 0 : index
    %c2_28 = arith.constant 2 : index
    %18 = memref.load %arg2[%c0_27, %c2_28] : memref<9x8xf32, #tpu.memory_space<smem>>
    %c1_29 = arith.constant 1 : index
    %c2_30 = arith.constant 2 : index
    %19 = memref.load %arg2[%c1_29, %c2_30] : memref<9x8xf32, #tpu.memory_space<smem>>
    %c2_31 = arith.constant 2 : index
    %c2_32 = arith.constant 2 : index
    %20 = memref.load %arg2[%c2_31, %c2_32] : memref<9x8xf32, #tpu.memory_space<smem>>
    %c3_33 = arith.constant 3 : index
    %c2_34 = arith.constant 2 : index
    %21 = memref.load %arg2[%c3_33, %c2_34] : memref<9x8xf32, #tpu.memory_space<smem>>
    %c4_35 = arith.constant 4 : index
    %c2_36 = arith.constant 2 : index
    %22 = memref.load %arg2[%c4_35, %c2_36] : memref<9x8xf32, #tpu.memory_space<smem>>
    %c5_37 = arith.constant 5 : index
    %c2_38 = arith.constant 2 : index
    %23 = memref.load %arg2[%c5_37, %c2_38] : memref<9x8xf32, #tpu.memory_space<smem>>
    %c6_39 = arith.constant 6 : index
    %c2_40 = arith.constant 2 : index
    %24 = memref.load %arg2[%c6_39, %c2_40] : memref<9x8xf32, #tpu.memory_space<smem>>
    %c7_41 = arith.constant 7 : index
    %c2_42 = arith.constant 2 : index
    %25 = memref.load %arg2[%c7_41, %c2_42] : memref<9x8xf32, #tpu.memory_space<smem>>
    %c8_43 = arith.constant 8 : index
    %c2_44 = arith.constant 2 : index
    %26 = memref.load %arg2[%c8_43, %c2_44] : memref<9x8xf32, #tpu.memory_space<smem>>
    %c0_45 = arith.constant 0 : index
    %c3_46 = arith.constant 3 : index
    %27 = memref.load %arg2[%c0_45, %c3_46] : memref<9x8xf32, #tpu.memory_space<smem>>
    %c1_47 = arith.constant 1 : index
    %c3_48 = arith.constant 3 : index
    %28 = memref.load %arg2[%c1_47, %c3_48] : memref<9x8xf32, #tpu.memory_space<smem>>
    %c2_49 = arith.constant 2 : index
    %c3_50 = arith.constant 3 : index
    %29 = memref.load %arg2[%c2_49, %c3_50] : memref<9x8xf32, #tpu.memory_space<smem>>
    %c3_51 = arith.constant 3 : index
    %c3_52 = arith.constant 3 : index
    %30 = memref.load %arg2[%c3_51, %c3_52] : memref<9x8xf32, #tpu.memory_space<smem>>
    %c4_53 = arith.constant 4 : index
    %c3_54 = arith.constant 3 : index
    %31 = memref.load %arg2[%c4_53, %c3_54] : memref<9x8xf32, #tpu.memory_space<smem>>
    %c5_55 = arith.constant 5 : index
    %c3_56 = arith.constant 3 : index
    %32 = memref.load %arg2[%c5_55, %c3_56] : memref<9x8xf32, #tpu.memory_space<smem>>
    %c6_57 = arith.constant 6 : index
    %c3_58 = arith.constant 3 : index
    %33 = memref.load %arg2[%c6_57, %c3_58] : memref<9x8xf32, #tpu.memory_space<smem>>
    %c7_59 = arith.constant 7 : index
    %c3_60 = arith.constant 3 : index
    %34 = memref.load %arg2[%c7_59, %c3_60] : memref<9x8xf32, #tpu.memory_space<smem>>
    %c8_61 = arith.constant 8 : index
    %c3_62 = arith.constant 3 : index
    %35 = memref.load %arg2[%c8_61, %c3_62] : memref<9x8xf32, #tpu.memory_space<smem>>
    %c0_63 = arith.constant 0 : index
    %c4_64 = arith.constant 4 : index
    %36 = memref.load %arg2[%c0_63, %c4_64] : memref<9x8xf32, #tpu.memory_space<smem>>
    %c1_65 = arith.constant 1 : index
    %c4_66 = arith.constant 4 : index
    %37 = memref.load %arg2[%c1_65, %c4_66] : memref<9x8xf32, #tpu.memory_space<smem>>
    %c2_67 = arith.constant 2 : index
    %c4_68 = arith.constant 4 : index
    %38 = memref.load %arg2[%c2_67, %c4_68] : memref<9x8xf32, #tpu.memory_space<smem>>
    %c3_69 = arith.constant 3 : index
    %c4_70 = arith.constant 4 : index
    %39 = memref.load %arg2[%c3_69, %c4_70] : memref<9x8xf32, #tpu.memory_space<smem>>
    %c4_71 = arith.constant 4 : index
    %c4_72 = arith.constant 4 : index
    %40 = memref.load %arg2[%c4_71, %c4_72] : memref<9x8xf32, #tpu.memory_space<smem>>
    %c5_73 = arith.constant 5 : index
    %c4_74 = arith.constant 4 : index
    %41 = memref.load %arg2[%c5_73, %c4_74] : memref<9x8xf32, #tpu.memory_space<smem>>
    %c6_75 = arith.constant 6 : index
    %c4_76 = arith.constant 4 : index
    %42 = memref.load %arg2[%c6_75, %c4_76] : memref<9x8xf32, #tpu.memory_space<smem>>
    %c7_77 = arith.constant 7 : index
    %c4_78 = arith.constant 4 : index
    %43 = memref.load %arg2[%c7_77, %c4_78] : memref<9x8xf32, #tpu.memory_space<smem>>
    %c8_79 = arith.constant 8 : index
    %c4_80 = arith.constant 4 : index
    %44 = memref.load %arg2[%c8_79, %c4_80] : memref<9x8xf32, #tpu.memory_space<smem>>
    %c0_81 = arith.constant 0 : index
    %c5_82 = arith.constant 5 : index
    %45 = memref.load %arg2[%c0_81, %c5_82] : memref<9x8xf32, #tpu.memory_space<smem>>
    %c1_83 = arith.constant 1 : index
    %c5_84 = arith.constant 5 : index
    %46 = memref.load %arg2[%c1_83, %c5_84] : memref<9x8xf32, #tpu.memory_space<smem>>
    %c2_85 = arith.constant 2 : index
    %c5_86 = arith.constant 5 : index
    %47 = memref.load %arg2[%c2_85, %c5_86] : memref<9x8xf32, #tpu.memory_space<smem>>
    %c3_87 = arith.constant 3 : index
    %c5_88 = arith.constant 5 : index
    %48 = memref.load %arg2[%c3_87, %c5_88] : memref<9x8xf32, #tpu.memory_space<smem>>
    %c4_89 = arith.constant 4 : index
    %c5_90 = arith.constant 5 : index
    %49 = memref.load %arg2[%c4_89, %c5_90] : memref<9x8xf32, #tpu.memory_space<smem>>
    %c5_91 = arith.constant 5 : index
    %c5_92 = arith.constant 5 : index
    %50 = memref.load %arg2[%c5_91, %c5_92] : memref<9x8xf32, #tpu.memory_space<smem>>
    %c6_93 = arith.constant 6 : index
    %c5_94 = arith.constant 5 : index
    %51 = memref.load %arg2[%c6_93, %c5_94] : memref<9x8xf32, #tpu.memory_space<smem>>
    %c7_95 = arith.constant 7 : index
    %c5_96 = arith.constant 5 : index
    %52 = memref.load %arg2[%c7_95, %c5_96] : memref<9x8xf32, #tpu.memory_space<smem>>
    %c8_97 = arith.constant 8 : index
    %c5_98 = arith.constant 5 : index
    %53 = memref.load %arg2[%c8_97, %c5_98] : memref<9x8xf32, #tpu.memory_space<smem>>
    %c0_99 = arith.constant 0 : index
    %c6_100 = arith.constant 6 : index
    %54 = memref.load %arg2[%c0_99, %c6_100] : memref<9x8xf32, #tpu.memory_space<smem>>
    %c1_101 = arith.constant 1 : index
    %c6_102 = arith.constant 6 : index
    %55 = memref.load %arg2[%c1_101, %c6_102] : memref<9x8xf32, #tpu.memory_space<smem>>
    %c2_103 = arith.constant 2 : index
    %c6_104 = arith.constant 6 : index
    %56 = memref.load %arg2[%c2_103, %c6_104] : memref<9x8xf32, #tpu.memory_space<smem>>
    %c3_105 = arith.constant 3 : index
    %c6_106 = arith.constant 6 : index
    %57 = memref.load %arg2[%c3_105, %c6_106] : memref<9x8xf32, #tpu.memory_space<smem>>
    %c4_107 = arith.constant 4 : index
    %c6_108 = arith.constant 6 : index
    %58 = memref.load %arg2[%c4_107, %c6_108] : memref<9x8xf32, #tpu.memory_space<smem>>
    %c5_109 = arith.constant 5 : index
    %c6_110 = arith.constant 6 : index
    %59 = memref.load %arg2[%c5_109, %c6_110] : memref<9x8xf32, #tpu.memory_space<smem>>
    %c6_111 = arith.constant 6 : index
    %c6_112 = arith.constant 6 : index
    %60 = memref.load %arg2[%c6_111, %c6_112] : memref<9x8xf32, #tpu.memory_space<smem>>
    %c7_113 = arith.constant 7 : index
    %c6_114 = arith.constant 6 : index
    %61 = memref.load %arg2[%c7_113, %c6_114] : memref<9x8xf32, #tpu.memory_space<smem>>
    %c8_115 = arith.constant 8 : index
    %c6_116 = arith.constant 6 : index
    %62 = memref.load %arg2[%c8_115, %c6_116] : memref<9x8xf32, #tpu.memory_space<smem>>
    %c0_117 = arith.constant 0 : index
    %c7_118 = arith.constant 7 : index
    %63 = memref.load %arg2[%c0_117, %c7_118] : memref<9x8xf32, #tpu.memory_space<smem>>
    %c1_119 = arith.constant 1 : index
    %c7_120 = arith.constant 7 : index
    %64 = memref.load %arg2[%c1_119, %c7_120] : memref<9x8xf32, #tpu.memory_space<smem>>
    %c2_121 = arith.constant 2 : index
    %c7_122 = arith.constant 7 : index
    %65 = memref.load %arg2[%c2_121, %c7_122] : memref<9x8xf32, #tpu.memory_space<smem>>
    %c3_123 = arith.constant 3 : index
    %c7_124 = arith.constant 7 : index
    %66 = memref.load %arg2[%c3_123, %c7_124] : memref<9x8xf32, #tpu.memory_space<smem>>
    %c4_125 = arith.constant 4 : index
    %c7_126 = arith.constant 7 : index
    %67 = memref.load %arg2[%c4_125, %c7_126] : memref<9x8xf32, #tpu.memory_space<smem>>
    %c5_127 = arith.constant 5 : index
    %c7_128 = arith.constant 7 : index
    %68 = memref.load %arg2[%c5_127, %c7_128] : memref<9x8xf32, #tpu.memory_space<smem>>
    %c6_129 = arith.constant 6 : index
    %c7_130 = arith.constant 7 : index
    %69 = memref.load %arg2[%c6_129, %c7_130] : memref<9x8xf32, #tpu.memory_space<smem>>
    %c7_131 = arith.constant 7 : index
    %c7_132 = arith.constant 7 : index
    %70 = memref.load %arg2[%c7_131, %c7_132] : memref<9x8xf32, #tpu.memory_space<smem>>
    %c8_133 = arith.constant 8 : index
    %c7_134 = arith.constant 7 : index
    %71 = memref.load %arg2[%c8_133, %c7_134] : memref<9x8xf32, #tpu.memory_space<smem>>
    %c0_135 = arith.constant 0 : index
    %72 = memref.load %arg3[%c0_135] : memref<8xf32, #tpu.memory_space<smem>>
    %c1_136 = arith.constant 1 : index
    %73 = memref.load %arg3[%c1_136] : memref<8xf32, #tpu.memory_space<smem>>
    %c2_137 = arith.constant 2 : index
    %74 = memref.load %arg3[%c2_137] : memref<8xf32, #tpu.memory_space<smem>>
    %c3_138 = arith.constant 3 : index
    %75 = memref.load %arg3[%c3_138] : memref<8xf32, #tpu.memory_space<smem>>
    %c4_139 = arith.constant 4 : index
    %76 = memref.load %arg3[%c4_139] : memref<8xf32, #tpu.memory_space<smem>>
    %c5_140 = arith.constant 5 : index
    %77 = memref.load %arg3[%c5_140] : memref<8xf32, #tpu.memory_space<smem>>
    %c6_141 = arith.constant 6 : index
    %78 = memref.load %arg3[%c6_141] : memref<8xf32, #tpu.memory_space<smem>>
    %c7_142 = arith.constant 7 : index
    %79 = memref.load %arg3[%c7_142] : memref<8xf32, #tpu.memory_space<smem>>
    %c0_143 = arith.constant 0 : index
    %c0_144 = arith.constant 0 : index
    %c0_145 = arith.constant 0 : index
    %80 = vector.load %arg1[%c0_143, %c0_144, %c0_145] : memref<1x18x258xf32, #tpu.memory_space<vmem>>, vector<1x16x256xf32>
    %81 = vector.shape_cast %80 : vector<1x16x256xf32> to vector<16x256xf32>
    %c0_146 = arith.constant 0 : index
    %c1_147 = arith.constant 1 : index
    %c0_148 = arith.constant 0 : index
    %82 = vector.load %arg1[%c0_146, %c1_147, %c0_148] : memref<1x18x258xf32, #tpu.memory_space<vmem>>, vector<1x16x256xf32>
    %83 = vector.shape_cast %82 : vector<1x16x256xf32> to vector<16x256xf32>
    %c0_149 = arith.constant 0 : index
    %c2_150 = arith.constant 2 : index
    %c0_151 = arith.constant 0 : index
    %84 = vector.load %arg1[%c0_149, %c2_150, %c0_151] : memref<1x18x258xf32, #tpu.memory_space<vmem>>, vector<1x16x256xf32>
    %85 = vector.shape_cast %84 : vector<1x16x256xf32> to vector<16x256xf32>
    %c0_152 = arith.constant 0 : index
    %c0_153 = arith.constant 0 : index
    %c1_154 = arith.constant 1 : index
    %86 = vector.load %arg1[%c0_152, %c0_153, %c1_154] : memref<1x18x258xf32, #tpu.memory_space<vmem>>, vector<1x16x256xf32>
    %87 = vector.shape_cast %86 : vector<1x16x256xf32> to vector<16x256xf32>
    %c0_155 = arith.constant 0 : index
    %c1_156 = arith.constant 1 : index
    %c1_157 = arith.constant 1 : index
    %88 = vector.load %arg1[%c0_155, %c1_156, %c1_157] : memref<1x18x258xf32, #tpu.memory_space<vmem>>, vector<1x16x256xf32>
    %89 = vector.shape_cast %88 : vector<1x16x256xf32> to vector<16x256xf32>
    %c0_158 = arith.constant 0 : index
    %c2_159 = arith.constant 2 : index
    %c1_160 = arith.constant 1 : index
    %90 = vector.load %arg1[%c0_158, %c2_159, %c1_160] : memref<1x18x258xf32, #tpu.memory_space<vmem>>, vector<1x16x256xf32>
    %91 = vector.shape_cast %90 : vector<1x16x256xf32> to vector<16x256xf32>
    %c0_161 = arith.constant 0 : index
    %c0_162 = arith.constant 0 : index
    %c2_163 = arith.constant 2 : index
    %92 = vector.load %arg1[%c0_161, %c0_162, %c2_163] : memref<1x18x258xf32, #tpu.memory_space<vmem>>, vector<1x16x256xf32>
    %93 = vector.shape_cast %92 : vector<1x16x256xf32> to vector<16x256xf32>
    %c0_164 = arith.constant 0 : index
    %c1_165 = arith.constant 1 : index
    %c2_166 = arith.constant 2 : index
    %94 = vector.load %arg1[%c0_164, %c1_165, %c2_166] : memref<1x18x258xf32, #tpu.memory_space<vmem>>, vector<1x16x256xf32>
    %95 = vector.shape_cast %94 : vector<1x16x256xf32> to vector<16x256xf32>
    %c0_167 = arith.constant 0 : index
    %c2_168 = arith.constant 2 : index
    %c2_169 = arith.constant 2 : index
    %96 = vector.load %arg1[%c0_167, %c2_168, %c2_169] : memref<1x18x258xf32, #tpu.memory_space<vmem>>, vector<1x16x256xf32>
    %97 = vector.shape_cast %96 : vector<1x16x256xf32> to vector<16x256xf32>
    %98 = vector.broadcast %0 : f32 to vector<16x256xf32>
    %99 = arith.mulf %81, %98 : vector<16x256xf32>
    %100 = vector.broadcast %1 : f32 to vector<16x256xf32>
    %101 = arith.mulf %83, %100 : vector<16x256xf32>
    %102 = arith.addf %99, %101 : vector<16x256xf32>
    %103 = vector.broadcast %2 : f32 to vector<16x256xf32>
    %104 = arith.mulf %85, %103 : vector<16x256xf32>
    %105 = arith.addf %102, %104 : vector<16x256xf32>
    %106 = vector.broadcast %3 : f32 to vector<16x256xf32>
    %107 = arith.mulf %87, %106 : vector<16x256xf32>
    %108 = arith.addf %105, %107 : vector<16x256xf32>
    %109 = vector.broadcast %4 : f32 to vector<16x256xf32>
    %110 = arith.mulf %89, %109 : vector<16x256xf32>
    %111 = arith.addf %108, %110 : vector<16x256xf32>
    %112 = vector.broadcast %5 : f32 to vector<16x256xf32>
    %113 = arith.mulf %91, %112 : vector<16x256xf32>
    %114 = arith.addf %111, %113 : vector<16x256xf32>
    %115 = vector.broadcast %6 : f32 to vector<16x256xf32>
    %116 = arith.mulf %93, %115 : vector<16x256xf32>
    %117 = arith.addf %114, %116 : vector<16x256xf32>
    %118 = vector.broadcast %7 : f32 to vector<16x256xf32>
    %119 = arith.mulf %95, %118 : vector<16x256xf32>
    %120 = arith.addf %117, %119 : vector<16x256xf32>
    %121 = vector.broadcast %8 : f32 to vector<16x256xf32>
    %122 = arith.mulf %97, %121 : vector<16x256xf32>
    %123 = arith.addf %120, %122 : vector<16x256xf32>
    %cst = arith.constant dense<0xFF800000> : vector<256xf32>
    %124 = vector.multi_reduction <maximumf>, %123, %cst [0] : vector<16x256xf32> to vector<256xf32>
    %125 = vector.shape_cast %124 : vector<256xf32> to vector<1x256xf32>
    %126 = vector.broadcast %72 : f32 to vector<1x256xf32>
    %127 = arith.addf %125, %126 : vector<1x256xf32>
    %cst_170 = arith.constant 0.000000e+00 : f32
    %128 = vector.broadcast %cst_170 : f32 to vector<1x256xf32>
    %129 = arith.maximumf %127, %128 : vector<1x256xf32>
    %c0_171 = arith.constant 0 : index
    %c0_172 = arith.constant 0 : index
    %c0_173 = arith.constant 0 : index
    %130 = vector.load %arg4[%c0_171, %c0_172, %c0_173] : memref<1x8x256xf32, #tpu.memory_space<vmem>>, vector<1x1x256xf32>
    %131 = vector.shape_cast %130 : vector<1x1x256xf32> to vector<1x256xf32>
    %132 = vector.shape_cast %129 : vector<1x256xf32> to vector<1x1x256xf32>
    tpu.vector_store %arg4[%c0_171, %c0_172, %c0_173], %132 {strides = array<i32>} : memref<1x8x256xf32, #tpu.memory_space<vmem>>, vector<1x1x256xf32>,
    %133 = vector.broadcast %9 : f32 to vector<16x256xf32>
    %134 = arith.mulf %81, %133 : vector<16x256xf32>
    %135 = vector.broadcast %10 : f32 to vector<16x256xf32>
    %136 = arith.mulf %83, %135 : vector<16x256xf32>
    %137 = arith.addf %134, %136 : vector<16x256xf32>
    %138 = vector.broadcast %11 : f32 to vector<16x256xf32>
    %139 = arith.mulf %85, %138 : vector<16x256xf32>
    %140 = arith.addf %137, %139 : vector<16x256xf32>
    %141 = vector.broadcast %12 : f32 to vector<16x256xf32>
    %142 = arith.mulf %87, %141 : vector<16x256xf32>
    %143 = arith.addf %140, %142 : vector<16x256xf32>
    %144 = vector.broadcast %13 : f32 to vector<16x256xf32>
    %145 = arith.mulf %89, %144 : vector<16x256xf32>
    %146 = arith.addf %143, %145 : vector<16x256xf32>
    %147 = vector.broadcast %14 : f32 to vector<16x256xf32>
    %148 = arith.mulf %91, %147 : vector<16x256xf32>
    %149 = arith.addf %146, %148 : vector<16x256xf32>
    %150 = vector.broadcast %15 : f32 to vector<16x256xf32>
    %151 = arith.mulf %93, %150 : vector<16x256xf32>
    %152 = arith.addf %149, %151 : vector<16x256xf32>
    %153 = vector.broadcast %16 : f32 to vector<16x256xf32>
    %154 = arith.mulf %95, %153 : vector<16x256xf32>
    %155 = arith.addf %152, %154 : vector<16x256xf32>
    %156 = vector.broadcast %17 : f32 to vector<16x256xf32>
    %157 = arith.mulf %97, %156 : vector<16x256xf32>
    %158 = arith.addf %155, %157 : vector<16x256xf32>
    %cst_174 = arith.constant dense<0xFF800000> : vector<256xf32>
    %159 = vector.multi_reduction <maximumf>, %158, %cst_174 [0] : vector<16x256xf32> to vector<256xf32>
    %160 = vector.shape_cast %159 : vector<256xf32> to vector<1x256xf32>
    %161 = vector.broadcast %73 : f32 to vector<1x256xf32>
    %162 = arith.addf %160, %161 : vector<1x256xf32>
    %cst_175 = arith.constant 0.000000e+00 : f32
    %163 = vector.broadcast %cst_175 : f32 to vector<1x256xf32>
    %164 = arith.maximumf %162, %163 : vector<1x256xf32>
    %c0_176 = arith.constant 0 : index
    %c1_177 = arith.constant 1 : index
    %c0_178 = arith.constant 0 : index
    %165 = vector.load %arg4[%c0_176, %c1_177, %c0_178] : memref<1x8x256xf32, #tpu.memory_space<vmem>>, vector<1x1x256xf32>
    %166 = vector.shape_cast %165 : vector<1x1x256xf32> to vector<1x256xf32>
    %167 = vector.shape_cast %164 : vector<1x256xf32> to vector<1x1x256xf32>
    tpu.vector_store %arg4[%c0_176, %c1_177, %c0_178], %167 {strides = array<i32>} : memref<1x8x256xf32, #tpu.memory_space<vmem>>, vector<1x1x256xf32>,
    %168 = vector.broadcast %18 : f32 to vector<16x256xf32>
    %169 = arith.mulf %81, %168 : vector<16x256xf32>
    %170 = vector.broadcast %19 : f32 to vector<16x256xf32>
    %171 = arith.mulf %83, %170 : vector<16x256xf32>
    %172 = arith.addf %169, %171 : vector<16x256xf32>
    %173 = vector.broadcast %20 : f32 to vector<16x256xf32>
    %174 = arith.mulf %85, %173 : vector<16x256xf32>
    %175 = arith.addf %172, %174 : vector<16x256xf32>
    %176 = vector.broadcast %21 : f32 to vector<16x256xf32>
    %177 = arith.mulf %87, %176 : vector<16x256xf32>
    %178 = arith.addf %175, %177 : vector<16x256xf32>
    %179 = vector.broadcast %22 : f32 to vector<16x256xf32>
    %180 = arith.mulf %89, %179 : vector<16x256xf32>
    %181 = arith.addf %178, %180 : vector<16x256xf32>
    %182 = vector.broadcast %23 : f32 to vector<16x256xf32>
    %183 = arith.mulf %91, %182 : vector<16x256xf32>
    %184 = arith.addf %181, %183 : vector<16x256xf32>
    %185 = vector.broadcast %24 : f32 to vector<16x256xf32>
    %186 = arith.mulf %93, %185 : vector<16x256xf32>
    %187 = arith.addf %184, %186 : vector<16x256xf32>
    %188 = vector.broadcast %25 : f32 to vector<16x256xf32>
    %189 = arith.mulf %95, %188 : vector<16x256xf32>
    %190 = arith.addf %187, %189 : vector<16x256xf32>
    %191 = vector.broadcast %26 : f32 to vector<16x256xf32>
    %192 = arith.mulf %97, %191 : vector<16x256xf32>
    %193 = arith.addf %190, %192 : vector<16x256xf32>
    %cst_179 = arith.constant dense<0xFF800000> : vector<256xf32>
    %194 = vector.multi_reduction <maximumf>, %193, %cst_179 [0] : vector<16x256xf32> to vector<256xf32>
    %195 = vector.shape_cast %194 : vector<256xf32> to vector<1x256xf32>
    %196 = vector.broadcast %74 : f32 to vector<1x256xf32>
    %197 = arith.addf %195, %196 : vector<1x256xf32>
    %cst_180 = arith.constant 0.000000e+00 : f32
    %198 = vector.broadcast %cst_180 : f32 to vector<1x256xf32>
    %199 = arith.maximumf %197, %198 : vector<1x256xf32>
    %c0_181 = arith.constant 0 : index
    %c2_182 = arith.constant 2 : index
    %c0_183 = arith.constant 0 : index
    %200 = vector.load %arg4[%c0_181, %c2_182, %c0_183] : memref<1x8x256xf32, #tpu.memory_space<vmem>>, vector<1x1x256xf32>
    %201 = vector.shape_cast %200 : vector<1x1x256xf32> to vector<1x256xf32>
    %202 = vector.shape_cast %199 : vector<1x256xf32> to vector<1x1x256xf32>
    tpu.vector_store %arg4[%c0_181, %c2_182, %c0_183], %202 {strides = array<i32>} : memref<1x8x256xf32, #tpu.memory_space<vmem>>, vector<1x1x256xf32>,
    %203 = vector.broadcast %27 : f32 to vector<16x256xf32>
    %204 = arith.mulf %81, %203 : vector<16x256xf32>
    %205 = vector.broadcast %28 : f32 to vector<16x256xf32>
    %206 = arith.mulf %83, %205 : vector<16x256xf32>
    %207 = arith.addf %204, %206 : vector<16x256xf32>
    %208 = vector.broadcast %29 : f32 to vector<16x256xf32>
    %209 = arith.mulf %85, %208 : vector<16x256xf32>
    %210 = arith.addf %207, %209 : vector<16x256xf32>
    %211 = vector.broadcast %30 : f32 to vector<16x256xf32>
    %212 = arith.mulf %87, %211 : vector<16x256xf32>
    %213 = arith.addf %210, %212 : vector<16x256xf32>
    %214 = vector.broadcast %31 : f32 to vector<16x256xf32>
    %215 = arith.mulf %89, %214 : vector<16x256xf32>
    %216 = arith.addf %213, %215 : vector<16x256xf32>
    %217 = vector.broadcast %32 : f32 to vector<16x256xf32>
    %218 = arith.mulf %91, %217 : vector<16x256xf32>
    %219 = arith.addf %216, %218 : vector<16x256xf32>
    %220 = vector.broadcast %33 : f32 to vector<16x256xf32>
    %221 = arith.mulf %93, %220 : vector<16x256xf32>
    %222 = arith.addf %219, %221 : vector<16x256xf32>
    %223 = vector.broadcast %34 : f32 to vector<16x256xf32>
    %224 = arith.mulf %95, %223 : vector<16x256xf32>
    %225 = arith.addf %222, %224 : vector<16x256xf32>
    %226 = vector.broadcast %35 : f32 to vector<16x256xf32>
    %227 = arith.mulf %97, %226 : vector<16x256xf32>
    %228 = arith.addf %225, %227 : vector<16x256xf32>
    %cst_184 = arith.constant dense<0xFF800000> : vector<256xf32>
    %229 = vector.multi_reduction <maximumf>, %228, %cst_184 [0] : vector<16x256xf32> to vector<256xf32>
    %230 = vector.shape_cast %229 : vector<256xf32> to vector<1x256xf32>
    %231 = vector.broadcast %75 : f32 to vector<1x256xf32>
    %232 = arith.addf %230, %231 : vector<1x256xf32>
    %cst_185 = arith.constant 0.000000e+00 : f32
    %233 = vector.broadcast %cst_185 : f32 to vector<1x256xf32>
    %234 = arith.maximumf %232, %233 : vector<1x256xf32>
    %c0_186 = arith.constant 0 : index
    %c3_187 = arith.constant 3 : index
    %c0_188 = arith.constant 0 : index
    %235 = vector.load %arg4[%c0_186, %c3_187, %c0_188] : memref<1x8x256xf32, #tpu.memory_space<vmem>>, vector<1x1x256xf32>
    %236 = vector.shape_cast %235 : vector<1x1x256xf32> to vector<1x256xf32>
    %237 = vector.shape_cast %234 : vector<1x256xf32> to vector<1x1x256xf32>
    tpu.vector_store %arg4[%c0_186, %c3_187, %c0_188], %237 {strides = array<i32>} : memref<1x8x256xf32, #tpu.memory_space<vmem>>, vector<1x1x256xf32>,
    %238 = vector.broadcast %36 : f32 to vector<16x256xf32>
    %239 = arith.mulf %81, %238 : vector<16x256xf32>
    %240 = vector.broadcast %37 : f32 to vector<16x256xf32>
    %241 = arith.mulf %83, %240 : vector<16x256xf32>
    %242 = arith.addf %239, %241 : vector<16x256xf32>
    %243 = vector.broadcast %38 : f32 to vector<16x256xf32>
    %244 = arith.mulf %85, %243 : vector<16x256xf32>
    %245 = arith.addf %242, %244 : vector<16x256xf32>
    %246 = vector.broadcast %39 : f32 to vector<16x256xf32>
    %247 = arith.mulf %87, %246 : vector<16x256xf32>
    %248 = arith.addf %245, %247 : vector<16x256xf32>
    %249 = vector.broadcast %40 : f32 to vector<16x256xf32>
    %250 = arith.mulf %89, %249 : vector<16x256xf32>
    %251 = arith.addf %248, %250 : vector<16x256xf32>
    %252 = vector.broadcast %41 : f32 to vector<16x256xf32>
    %253 = arith.mulf %91, %252 : vector<16x256xf32>
    %254 = arith.addf %251, %253 : vector<16x256xf32>
    %255 = vector.broadcast %42 : f32 to vector<16x256xf32>
    %256 = arith.mulf %93, %255 : vector<16x256xf32>
    %257 = arith.addf %254, %256 : vector<16x256xf32>
    %258 = vector.broadcast %43 : f32 to vector<16x256xf32>
    %259 = arith.mulf %95, %258 : vector<16x256xf32>
    %260 = arith.addf %257, %259 : vector<16x256xf32>
    %261 = vector.broadcast %44 : f32 to vector<16x256xf32>
    %262 = arith.mulf %97, %261 : vector<16x256xf32>
    %263 = arith.addf %260, %262 : vector<16x256xf32>
    %cst_189 = arith.constant dense<0xFF800000> : vector<256xf32>
    %264 = vector.multi_reduction <maximumf>, %263, %cst_189 [0] : vector<16x256xf32> to vector<256xf32>
    %265 = vector.shape_cast %264 : vector<256xf32> to vector<1x256xf32>
    %266 = vector.broadcast %76 : f32 to vector<1x256xf32>
    %267 = arith.addf %265, %266 : vector<1x256xf32>
    %cst_190 = arith.constant 0.000000e+00 : f32
    %268 = vector.broadcast %cst_190 : f32 to vector<1x256xf32>
    %269 = arith.maximumf %267, %268 : vector<1x256xf32>
    %c0_191 = arith.constant 0 : index
    %c4_192 = arith.constant 4 : index
    %c0_193 = arith.constant 0 : index
    %270 = vector.load %arg4[%c0_191, %c4_192, %c0_193] : memref<1x8x256xf32, #tpu.memory_space<vmem>>, vector<1x1x256xf32>
    %271 = vector.shape_cast %270 : vector<1x1x256xf32> to vector<1x256xf32>
    %272 = vector.shape_cast %269 : vector<1x256xf32> to vector<1x1x256xf32>
    tpu.vector_store %arg4[%c0_191, %c4_192, %c0_193], %272 {strides = array<i32>} : memref<1x8x256xf32, #tpu.memory_space<vmem>>, vector<1x1x256xf32>,
    %273 = vector.broadcast %45 : f32 to vector<16x256xf32>
    %274 = arith.mulf %81, %273 : vector<16x256xf32>
    %275 = vector.broadcast %46 : f32 to vector<16x256xf32>
    %276 = arith.mulf %83, %275 : vector<16x256xf32>
    %277 = arith.addf %274, %276 : vector<16x256xf32>
    %278 = vector.broadcast %47 : f32 to vector<16x256xf32>
    %279 = arith.mulf %85, %278 : vector<16x256xf32>
    %280 = arith.addf %277, %279 : vector<16x256xf32>
    %281 = vector.broadcast %48 : f32 to vector<16x256xf32>
    %282 = arith.mulf %87, %281 : vector<16x256xf32>
    %283 = arith.addf %280, %282 : vector<16x256xf32>
    %284 = vector.broadcast %49 : f32 to vector<16x256xf32>
    %285 = arith.mulf %89, %284 : vector<16x256xf32>
    %286 = arith.addf %283, %285 : vector<16x256xf32>
    %287 = vector.broadcast %50 : f32 to vector<16x256xf32>
    %288 = arith.mulf %91, %287 : vector<16x256xf32>
    %289 = arith.addf %286, %288 : vector<16x256xf32>
    %290 = vector.broadcast %51 : f32 to vector<16x256xf32>
    %291 = arith.mulf %93, %290 : vector<16x256xf32>
    %292 = arith.addf %289, %291 : vector<16x256xf32>
    %293 = vector.broadcast %52 : f32 to vector<16x256xf32>
    %294 = arith.mulf %95, %293 : vector<16x256xf32>
    %295 = arith.addf %292, %294 : vector<16x256xf32>
    %296 = vector.broadcast %53 : f32 to vector<16x256xf32>
    %297 = arith.mulf %97, %296 : vector<16x256xf32>
    %298 = arith.addf %295, %297 : vector<16x256xf32>
    %cst_194 = arith.constant dense<0xFF800000> : vector<256xf32>
    %299 = vector.multi_reduction <maximumf>, %298, %cst_194 [0] : vector<16x256xf32> to vector<256xf32>
    %300 = vector.shape_cast %299 : vector<256xf32> to vector<1x256xf32>
    %301 = vector.broadcast %77 : f32 to vector<1x256xf32>
    %302 = arith.addf %300, %301 : vector<1x256xf32>
    %cst_195 = arith.constant 0.000000e+00 : f32
    %303 = vector.broadcast %cst_195 : f32 to vector<1x256xf32>
    %304 = arith.maximumf %302, %303 : vector<1x256xf32>
    %c0_196 = arith.constant 0 : index
    %c5_197 = arith.constant 5 : index
    %c0_198 = arith.constant 0 : index
    %305 = vector.load %arg4[%c0_196, %c5_197, %c0_198] : memref<1x8x256xf32, #tpu.memory_space<vmem>>, vector<1x1x256xf32>
    %306 = vector.shape_cast %305 : vector<1x1x256xf32> to vector<1x256xf32>
    %307 = vector.shape_cast %304 : vector<1x256xf32> to vector<1x1x256xf32>
    tpu.vector_store %arg4[%c0_196, %c5_197, %c0_198], %307 {strides = array<i32>} : memref<1x8x256xf32, #tpu.memory_space<vmem>>, vector<1x1x256xf32>,
    %308 = vector.broadcast %54 : f32 to vector<16x256xf32>
    %309 = arith.mulf %81, %308 : vector<16x256xf32>
    %310 = vector.broadcast %55 : f32 to vector<16x256xf32>
    %311 = arith.mulf %83, %310 : vector<16x256xf32>
    %312 = arith.addf %309, %311 : vector<16x256xf32>
    %313 = vector.broadcast %56 : f32 to vector<16x256xf32>
    %314 = arith.mulf %85, %313 : vector<16x256xf32>
    %315 = arith.addf %312, %314 : vector<16x256xf32>
    %316 = vector.broadcast %57 : f32 to vector<16x256xf32>
    %317 = arith.mulf %87, %316 : vector<16x256xf32>
    %318 = arith.addf %315, %317 : vector<16x256xf32>
    %319 = vector.broadcast %58 : f32 to vector<16x256xf32>
    %320 = arith.mulf %89, %319 : vector<16x256xf32>
    %321 = arith.addf %318, %320 : vector<16x256xf32>
    %322 = vector.broadcast %59 : f32 to vector<16x256xf32>
    %323 = arith.mulf %91, %322 : vector<16x256xf32>
    %324 = arith.addf %321, %323 : vector<16x256xf32>
    %325 = vector.broadcast %60 : f32 to vector<16x256xf32>
    %326 = arith.mulf %93, %325 : vector<16x256xf32>
    %327 = arith.addf %324, %326 : vector<16x256xf32>
    %328 = vector.broadcast %61 : f32 to vector<16x256xf32>
    %329 = arith.mulf %95, %328 : vector<16x256xf32>
    %330 = arith.addf %327, %329 : vector<16x256xf32>
    %331 = vector.broadcast %62 : f32 to vector<16x256xf32>
    %332 = arith.mulf %97, %331 : vector<16x256xf32>
    %333 = arith.addf %330, %332 : vector<16x256xf32>
    %cst_199 = arith.constant dense<0xFF800000> : vector<256xf32>
    %334 = vector.multi_reduction <maximumf>, %333, %cst_199 [0] : vector<16x256xf32> to vector<256xf32>
    %335 = vector.shape_cast %334 : vector<256xf32> to vector<1x256xf32>
    %336 = vector.broadcast %78 : f32 to vector<1x256xf32>
    %337 = arith.addf %335, %336 : vector<1x256xf32>
    %cst_200 = arith.constant 0.000000e+00 : f32
    %338 = vector.broadcast %cst_200 : f32 to vector<1x256xf32>
    %339 = arith.maximumf %337, %338 : vector<1x256xf32>
    %c0_201 = arith.constant 0 : index
    %c6_202 = arith.constant 6 : index
    %c0_203 = arith.constant 0 : index
    %340 = vector.load %arg4[%c0_201, %c6_202, %c0_203] : memref<1x8x256xf32, #tpu.memory_space<vmem>>, vector<1x1x256xf32>
    %341 = vector.shape_cast %340 : vector<1x1x256xf32> to vector<1x256xf32>
    %342 = vector.shape_cast %339 : vector<1x256xf32> to vector<1x1x256xf32>
    tpu.vector_store %arg4[%c0_201, %c6_202, %c0_203], %342 {strides = array<i32>} : memref<1x8x256xf32, #tpu.memory_space<vmem>>, vector<1x1x256xf32>,
    %343 = vector.broadcast %63 : f32 to vector<16x256xf32>
    %344 = arith.mulf %81, %343 : vector<16x256xf32>
    %345 = vector.broadcast %64 : f32 to vector<16x256xf32>
    %346 = arith.mulf %83, %345 : vector<16x256xf32>
    %347 = arith.addf %344, %346 : vector<16x256xf32>
    %348 = vector.broadcast %65 : f32 to vector<16x256xf32>
    %349 = arith.mulf %85, %348 : vector<16x256xf32>
    %350 = arith.addf %347, %349 : vector<16x256xf32>
    %351 = vector.broadcast %66 : f32 to vector<16x256xf32>
    %352 = arith.mulf %87, %351 : vector<16x256xf32>
    %353 = arith.addf %350, %352 : vector<16x256xf32>
    %354 = vector.broadcast %67 : f32 to vector<16x256xf32>
    %355 = arith.mulf %89, %354 : vector<16x256xf32>
    %356 = arith.addf %353, %355 : vector<16x256xf32>
    %357 = vector.broadcast %68 : f32 to vector<16x256xf32>
    %358 = arith.mulf %91, %357 : vector<16x256xf32>
    %359 = arith.addf %356, %358 : vector<16x256xf32>
    %360 = vector.broadcast %69 : f32 to vector<16x256xf32>
    %361 = arith.mulf %93, %360 : vector<16x256xf32>
    %362 = arith.addf %359, %361 : vector<16x256xf32>
    %363 = vector.broadcast %70 : f32 to vector<16x256xf32>
    %364 = arith.mulf %95, %363 : vector<16x256xf32>
    %365 = arith.addf %362, %364 : vector<16x256xf32>
    %366 = vector.broadcast %71 : f32 to vector<16x256xf32>
    %367 = arith.mulf %97, %366 : vector<16x256xf32>
    %368 = arith.addf %365, %367 : vector<16x256xf32>
    %cst_204 = arith.constant dense<0xFF800000> : vector<256xf32>
    %369 = vector.multi_reduction <maximumf>, %368, %cst_204 [0] : vector<16x256xf32> to vector<256xf32>
    %370 = vector.shape_cast %369 : vector<256xf32> to vector<1x256xf32>
    %371 = vector.broadcast %79 : f32 to vector<1x256xf32>
    %372 = arith.addf %370, %371 : vector<1x256xf32>
    %cst_205 = arith.constant 0.000000e+00 : f32
    %373 = vector.broadcast %cst_205 : f32 to vector<1x256xf32>
    %374 = arith.maximumf %372, %373 : vector<1x256xf32>
    %c0_206 = arith.constant 0 : index
    %c7_207 = arith.constant 7 : index
    %c0_208 = arith.constant 0 : index
    %375 = vector.load %arg4[%c0_206, %c7_207, %c0_208] : memref<1x8x256xf32, #tpu.memory_space<vmem>>, vector<1x1x256xf32>
    %376 = vector.shape_cast %375 : vector<1x1x256xf32> to vector<1x256xf32>
    %377 = vector.shape_cast %374 : vector<1x256xf32> to vector<1x1x256xf32>
    tpu.vector_store %arg4[%c0_206, %c7_207, %c0_208], %377 {strides = array<i32>} : memref<1x8x256xf32, #tpu.memory_space<vmem>>, vector<1x1x256xf32>,
    return
  }
  func.func @transform_0(%arg0: i32) -> (i32, i32, i32) {
    %c0_i32 = arith.constant 0 : i32
    %c0_i32_0 = arith.constant 0 : i32
    %c0_i32_1 = arith.constant 0 : i32
    return %arg0, %c0_i32, %c0_i32_0 : i32, i32, i32
  }
  func.func @transform_1(%arg0: i32) -> (i32, i32) {
    %c0_i32 = arith.constant 0 : i32
    %c0_i32_0 = arith.constant 0 : i32
    %c0_i32_1 = arith.constant 0 : i32
    return %c0_i32, %c0_i32_0 : i32, i32
  }
  func.func @transform_2(%arg0: i32) -> i32 {
    %c0_i32 = arith.constant 0 : i32
    %c0_i32_0 = arith.constant 0 : i32
    return %c0_i32 : i32
  }
  func.func @transform_3(%arg0: i32) -> (i32, i32, i32) {
    %c0_i32 = arith.constant 0 : i32
    %c0_i32_0 = arith.constant 0 : i32
    %c0_i32_1 = arith.constant 0 : i32
    return %arg0, %c0_i32, %c0_i32_0 : i32, i32, i32
  }
}

</mosaic_0001>

<bundles_post_ra>
// kernel: tpu_custom_call.1
= control target key start
LH: loop header
LB: loop body
LE: loop exit
PB: predicated region body
PF: predicated region fallthrough
CT: control target
= control target key end

     0   :  { %8 = vsyncpa [#allocation4], 0  ;;  %s6534_s0 = inlined_call_operand.vmem [shape: f32[1,18,258], index: 0, kind: input, shape index: {}]   ;;  %s6535_s1 = inlined_call_operand.vmem [shape: f32[9,8], index: 1, kind: input, shape index: {}]   ;;  %s6536_s2 = inlined_call_operand.vmem [shape: f32[8], index: 2, kind: input, shape index: {}]   ;;  %s6537_s3 = inlined_call_operand.hbm [shape: f32[1,8,256], index: 3, kind: output, shape index: {}]  }
   0x1   :  { %9 = vsyncpa [#allocation6], 0 }
   0x2   :  { %10 = vsyncpa [#allocation3], 0  ;;  %s17_s14 = sshll.u32 %s6535_s1, 4  ;;  %s29_s17 = sshll.u32 %s6536_s2, 4  ;;  %s18_s14 = int_to_ptr.vmem [resolvable:$true] %s17_s14  ;;  %s30_s17 = int_to_ptr.vmem [resolvable:$true] %s29_s17 }
   0x3   :  { %s3572_s18 = smov [#allocation2]   ;;  %s3573_s19 = smov 128  }
   0x4   :  { %s3574_s20 = smov 8   ;;  %s3575_s21 = smov [#allocation5]  }
   0x5   :  { %23 = dma.vmem_to_smem %s18_s14, 256, %s3572_s18, [#allocation4], %s3573_s19, %s3573_s19, %s3574_s20  }
   0x6   :  { %32 = dma.vmem_to_smem %s30_s17, 16, %s3575_s21, [#allocation6]  }
   0x7   :  { %3566 = dma.done.wait [#allocation4], 256  }
   0x8   :  { %3567 = vsyncadd [#allocation4], 4294967040 }
   0x9   :  { %3568 = dma.done.wait [#allocation6], 16  }
   0xa   :  { %3569 = vsyncadd [#allocation6], 4294967280 }
   0xb   :  { %41 = sfence }
   0xc   :  { %s3368_s22 = sld [smem:[#allocation2 + $0x180]]  ;;  %v3608_v0 = vld [vmem:[%s6534_s0 + $0x20] sm:$0xff]  ;;  %v3613_v1 = vld [vmem:[%s6534_s0 + $0x10] sm:$0xff]  ;;  %s3576_s28 = smov 127   ;;  %v3629_v7 = vld [vmem:[%s6534_s0 + $0x28] sm:$0xff]  ;;  %vm158_vm0 = vcmask 1046528  }
   0xd   :  { %s3369_s23 = sld [smem:[#allocation2 + $0x200]]  ;;  %6625 = vst [vmem:[#allocation11_spill] sm:$0xff] %v3608_v0  ;;  %v3618_v2 = vld [vmem:[%s6534_s0] sm:$0xff]  ;;  %v3634_v8 = vld [vmem:[%s6534_s0 + $0x18] sm:$0xff]  ;;  %v3639_v9 = vld [vmem:[%s6534_s0 + $0x8] sm:$0xff]  ;;  %vm190_vm1 = vcmask 1045504  }
   0xe   :  { %6626 = vst [vmem:[#allocation12_spill] sm:$0xff] %v3629_v7  ;;  %v3644_v10 = vld [vmem:[%s6534_s0 + $0x10] sm:$0xfe]  ;;  %v3649_v12 = vld [vmem:[%s6534_s0 + $0x8] sm:$0xfe]  ;;  %s3370_s16 = sld [smem:[#allocation2 + $0x280]] }
   0xf   :  { %6627 = vst [vmem:[#allocation13_spill] sm:$0xff] %v3649_v12  ;;  %v3654_v13 = vld [vmem:[%s6534_s0] sm:$0xfe]  ;;  %v3670_v23 = vld [vmem:[%s6534_s0 + $0x40] sm:$0x1]  ;;  %s3371_s5 = sld [smem:[#allocation2 + $0x300]] }
  0x10   :  { %6628 = vst [vmem:[#allocation14_spill] sm:$0xff] %v3654_v13  ;;  %v3676_v30 = vld [vmem:[%s6534_s0 + $0x38] sm:$0x1]  ;;  %v3681_v31 = vld [vmem:[%s6534_s0 + $0x30] sm:$0x1]  ;;  %s3372_s6 = sld [smem:[#allocation2 + $0x380]] }
  0x11   :  { %6629 = vst [vmem:[#allocation15_spill] sm:$0xff] %v3670_v23  ;;  %v3695_v40 = vld [vmem:[%s6534_s0 + $0x10] sm:$0xfc]  ;;  %v3700_v43 = vld [vmem:[%s6534_s0 + $0x8] sm:$0xfc]  ;;  %s3577_s7 = smov 126  }
  0x12   :  { %v209_v3 = vstv %s3368_s22  ;;  %6630 = vst [vmem:[#allocation16_spill] sm:$0xff] %v3676_v30  ;;  %v3705_v44 = vld [vmem:[%s6534_s0] sm:$0xfc]  ;;  %v3722_v60 = vld [vmem:[%s6534_s0 + $0x40] sm:$0x3]  ;;  %s3373_s8 = sld [smem:[#allocation2 + $0x400]] }
  0x13   :  { %v214_v4 = vmul.f32 %v209_v3, %v3608_v0  ;;  %v212_v5 = vmul.f32 %v209_v3, %v3613_v1  ;;  %v210_v6 = vmul.f32 %v209_v3, %v3618_v2  ;;  %v247_v11 = vstv %s3369_s23  ;;  %6631 = vst [vmem:[#allocation17_spill] sm:$0xff] %v3681_v31  ;;  %v3727_v61 = vld [vmem:[%s6534_s0 + $0x38] sm:$0x3]  ;;  %v3732_v62 = vld [vmem:[%s6534_s0 + $0x30] sm:$0x3]  ;;  %s3377_s9 = sld [smem:[#allocation2 + $0x181]] }
  0x14   :  { %v215_v14 = vmul.f32 %v209_v3, %v3629_v7  ;;  %v213_v15 = vmul.f32 %v209_v3, %v3634_v8  ;;  %v211_v16 = vmul.f32 %v209_v3, %v3639_v9  ;;  %v250_v17 = vmul.f32 %v247_v11, %v3644_v10  ;;  %6632 = vst [vmem:[#allocation18_spill] sm:$0xff] %v3695_v40  ;;  %s3378_s10 = sld [smem:[#allocation2 + $0x201]] }
  0x15   :  { %230 = vrot.lane.b32.xlu2 %v214_v4, %s3576_s28  ;;  %226 = vrot.lane.b32.xlu1 %v212_v5, %s3576_s28  ;;  %v253_v18 = vmul.f32 %v247_v11, %v3629_v7  ;;  %v249_v19 = vmul.f32 %v247_v11, %v3649_v12  ;;  %v252_v20 = vmul.f32 %v247_v11, %v3608_v0  ;;  %v305_v41 = vstv %s3370_s16  ;;  %s3379_s11 = sld [smem:[#allocation2 + $0x281]] }
  0x16   :  { %222 = vrot.lane.b32.xlu0 %v210_v6, %s3576_s28  ;;  %v248_v21 = vmul.f32 %v247_v11, %v3654_v13  ;;  %v251_v22 = vmul.f32 %v247_v11, %v3634_v8  ;;  %v272_v24 = vrot.slane %v250_v17, 1  ;;  %v256_v32 = vmul.f32 %v247_v11, %v3670_v23  ;;  %6633 = vst [vmem:[#allocation19_spill] sm:$0xff] %v3700_v43  ;;  %s3380_s12 = sld [smem:[#allocation2 + $0x301]] }
  0x17   :  { %v273_v25 = vrot.slane %v253_v18, 1  ;;  %v269_v26 = vrot.slane %v249_v19, 1  ;;  %v270_v27 = vrot.slane %v252_v20, 1  ;;  %v255_v35 = vmul.f32 %v247_v11, %v3676_v30  ;;  %6634 = vst [vmem:[#allocation20_spill] sm:$0xff] %v3705_v44  ;;  %s3381_s13 = sld [smem:[#allocation2 + $0x381]] }
  0x18   :  { %v266_v28 = vrot.slane %v248_v21, 1  ;;  %v267_v29 = vrot.slane %v251_v22, 1  ;;  %v254_v37 = vmul.f32 %v247_v11, %v3681_v31  ;;  %v279_v38 = vrot.slane %v256_v32, 1  ;;  %6635 = vst [vmem:[#allocation21_spill] sm:$0xff] %v3722_v60  ;;  %s3382_s14 = sld [smem:[#allocation2 + $0x401]] }
  0x19   :  { %v274_v33 = vsel %vm158_vm0, %v272_v24, %v273_v25  ;;  %v271_v34 = vsel %vm158_vm0, %v269_v26, %v270_v27  ;;  %v277_v39 = vrot.slane %v255_v35, 1  ;;  %v308_v46 = vmul.f32 %v305_v41, %v3695_v40  ;;  %6636 = vst [vmem:[#allocation22_spill] sm:$0xff] %v3727_v61  ;;  %s3366_s15 = sld [smem:[#allocation2 + $0x80]] }
  0x1a   :  { %v268_v36 = vsel %vm158_vm0, %v266_v28, %v267_v29  ;;  %v275_v42 = vrot.slane %v254_v37, 1  ;;  %v280_v45 = vsel %vm158_vm0, %v273_v25, %v279_v38  ;;  %v311_v48 = vmul.f32 %v305_v41, %v3629_v7  ;;  %6637 = vst [vmem:[#allocation23_spill] sm:$0xff] %v3732_v62  ;;  %s3367_s16 = sld [smem:[#allocation2 + $0x100]] }
  0x1b   :  { %v278_v47 = vsel %vm158_vm0, %v270_v27, %v277_v39  ;;  %v307_v49 = vmul.f32 %v305_v41, %v3700_v43  ;;  %v310_v50 = vmul.f32 %v305_v41, %v3608_v0  ;;  %v306_v52 = vmul.f32 %v305_v41, %v3705_v44  ;;  %s42_s17 = sld [smem:[#allocation2]] }
  0x1c   :  { %v276_v51 = vsel %vm158_vm0, %v267_v29, %v275_v42  ;;  %v309_v53 = vmul.f32 %v305_v41, %v3634_v8  ;;  %v330_v54 = vrot.slane %v308_v46, 2  ;;  %v331_v55 = vrot.slane %v311_v48, 2  ;;  %s3984_s18 = sld [smem:[#allocation2 + $0x182]] }
  0x1d   :  { %232 = vrot.lane.b32.xlu2 %v215_v14, %s3576_s28  ;;  %228 = vrot.lane.b32.xlu1 %v213_v15, %s3576_s28  ;;  %v327_v56 = vrot.slane %v307_v49, 2  ;;  %v328_v57 = vrot.slane %v310_v50, 2  ;;  %v324_v58 = vrot.slane %v306_v52, 2  ;;  %v314_v4 = vmul.f32 %v305_v41, %v3722_v60  ;;  %s4005_s19 = sld [smem:[#allocation2 + $0x202]] }
  0x1e   :  { %224 = vrot.lane.b32.xlu0 %v211_v16, %s3576_s28  ;;  %v325_v59 = vrot.slane %v309_v53, 2  ;;  %v332_v63 = vsel %vm190_vm1, %v330_v54, %v331_v55  ;;  %v313_v5 = vmul.f32 %v305_v41, %v3727_v61  ;;  %v312_v11 = vmul.f32 %v305_v41, %v3732_v62  ;;  %s4107_s20 = sld [smem:[#allocation2 + $0x282]] }
  0x1f   :  { %v329_v3 = vsel %vm190_vm1, %v327_v56, %v328_v57  ;;  %v337_v14 = vrot.slane %v314_v4, 2  ;;  %v363_v20 = vstv %s3371_s5  ;;  %v401_v25 = vstv %s3372_s6  ;;  %s4127_s21 = sld [smem:[#allocation5]] }
  0x20   :  { %v326_v6 = vsel %vm190_vm1, %v324_v58, %v325_v59  ;;  %v335_v15 = vrot.slane %v313_v5, 2  ;;  %v333_v16 = vrot.slane %v312_v11, 2  ;;  %v366_v21 = vmul.f32 %v363_v20, %v3613_v1  ;;  %s3389_s26 = sld [smem:[#allocation2 + $0x302]] }
  0x21   :  { %v338_v17 = vsel %vm190_vm1, %v331_v55, %v337_v14  ;;  %v365_v22 = vmul.f32 %v363_v20, %v3639_v9  ;;  %v364_v24 = vmul.f32 %v363_v20, %v3618_v2  ;;  %v369_v26 = vmul.f32 %v363_v20, %v3629_v7  ;;  %s3390_s27 = sld [smem:[#allocation2 + $0x382]] }
  0x22   :  { %v336_v18 = vsel %vm190_vm1, %v328_v57, %v335_v15  ;;  %v334_v19 = vsel %vm190_vm1, %v325_v59, %v333_v16  ;;  %v368_v27 = vmul.f32 %v363_v20, %v3608_v0  ;;  %v367_v28 = vmul.f32 %v363_v20, %v3634_v8  ;;  %s3376_s23 = sld [smem:[#allocation2 + $0x101]] }
  0x23   :  { %v404_v29 = vmul.f32 %v401_v25, %v3644_v10  ;;  %v407_v32 = vmul.f32 %v401_v25, %v3629_v7  ;;  %v402_v35 = vmul.f32 %v401_v25, %v3654_v13  ;;  %v410_v46 = vmul.f32 %v401_v25, %v3670_v23  ;;  %s4293_s1 = sld [smem:[#allocation2 + $0x1]] }
  0x24   :  { %v459_v55 = vstv %s3373_s8  ;;  %vm234_vm2 = vcmask 1039360   ;;  %vm388_vm3 = vcmask 1031168   ;;  %vm539_vm4 = vcmask 1040384   ;;  %s3407_s6 = sld [smem:[#allocation2 + $0x304]] }
  0x25   :  { %285 = vrot.lane.b32.xlu2 %v274_v33, %s3576_s28  ;;  %283 = vrot.lane.b32.xlu1 %v271_v34, %s3576_s28  ;;  %v403_v33 = vmul.f32 %v401_v25, %v3649_v12  ;;  %v406_v34 = vmul.f32 %v401_v25, %v3608_v0  ;;  %v426_v37 = vrot.slane %v404_v29, 1  ;;  %v427_v38 = vrot.slane %v407_v32, 1  ;;  %s3408_s8 = sld [smem:[#allocation2 + $0x384]] }
  0x26   :  { %281 = vrot.lane.b32.xlu0 %v268_v36, %s3576_s28  ;;  %v405_v36 = vmul.f32 %v401_v25, %v3634_v8  ;;  %v420_v42 = vrot.slane %v402_v35, 1  ;;  %v433_v52 = vrot.slane %v410_v46, 1  ;;  %v462_v58 = vmul.f32 %v459_v55, %v3695_v40  ;;  %s3409_s22 = sld [smem:[#allocation2 + $0x404]] }
  0x27   :  { %v423_v39 = vrot.slane %v403_v33, 1  ;;  %v424_v41 = vrot.slane %v406_v34, 1  ;;  %v428_v48 = vsel %vm158_vm0, %v426_v37, %v427_v38  ;;  %v465_v59 = vmul.f32 %v459_v55, %v3629_v7  ;;  %s5493_s29 = sld [smem:[#allocation2 + $0x85]] }
  0x28   :  { %v434_v56 = vsel %vm158_vm0, %v427_v38, %v433_v52  ;;  %v460_v5 = vmul.f32 %v459_v55, %v3705_v44  ;;  %v484_v11 = vrot.slane %v462_v58, 2  ;;  %v615_v34 = vstv %s3377_s9  ;;  %s5509_s30 = sld [smem:[#allocation2 + $0x5]] }
  0x29   :  { %v425_v49 = vsel %vm158_vm0, %v423_v39, %v424_v41  ;;  %v485_v14 = vrot.slane %v465_v59, 2  ;;  %v617_v37 = vmul.f32 %v615_v34, %v3639_v9  ;;  %v616_v38 = vmul.f32 %v615_v34, %v3618_v2  ;;  %s5534_s4 = sld [smem:[#allocation2 + $0x105]] }
  0x2a   :  { %v619_v46 = vmul.f32 %v615_v34, %v3634_v8  ;;  %s5594_s5 = sld [smem:[#allocation2 + $0x286]] }
  0x2d   :  { %291 = vrot.lane.b32.xlu2 %v280_v45, %s3576_s28  ;;  %289 = vrot.lane.b32.xlu1 %v278_v47, %s3576_s28  ;;  %v421_v45 = vrot.slane %v405_v36, 1  ;;  %v409_v47 = vmul.f32 %v401_v25, %v3676_v30  ;;  %v618_v36 = vmul.f32 %v615_v34, %v3613_v1 }
  0x2e   :  { %287 = vrot.lane.b32.xlu0 %v276_v51, %s3576_s28  ;;  %v408_v51 = vmul.f32 %v401_v25, %v3681_v31  ;;  %v466_v25 = vmul.f32 %v459_v55, %v3732_v62 }
  0x2f   :  { %v422_v50 = vsel %vm158_vm0, %v420_v42, %v421_v45  ;;  %v431_v53 = vrot.slane %v409_v47, 1  ;;  %v621_v42 = vmul.f32 %v615_v34, %v3629_v7 }
  0x30   :  { %v429_v54 = vrot.slane %v408_v51, 1 }
  0x31   :  { %v432_v57 = vsel %vm158_vm0, %v424_v41, %v431_v53  ;;  %v652_v41 = vstv %s3378_s10  ;;  %s3395_s10 = sld [smem:[#allocation2 + $0x183]] }
  0x32   :  { %v430_v4 = vsel %vm158_vm0, %v421_v45, %v429_v54  ;;  %v620_v45 = vmul.f32 %v615_v34, %v3608_v0  ;;  %v655_v47 = vmul.f32 %v652_v41, %v3644_v10  ;;  %v653_v51 = vmul.f32 %v652_v41, %v3654_v13 }
  0x33   :  { %v656_v52 = vmul.f32 %v652_v41, %v3634_v8 }
  0x34   :  { %v677_v53 = vrot.slane %v655_v47, 1  ;;  %v671_v58 = vrot.slane %v653_v51, 1 }
  0x35   :  { %343 = vrot.lane.b32.xlu2 %v332_v63, %s3576_s28  ;;  %341 = vrot.lane.b32.xlu1 %v329_v3, %s3576_s28  ;;  %v461_v63 = vmul.f32 %v459_v55, %v3700_v43  ;;  %v464_v3 = vmul.f32 %v459_v55, %v3608_v0  ;;  %v672_v59 = vrot.slane %v656_v52, 1 }
  0x36   :  { %339 = vrot.lane.b32.xlu0 %v326_v6, %s3576_s28  ;;  %v463_v6 = vmul.f32 %v459_v55, %v3634_v8 }
  0x37   :  { %v481_v15 = vrot.slane %v461_v63, 2  ;;  %v482_v16 = vrot.slane %v464_v3, 2  ;;  %v661_v63 = vmul.f32 %v652_v41, %v3670_v23  ;;  %v660_v3 = vmul.f32 %v652_v41, %v3676_v30 }
  0x39   :  { %v483_v20 = vsel %vm190_vm1, %v481_v15, %v482_v16  ;;  %v682_v15 = vrot.slane %v660_v3, 1 }
  0x3d   :  { %349 = vrot.lane.b32.xlu2 %v338_v17, %s3576_s28  ;;  %347 = vrot.lane.b32.xlu1 %v336_v18, %s3576_s28  ;;  %v478_v17 = vrot.slane %v460_v5, 2  ;;  %v479_v18 = vrot.slane %v463_v6, 2  ;;  %v673_v6 = vsel %vm158_vm0, %v671_v58, %v672_v59 }
  0x3e   :  { %345 = vrot.lane.b32.xlu0 %v334_v19, %s3576_s28  ;;  %v486_v19 = vsel %vm190_vm1, %v484_v11, %v485_v14  ;;  %v659_v11 = vmul.f32 %v652_v41, %v3681_v31 }
  0x45   :  { %380 = vrot.lane.b32.xlu2 %v366_v21, %s3577_s7  ;;  %378 = vrot.lane.b32.xlu1 %v365_v22, %s3577_s7  ;;  %v468_v21 = vmul.f32 %v459_v55, %v3722_v60  ;;  %v467_v22 = vmul.f32 %v459_v55, %v3727_v61 }
  0x46   :  { %376 = vrot.lane.b32.xlu0 %v364_v24, %s3577_s7  ;;  %v480_v24 = vsel %vm190_vm1, %v478_v17, %v479_v18 }
  0x4d   :  { %386 = vrot.lane.b32.xlu2 %v369_v26, %s3577_s7  ;;  %384 = vrot.lane.b32.xlu1 %v368_v27, %s3577_s7  ;;  %v491_v26 = vrot.slane %v468_v21, 2  ;;  %v489_v27 = vrot.slane %v467_v22, 2 }
  0x4e   :  { %382 = vrot.lane.b32.xlu0 %v367_v28, %s3577_s7  ;;  %v487_v28 = vrot.slane %v466_v25, 2 }
  0x4f   :  { %v492_v29 = vsel %vm190_vm1, %v485_v14, %v491_v26  ;;  %v490_v32 = vsel %vm190_vm1, %v482_v16, %v489_v27  ;;  %v684_v14 = vrot.slane %v661_v63, 1 }
  0x50   :  { %v488_v33 = vsel %vm190_vm1, %v479_v18, %v487_v28  ;;  %v680_v18 = vrot.slane %v659_v11, 1 }
  0x52   :  { %v681_v28 = vsel %vm158_vm0, %v672_v59, %v680_v18 }
  0x55   :  { %439 = vrot.lane.b32.xlu2 %v428_v48, %s3577_s7  ;;  %437 = vrot.lane.b32.xlu1 %v425_v49, %s3577_s7  ;;  %v658_v48 = vmul.f32 %v652_v41, %v3629_v7  ;;  %v654_v49 = vmul.f32 %v652_v41, %v3649_v12 }
  0x56   :  { %435 = vrot.lane.b32.xlu0 %v422_v50, %s3577_s7  ;;  %v657_v50 = vmul.f32 %v652_v41, %v3608_v0 }
  0x57   :  { %v678_v54 = vrot.slane %v658_v48, 1  ;;  %v674_v55 = vrot.slane %v654_v49, 1 }
  0x59   :  { %v685_v21 = vsel %vm158_vm0, %v678_v54, %v684_v14 }
  0x5d   :  { %445 = vrot.lane.b32.xlu2 %v434_v56, %s3577_s7  ;;  %443 = vrot.lane.b32.xlu1 %v432_v57, %s3577_s7  ;;  %v675_v56 = vrot.slane %v657_v50, 1 }
  0x5e   :  { %441 = vrot.lane.b32.xlu0 %v430_v4, %s3577_s7  ;;  %v679_v4 = vsel %vm158_vm0, %v677_v53, %v678_v54 }
  0x5f   :  { %v676_v5 = vsel %vm158_vm0, %v674_v55, %v675_v56  ;;  %v683_v22 = vsel %vm158_vm0, %v675_v56, %v682_v15 }
  0x65   :  { %497 = vrot.lane.b32.xlu2 %v486_v19, %s3577_s7  ;;  %495 = vrot.lane.b32.xlu1 %v483_v20, %s3577_s7  ;;  %v710_v19 = vstv %s3379_s11  ;;  %s4399_s11 = sld [smem:[#allocation2 + $0x203]] }
  0x66   :  { %493 = vrot.lane.b32.xlu0 %v480_v24, %s3577_s7  ;;  %v713_v24 = vmul.f32 %v710_v19, %v3695_v40  ;;  %v716_v25 = vmul.f32 %v710_v19, %v3629_v7  ;;  %v712_v26 = vmul.f32 %v710_v19, %v3700_v43  ;;  %v715_v27 = vmul.f32 %v710_v19, %v3608_v0 }
  0x67   :  { %v719_v49 = vmul.f32 %v710_v19, %v3722_v60  ;;  %v718_v50 = vmul.f32 %v710_v19, %v3727_v61  ;;  %v717_v52 = vmul.f32 %v710_v19, %v3732_v62 }
  0x68   :  { %v736_v34 = vrot.slane %v716_v25, 2 }
  0x69   :  { %v742_v53 = vrot.slane %v719_v49, 2  ;;  %v740_v54 = vrot.slane %v718_v50, 2  ;;  %v738_v58 = vrot.slane %v717_v52, 2 }
  0x6b   :  { %v743_v63 = vsel %vm190_vm1, %v736_v34, %v742_v53 }
  0x6d   :  { %503 = vrot.lane.b32.xlu2 %v492_v29, %s3577_s7  ;;  %501 = vrot.lane.b32.xlu1 %v490_v32, %s3577_s7  ;;  %v711_v29 = vmul.f32 %v710_v19, %v3705_v44  ;;  %v714_v32 = vmul.f32 %v710_v19, %v3634_v8 }
  0x6e   :  { %499 = vrot.lane.b32.xlu0 %v488_v33, %s3577_s7  ;;  %v735_v33 = vrot.slane %v713_v24, 2  ;;  %v805_v24 = vstv %s3381_s13  ;;  %s4520_s13 = sld [smem:[#allocation5 + $0x1]] }
  0x6f   :  { %v3803_v35 = vpop.permute.xlu2 %230 }
  0x70   :  { %v737_v47 = vsel %vm190_vm1, %v735_v33, %v736_v34  ;;  %v807_v33 = vmul.f32 %v805_v24, %v3649_v12  ;;  %v810_v34 = vmul.f32 %v805_v24, %v3608_v0 }
  0x75   :  { %632 = vrot.lane.b32.xlu2 %v618_v36, %s3576_s28  ;;  %630 = vrot.lane.b32.xlu1 %v617_v37, %s3576_s28  ;;  %v732_v36 = vrot.slane %v712_v26, 2  ;;  %v733_v37 = vrot.slane %v715_v27, 2 }
  0x76   :  { %628 = vrot.lane.b32.xlu0 %v616_v38, %s3576_s28 }
  0x77   :  { %v3811_v39 = vpop.permute.xlu2 %232  ;;  %v734_v48 = vsel %vm190_vm1, %v732_v36, %v733_v37  ;;  %v741_v3 = vsel %vm190_vm1, %v733_v37, %v740_v54  ;;  %v806_v36 = vmul.f32 %v805_v24, %v3654_v13  ;;  %v809_v37 = vmul.f32 %v805_v24, %v3634_v8 }
  0x78   :  { %v814_v54 = vmul.f32 %v805_v24, %v3670_v23 }
  0x79   :  { %v825_v52 = vrot.slane %v809_v37, 1 }
  0x7d   :  { %638 = vrot.lane.b32.xlu2 %v621_v42, %s3576_s28  ;;  %636 = vrot.lane.b32.xlu1 %v620_v45, %s3576_s28  ;;  %v729_v42 = vrot.slane %v711_v29, 2  ;;  %v730_v45 = vrot.slane %v714_v32, 2  ;;  %v808_v29 = vmul.f32 %v805_v24, %v3644_v10  ;;  %v811_v32 = vmul.f32 %v805_v24, %v3629_v7 }
  0x7e   :  { %634 = vrot.lane.b32.xlu0 %v619_v46, %s3576_s28 }
  0x7f   :  { %v3825_v57 = vpop.permute.xlu2 %285  ;;  %v731_v51 = vsel %vm190_vm1, %v729_v42, %v730_v45  ;;  %v830_v42 = vrot.slane %v808_v29, 1 }
  0x85   :  { %690 = vrot.lane.b32.xlu2 %v679_v4, %s3576_s28  ;;  %688 = vrot.lane.b32.xlu1 %v676_v5, %s3576_s28  ;;  %v739_v4 = vsel %vm190_vm1, %v730_v45, %v738_v58  ;;  %v768_v5 = vstv %s3380_s12  ;;  %v831_v45 = vrot.slane %v811_v32, 1  ;;  %v813_v58 = vmul.f32 %v805_v24, %v3676_v30  ;;  %s4500_s12 = sld [smem:[#allocation2 + $0x283]] }
  0x86   :  { %686 = vrot.lane.b32.xlu0 %v673_v6, %s3576_s28  ;;  %v771_v15 = vmul.f32 %v768_v5, %v3613_v1  ;;  %v770_v18 = vmul.f32 %v768_v5, %v3639_v9  ;;  %v769_v19 = vmul.f32 %v768_v5, %v3618_v2  ;;  %v774_v26 = vmul.f32 %v768_v5, %v3629_v7 }
  0x87   :  { %v3836_v16 = vpop.permute.xlu2 %291  ;;  %v3838_v17 = vpop.permute.xlu1 %226  ;;  %v773_v27 = vmul.f32 %v768_v5, %v3608_v0  ;;  %v145_v32 = vstv %s3366_s15  ;;  %s3391_s15 = sld [smem:[#allocation2 + $0x402]] }
  0x88   :  { %v3840_v20 = vpop.permute.xlu0 %222 }
  0x8d   :  { %696 = vrot.lane.b32.xlu2 %v685_v21, %s3576_s28  ;;  %694 = vrot.lane.b32.xlu1 %v683_v22, %s3576_s28 }
  0x8e   :  { %692 = vrot.lane.b32.xlu0 %v681_v28, %s3576_s28  ;;  %v772_v28 = vmul.f32 %v768_v5, %v3634_v8  ;;  %v812_v5 = vmul.f32 %v805_v24, %v3681_v31 }
  0x8f   :  { %v3854_v38 = vpop.permute.xlu2 %343  ;;  %v3856_v41 = vpop.permute.xlu1 %228 }
  0x90   :  { %v3858_v46 = vpop.permute.xlu0 %224 }
  0x95   :  { %748 = vrot.lane.b32.xlu2 %v737_v47, %s3576_s28  ;;  %746 = vrot.lane.b32.xlu1 %v734_v48, %s3576_s28  ;;  %v827_v47 = vrot.slane %v807_v33, 1  ;;  %v828_v48 = vrot.slane %v810_v34, 1 }
  0x96   :  { %744 = vrot.lane.b32.xlu0 %v731_v51, %s3576_s28  ;;  %v824_v51 = vrot.slane %v806_v36, 1 }
  0x97   :  { %v3869_v55 = vpop.permute.xlu2 %349  ;;  %v3871_v56 = vpop.permute.xlu1 %283 }
  0x98   :  { %v3873_v59 = vpop.permute.xlu0 %281 }
  0x9d   :  { %754 = vrot.lane.b32.xlu2 %v743_v63, %s3576_s28  ;;  %752 = vrot.lane.b32.xlu1 %v741_v3, %s3576_s28  ;;  %v832_v63 = vsel %vm158_vm0, %v830_v42, %v831_v45  ;;  %v829_v3 = vsel %vm158_vm0, %v827_v47, %v828_v48 }
  0x9e   :  { %750 = vrot.lane.b32.xlu0 %v739_v4, %s3576_s28  ;;  %v826_v4 = vsel %vm158_vm0, %v824_v51, %v825_v52 }
  0x9f   :  { %v3881_v6 = vpop.permute.xlu2 %380  ;;  %v3883_v11 = vpop.permute.xlu1 %289 }
  0xa0   :  { %v3885_v14 = vpop.permute.xlu0 %287 }
  0xa5   :  { %785 = vrot.lane.b32.xlu2 %v771_v15, %s3577_s7  ;;  %783 = vrot.lane.b32.xlu1 %v770_v18, %s3577_s7  ;;  %v837_v15 = vrot.slane %v814_v54, 1  ;;  %v835_v18 = vrot.slane %v813_v58, 1  ;;  %v151_v58 = vmul.f32 %v145_v32, %v3676_v30 }
  0xa6   :  { %781 = vrot.lane.b32.xlu0 %v769_v19, %s3577_s7 }
  0xa7   :  { %v3893_v21 = vpop.permute.xlu2 %386  ;;  %v3895_v22 = vpop.permute.xlu1 %341  ;;  %v838_v24 = vsel %vm158_vm0, %v831_v45, %v837_v15  ;;  %v836_v33 = vsel %vm158_vm0, %v828_v48, %v835_v18  ;;  %v149_v45 = vmul.f32 %v145_v32, %v3608_v0  ;;  %v177_v48 = vstv %s3367_s16  ;;  %s3375_s16 = sld [smem:[#allocation2 + $0x81]] }
  0xa8   :  { %v3897_v25 = vpop.permute.xlu0 %339  ;;  %v140_v18 = vstv %s42_s17  ;;  %s3384_s17 = sld [smem:[#allocation2 + $0x82]] }
  0xa9   :  { %v163_v23 = vrot.slane %v149_v45, 1 }
  0xad   :  { %791 = vrot.lane.b32.xlu2 %v774_v26, %s3577_s7  ;;  %789 = vrot.lane.b32.xlu1 %v773_v27, %s3577_s7  ;;  %v833_v27 = vrot.slane %v812_v5, 1 }
  0xae   :  { %787 = vrot.lane.b32.xlu0 %v772_v28, %s3577_s7  ;;  %v863_v28 = vstv %s3382_s14  ;;  %s3398_s14 = sld [smem:[#allocation2 + $0x303]] }
  0xaf   :  { %v3911_v49 = vpop.permute.xlu2 %439  ;;  %v3913_v50 = vpop.permute.xlu1 %347  ;;  %v866_v34 = vmul.f32 %v863_v28, %v3695_v40  ;;  %v3936_v36 = vmul.f32 %v863_v28, %v3629_v7  ;;  %v865_v37 = vmul.f32 %v863_v28, %v3700_v43  ;;  %v3940_v42 = vmul.f32 %v863_v28, %v3608_v0 }
  0xb0   :  { %6638 = vst [vmem:[#allocation24_spill] sm:$0xff] %v3911_v49  ;;  %v3915_v53 = vpop.permute.xlu0 %345  ;;  %v834_v47 = vsel %vm158_vm0, %v825_v52, %v833_v27  ;;  %v864_v51 = vmul.f32 %v863_v28, %v3705_v44  ;;  %v3945_v54 = vmul.f32 %v863_v28, %v3634_v8  ;;  %v181_v27 = vmul.f32 %v177_v48, %v3608_v0 }
  0xb1   :  { %v888_v52 = vrot.slane %v866_v34, 2  ;;  %v885_v5 = vrot.slane %v865_v37, 2  ;;  %v886_v15 = vrot.slane %v3940_v42, 2  ;;  %v146_v34 = vmul.f32 %v145_v32, %v3654_v13 }
  0xb2   :  { %v167_v42 = vrot.slane %v151_v58, 1  ;;  %v180_v49 = vmul.f32 %v177_v48, %v3634_v8  ;;  %v871_v45 = vmul.f32 %v863_v28, %v3727_v61  ;;  %v144_v7 = vmul.f32 %v140_v18, %v3608_v0 }
  0xb3   :  { %v182_v13 = vmul.f32 %v177_v48, %v3732_v62  ;;  %v870_v58 = vmul.f32 %v863_v28, %v3732_v62 }
  0xb4   :  { %v192_v0 = vrot.slane %v180_v49, 2 }
  0xb5   :  { %843 = vrot.lane.b32.xlu2 %v832_v63, %s3577_s7  ;;  %841 = vrot.lane.b32.xlu1 %v829_v3, %s3577_s7  ;;  %v148_v63 = vmul.f32 %v145_v32, %v3634_v8  ;;  %v150_v3 = vmul.f32 %v145_v32, %v3681_v31  ;;  %v882_v31 = vrot.slane %v864_v51, 2  ;;  %v887_v51 = vsel %vm190_vm1, %v885_v5, %v886_v15 }
  0xb6   :  { %839 = vrot.lane.b32.xlu0 %v826_v4, %s3577_s7  ;;  %v889_v4 = vrot.slane %v3936_v36, 2  ;;  %v147_v36 = vmul.f32 %v145_v32, %v3649_v12  ;;  %v178_v12 = vmul.f32 %v177_v48, %v3705_v44  ;;  %v168_v5 = vsel %vm158_vm0, %v163_v23, %v167_v42 }
  0xb7   :  { %v3926_v19 = vpop.permute.xlu2 %445  ;;  %v3928_v26 = vpop.permute.xlu1 %378 }
  0xb8   :  { %6639 = vst [vmem:[#allocation25_spill] sm:$0xff] %v3926_v19  ;;  %v3930_v29 = vpop.permute.xlu0 %376  ;;  %v165_v19 = vrot.slane %v150_v3, 1  ;;  %v162_v3 = vrot.slane %v147_v36, 1  ;;  %v141_v36 = vmul.f32 %v140_v18, %v3618_v2 }
  0xba   :  { %v164_v49 = vsel %vm158_vm0, %v162_v3, %v163_v23  ;;  %v237_v3 = vsel %vm234_vm2, %v3856_v41, %v3803_v35 }
  0xbd   :  { %849 = vrot.lane.b32.xlu2 %v838_v24, %s3577_s7  ;;  %847 = vrot.lane.b32.xlu1 %v836_v33, %s3577_s7  ;;  %v883_v24 = vrot.slane %v3945_v54, 2  ;;  %v183_v33 = vmul.f32 %v177_v48, %v3727_v61  ;;  %v872_v54 = vmul.f32 %v863_v28, %v3722_v60  ;;  %v143_v61 = vmul.f32 %v140_v18, %v3634_v8 }
  0xbe   :  { %845 = vrot.lane.b32.xlu0 %v834_v47, %s3577_s7  ;;  %v160_v47 = vrot.slane %v148_v63, 1  ;;  %v159_v63 = vrot.slane %v146_v34, 1  ;;  %v893_v34 = vrot.slane %v871_v45, 2  ;;  %v176_v45 = vadd.f32 %v168_v5, %v144_v7 }
  0xbf   :  { %v3957_v40 = vpop.permute.xlu2 %497  ;;  %v3959_v30 = vpop.permute.xlu1 %384  ;;  %v884_v32 = vsel %vm190_vm1, %v882_v31, %v883_v24  ;;  %v199_v60 = vrot.slane %v183_v33, 2  ;;  %v895_v28 = vrot.slane %v872_v54, 2 }
  0xc0   :  { %6640 = vst [vmem:[#allocation26_spill] sm:$0xff] %v3957_v40  ;;  %v3965_v37 = vpop.permute.xlu0 %382  ;;  %v890_v40 = vsel %vm190_vm1, %v888_v52, %v889_v4  ;;  %v179_v52 = vmul.f32 %v177_v48, %v3700_v43  ;;  %v166_v31 = vsel %vm158_vm0, %v160_v47, %v165_v19  ;;  %v197_v48 = vrot.slane %v182_v13, 2 }
  0xc1   :  { %6641 = vst [vmem:[#allocation27_spill] sm:$0xff] %v3965_v37  ;;  %v195_v37 = vrot.slane %v181_v27, 2  ;;  %v142_v27 = vmul.f32 %v140_v18, %v3639_v9  ;;  %v191_v19 = vrot.slane %v178_v12, 2  ;;  %v896_v18 = vsel %vm190_vm1, %v889_v4, %v895_v28 }
  0xc2   :  { %v894_v62 = vsel %vm190_vm1, %v886_v15, %v893_v34  ;;  %v175_v44 = vadd.f32 %v166_v31, %v143_v61  ;;  %v198_v23 = vsel %vm190_vm1, %v192_v0, %v197_v48  ;;  %v1015_v61 = vstv %s3984_s18  ;;  %s3385_s18 = sld [smem:[#allocation2 + $0x102]] }
  0xc3   :  { %v200_v13 = vsel %vm190_vm1, %v195_v37, %v199_v60  ;;  %v193_v12 = vsel %vm190_vm1, %v191_v19, %v192_v0  ;;  %v238_v60 = vsel %vm234_vm2, %v3803_v35, %v3811_v39  ;;  %v236_v39 = vsel %vm234_vm2, %v3858_v46, %v3838_v17 }
  0xc4   :  { %v208_v7 = vadd.f32 %v200_v13, %v176_v45  ;;  %v207_v4 = vadd.f32 %v198_v23, %v175_v44  ;;  %v1017_v44 = vmul.f32 %v1015_v61, %v3639_v9  ;;  %v294_v31 = vsel %vm234_vm2, %v3871_v56, %v3825_v57 }
  0xc5   :  { %901 = vrot.lane.b32.xlu2 %v890_v40, %s3577_s7  ;;  %899 = vrot.lane.b32.xlu1 %v887_v51, %s3577_s7  ;;  %v891_v40 = vrot.slane %v870_v58, 2  ;;  %v161_v51 = vsel %vm158_vm0, %v159_v63, %v160_v47  ;;  %v174_v58 = vadd.f32 %v164_v49, %v142_v27  ;;  %v293_v35 = vsel %vm234_vm2, %v3873_v59, %v3871_v56 }
  0xc6   :  { %897 = vrot.lane.b32.xlu0 %v884_v32, %s3577_s7  ;;  %v194_v32 = vrot.slane %v179_v52, 2  ;;  %v173_v43 = vadd.f32 %v161_v51, %v141_v36  ;;  %v246_v5 = vadd.f32 %v238_v60, %v208_v7  ;;  %v1016_v17 = vmul.f32 %v1015_v61, %v3618_v2  ;;  %v6642_v51 = vld [vmem:[#allocation12_spill] sm:$0xff] }
  0xc7   :  { %v3988_v33 = vpop.permute.xlu2 %503  ;;  %v3990_v42 = vpop.permute.xlu1 %437  ;;  %v892_v47 = vsel %vm190_vm1, %v883_v24, %v891_v40  ;;  %v245_v41 = vadd.f32 %v237_v3, %v207_v4  ;;  %v295_v9 = vsel %vm234_vm2, %v3885_v14, %v3883_v11  ;;  %v352_v57 = vsel %vm234_vm2, %v3895_v22, %v3854_v38  ;;  %v6647_v60 = vld [vmem:[#allocation24_spill] sm:$0xff] }
  0xc8   :  { %v3994_v54 = vpop.permute.xlu0 %435  ;;  %v196_v63 = vsel %vm190_vm1, %v194_v32, %v195_v37  ;;  %v205_v15 = vadd.f32 %v193_v12, %v173_v43  ;;  %v1018_v43 = vmul.f32 %v1015_v61, %v3613_v1  ;;  %v351_v56 = vsel %vm234_vm2, %v3897_v25, %v3895_v22  ;;  %v6643_v32 = vld [vmem:[#allocation11_spill] sm:$0xff] }
  0xc9   :  { %v206_v24 = vadd.f32 %v196_v63, %v174_v58  ;;  %v303_v14 = vadd.f32 %v295_v9, %v245_v41  ;;  %v353_v38 = vsel %vm234_vm2, %v3915_v53, %v3913_v50  ;;  %v390_v34 = vsel %vm388_vm3, %v3928_v26, %v3881_v6  ;;  %v6646_v58 = vld [vmem:[#allocation14_spill] sm:$0xff] }
  0xca   :  { %v389_v27 = vsel %vm388_vm3, %v3930_v29, %v3928_v26  ;;  %v1021_v19 = vmul.f32 %v1015_v61, %v6642_v51  ;;  %v1020_v45 = vmul.f32 %v1015_v61, %v6643_v32  ;;  %v1019_v13 = vmul.f32 %v1015_v61, %v3634_v8  ;;  %v6644_v26 = vld [vmem:[#allocation27_spill] sm:$0xff]  ;;  %v6648_v61 = vld [vmem:[#allocation25_spill] sm:$0xff] }
  0xcb   :  { %v244_v1 = vadd.f32 %v236_v39, %v206_v24  ;;  %v361_v6 = vadd.f32 %v353_v38, %v303_v14  ;;  %v391_v29 = vsel %vm388_vm3, %v6644_v26, %v3959_v30 }
  0xcd   :  { %907 = vrot.lane.b32.xlu2 %v896_v18, %s3577_s7  ;;  %905 = vrot.lane.b32.xlu1 %v894_v62, %s3577_s7  ;;  %v235_v62 = vsel %vm234_vm2, %v3840_v20, %v3858_v46  ;;  %v296_v20 = vsel %vm234_vm2, %v3883_v11, %v3836_v16  ;;  %v354_v16 = vsel %vm234_vm2, %v3913_v50, %v3869_v55  ;;  %v4050_v11 = vstv %s4005_s19  ;;  %s3383_s19 = sld [smem:[#allocation2 + $0x2]] }
  0xce   :  { %903 = vrot.lane.b32.xlu0 %v892_v47, %s3577_s7  ;;  %v243_v46 = vadd.f32 %v235_v62, %v205_v15  ;;  %v302_v2 = vadd.f32 %v294_v31, %v244_v1  ;;  %v304_v28 = vadd.f32 %v296_v20, %v246_v5  ;;  %v392_v50 = vsel %vm388_vm3, %v3959_v30, %v3893_v21  ;;  %v6645_v21 = vld [vmem:[#allocation13_spill] sm:$0xff] }
  0xcf   :  { %v4012_v0 = vpop.permute.xlu2 %632  ;;  %v444_v37 = vpop.permute.xlu1 %443  ;;  %v1055_v40 = vmul.f32 %v4050_v11, %v3644_v10  ;;  %v4071_v49 = vmul.f32 %v4050_v11, %v6642_v51  ;;  %v1054_v18 = vmul.f32 %v4050_v11, %v6645_v21  ;;  %v4083_v10 = vmul.f32 %v4050_v11, %v6643_v32  ;;  %v6653_v21 = vld [vmem:[#allocation18_spill] sm:$0xff] }
  0xd0   :  { %v442_v52 = vpop.permute.xlu0 %441  ;;  %v301_v59 = vadd.f32 %v293_v35, %v243_v46  ;;  %v360_v22 = vadd.f32 %v352_v57, %v302_v2  ;;  %v362_v55 = vadd.f32 %v354_v16, %v304_v28  ;;  %v1053_v47 = vmul.f32 %v4050_v11, %v6646_v58  ;;  %v6650_v2 = vld [vmem:[#allocation15_spill] sm:$0xff] }
  0xd1   :  { %v4089_v7 = vmul.f32 %v4050_v11, %v3634_v8  ;;  %v448_v30 = vsel %vm388_vm3, %v3990_v42, %v6647_v60  ;;  %v450_v4 = vsel %vm388_vm3, %v444_v37, %v6648_v61  ;;  %v1077_v15 = vrot.slane %v1055_v40, 1  ;;  %v6649_v8 = vld [vmem:[#allocation26_spill] sm:$0xff] }
  0xd2   :  { %v359_v25 = vadd.f32 %v351_v56, %v301_v59  ;;  %v398_v23 = vadd.f32 %v390_v34, %v360_v22  ;;  %v400_v63 = vadd.f32 %v392_v50, %v362_v55  ;;  %v1078_v24 = vrot.slane %v4071_v49, 1  ;;  %v6651_v22 = vld [vmem:[#allocation16_spill] sm:$0xff]  ;;  %v6652_v34 = vld [vmem:[#allocation17_spill] sm:$0xff] }
  0xd3   :  { %v399_v3 = vadd.f32 %v391_v29, %v361_v6  ;;  %v447_v62 = vsel %vm388_vm3, %v3994_v54, %v3990_v42  ;;  %v449_v39 = vsel %vm388_vm3, %v442_v52, %v444_v37  ;;  %v1071_v31 = vrot.slane %v1053_v47, 1 }
  0xd4   :  { %v397_v12 = vadd.f32 %v389_v27, %v359_v25  ;;  %v456_v35 = vadd.f32 %v448_v30, %v398_v23  ;;  %v458_v20 = vadd.f32 %v450_v4, %v400_v63  ;;  %v1072_v52 = vrot.slane %v4089_v7, 1  ;;  %v4150_v7 = vld [vmem:[%s6534_s0 + $0x20] sm:$0xff]  ;;  %v6657_v4 = vld [vmem:[#allocation20_spill] sm:$0xff] }
  0xd5   :  { %1032 = vrot.lane.b32.xlu2 %v1018_v43, %s3576_s28  ;;  %1030 = vrot.lane.b32.xlu1 %v1017_v44, %s3576_s28  ;;  %v1074_v43 = vrot.slane %v1054_v18, 1  ;;  %v1075_v44 = vrot.slane %v4083_v10, 1  ;;  %v457_v41 = vadd.f32 %v449_v39, %v399_v3  ;;  %v1079_v9 = vsel %vm158_vm0, %v1077_v15, %v1078_v24  ;;  %v4142_v10 = vld [vmem:[%s6534_s0 + $0x28] sm:$0xff]  ;;  %6656 = vst [vmem:[#allocation11_spill] sm:$0xff] %v4150_v7 }
  0xd6   :  { %1028 = vrot.lane.b32.xlu0 %v1016_v17, %s3576_s28  ;;  %v455_v17 = vadd.f32 %v447_v62, %v397_v12  ;;  %v1061_v59 = vmul.f32 %v4050_v11, %v6650_v2  ;;  %v1060_v25 = vmul.f32 %v4050_v11, %v6651_v22  ;;  %v1110_v49 = vstv %s4107_s20  ;;  %6654 = vst [vmem:[#allocation12_spill] sm:$0xff] %v4142_v10  ;;  %v6655_v12 = vld [vmem:[#allocation19_spill] sm:$0xff]  ;;  %v6658_v2 = vld [vmem:[#allocation21_spill] sm:$0xff]  ;;  %s3404_s20 = sld [smem:[#allocation2 + $0x184]] }
  0xd7   :  { %v4059_v48 = vpop.permute.xlu2 %638  ;;  %v496_v36 = vpop.permute.xlu1 %495  ;;  %v1076_v38 = vsel %vm158_vm0, %v1074_v43, %v1075_v44  ;;  %v1113_v18 = vmul.f32 %v1110_v49, %v6653_v21  ;;  %v1116_v58 = vmul.f32 %v4142_v10, %v1110_v49  ;;  %v1112_v63 = vmul.f32 %v1110_v49, %v6655_v12  ;;  %v4214_v12 = vld [vmem:[%s6534_s0 + $0x8] sm:$0xff] }
  0xd8   :  { %v494_v53 = vpop.permute.xlu0 %493  ;;  %v506_v5 = vsel %vm388_vm3, %v496_v36, %v6649_v8  ;;  %v1082_v51 = vrot.slane %v1060_v25, 1  ;;  %v1115_v60 = vmul.f32 %v4150_v7, %v1110_v49  ;;  %v1111_v15 = vmul.f32 %v1110_v49, %v6657_v4  ;;  %v6660_v25 = vld [vmem:[#allocation23_spill] sm:$0xff] }
  0xd9   :  { %v505_v42 = vsel %vm388_vm3, %v494_v53, %v496_v36  ;;  %v514_v57 = vadd.f32 %v506_v5, %v456_v35  ;;  %v1059_v36 = vmul.f32 %v4050_v11, %v6652_v34  ;;  %v1084_v53 = vrot.slane %v1061_v59, 1 }
  0xda   :  { %v513_v28 = vadd.f32 %v505_v42, %v455_v17  ;;  %v1083_v23 = vsel %vm158_vm0, %v1075_v44, %v1082_v51  ;;  %v1135_v8 = vrot.slane %v1113_v18, 2  ;;  %v1136_v5 = vrot.slane %v1116_v58, 2 }
  0xdb   :  { %v1080_v11 = vrot.slane %v1059_v36, 1  ;;  %v1085_v29 = vsel %vm158_vm0, %v1078_v24, %v1084_v53  ;;  %v4158_v24 = vld [vmem:[%s6534_s0 + $0x18] sm:$0xff]  ;;  %v531_v43 = vstv %s4127_s21  ;;  %v1133_v35 = vrot.slane %v1115_v60, 2  ;;  %v4220_v60 = vld [vmem:[%s6534_s0] sm:$0xff]  ;;  %s4695_s21 = sld [smem:[#allocation2 + $0x204]] }
  0xdc   :  { %v1114_v3 = vmul.f32 %v4158_v24, %v1110_v49  ;;  %v1119_v59 = vmul.f32 %v1110_v49, %v6658_v2 }
  0xdd   :  { %1038 = vrot.lane.b32.xlu2 %v1021_v19, %s3576_s28  ;;  %1036 = vrot.lane.b32.xlu1 %v1020_v45, %s3576_s28  ;;  %v1081_v61 = vsel %vm158_vm0, %v1072_v52, %v1080_v11 }
  0xde   :  { %1034 = vrot.lane.b32.xlu0 %v1019_v13, %s3576_s28  ;;  %v1130_v17 = vrot.slane %v1114_v3, 2 }
  0xdf   :  { %v4110_v54 = vpop.permute.xlu2 %690  ;;  %v502_v37 = vpop.permute.xlu1 %501 }
  0xe0   :  { %v508_v46 = vsel %vm388_vm3, %v502_v37, %v3988_v33  ;;  %v500_v1 = vpop.permute.xlu0 %499  ;;  %v1073_v33 = vsel %vm158_vm0, %v1071_v31, %v1072_v52  ;;  %v1132_v31 = vrot.slane %v1112_v63, 2  ;;  %v1129_v52 = vrot.slane %v1111_v15, 2 }
  0xe1   :  { %v516_v56 = vadd.f32 %v508_v46, %v458_v20  ;;  %v507_v16 = vsel %vm388_vm3, %v500_v1, %v502_v37  ;;  %v542_v1 = vlaneseq  ;;  %v1205_v15 = vstv %s3390_s27  ;;  %s4835_s27 = sld [smem:[#allocation5 + $0x2]] }
  0xe2   :  { %v515_v14 = vadd.f32 %v507_v16, %v457_v41  ;;  %v1134_v16 = vsel %vm190_vm1, %v1132_v31, %v1133_v35  ;;  %v1131_v22 = vsel %vm190_vm1, %v1129_v52, %v1130_v17  ;;  %v4245_v31 = vld [vmem:[%s6534_s0 + $0x8] sm:$0xfe]  ;;  %v4252_v52 = vld [vmem:[%s6534_s0] sm:$0xfe] }
  0xe3   :  { %v524_v55 = vmax.f32 %v514_v57, %v516_v56  ;;  %v1137_v57 = vsel %vm190_vm1, %v1135_v8, %v1136_v5  ;;  %vm4177_vm5 = vcmp.lt.s32.totalorder %v542_v1, 256  ;;  %6664 = vst [vmem:[#allocation13_spill] sm:$0xff] %v4245_v31 }
  0xe4   :  { %v517_v27 = vmax.f32 %v513_v28, %v515_v14  ;;  %v6659_v28 = vld [vmem:[#allocation22_spill] sm:$0xff]  ;;  %6665 = vst [vmem:[#allocation14_spill] sm:$0xff] %v4252_v52 }
  0xe5   :  { %v525_v50 = vrot.slane %v524_v55, 4  ;;  %1090 = vrot.lane.b32.xlu2 %v1079_v9, %s3576_s28  ;;  %1088 = vrot.lane.b32.xlu1 %v1076_v38, %s3576_s28  ;;  %v1118_v14 = vmul.f32 %v1110_v49, %v6659_v28 }
  0xe6   :  { %v518_v40 = vrot.slane %v517_v27, 4  ;;  %1086 = vrot.lane.b32.xlu0 %v1073_v33, %s3576_s28  ;;  %v6661_v33 = vmov 0 }
  0xe7   :  { %v526_v6 = vmax.f32 %v524_v55, %v525_v50  ;;  %v4131_v19 = vpop.permute.xlu2 %696  ;;  %v4133_v32 = vpop.permute.xlu1 %630  ;;  %v1117_v55 = vmul.f32 %v1110_v49, %v6660_v25  ;;  %v6662_v33 = vsel %vm4177_vm5, 4294967295, %v6661_v33  ;;  %v1140_v50 = vrot.slane %v1118_v14, 2  ;;  %v4274_v25 = vld [vmem:[%s6534_s0 + $0x38] sm:$0x1] }
  0xe8   :  { %v519_v45 = vmax.f32 %v517_v27, %v518_v40  ;;  %v4135_v13 = vpop.permute.xlu0 %628  ;;  %6663 = vst [vmem:[#allocation27_spill] sm:$0xff] %v6662_v33  ;;  %v1142_v27 = vrot.slane %v1119_v59, 2 }
  0xe9   :  { %v527_v26 = vrot.slane %v526_v6, 2  ;;  %v1138_v49 = vrot.slane %v1117_v55, 2  ;;  %6668 = vst [vmem:[#allocation26_spill] sm:$0xff] %v4274_v25  ;;  %v1213_v55 = vmul.f32 %v4274_v25, %v1205_v15 }
  0xea   :  { %v520_v47 = vrot.slane %v519_v45, 2  ;;  %v1143_v11 = vsel %vm190_vm1, %v1136_v5, %v1142_v27  ;;  %v4238_v5 = vld [vmem:[%s6534_s0 + $0x10] sm:$0xfe] }
  0xeb   :  { %v528_v30 = vmax.f32 %v526_v6, %v527_v26  ;;  %v1139_v26 = vsel %vm190_vm1, %v1130_v17, %v1138_v49  ;;  %v1206_v17 = vmul.f32 %v4252_v52, %v1205_v15 }
  0xec   :  { %v521_v62 = vmax.f32 %v519_v45, %v520_v47  ;;  %v1141_v45 = vsel %vm190_vm1, %v1133_v35, %v1140_v50  ;;  %v4208_v47 = vld [vmem:[%s6534_s0 + $0x10] sm:$0xff]  ;;  %v1207_v35 = vmul.f32 %v4245_v31, %v1205_v15 }
  0xed   :  { %v529_v39 = vrot.slane %v528_v30, 1  ;;  %1096 = vrot.lane.b32.xlu2 %v1085_v29, %s3576_s28  ;;  %1094 = vrot.lane.b32.xlu1 %v1083_v23, %s3576_s28  ;;  %v1168_v29 = vstv %s3389_s26  ;;  %v1224_v59 = vrot.slane %v1206_v17, 1  ;;  %v4283_v50 = vld [vmem:[%s6534_s0 + $0x30] sm:$0x1]  ;;  %s4815_s26 = sld [smem:[#allocation2 + $0x284]] }
  0xee   :  { %v522_v44 = vrot.slane %v521_v62, 1  ;;  %1092 = vrot.lane.b32.xlu0 %v1081_v61, %s3576_s28  ;;  %v1171_v23 = vmul.f32 %v4208_v47, %v1168_v29  ;;  %v1170_v63 = vmul.f32 %v4214_v12, %v1168_v29  ;;  %v1172_v8 = vmul.f32 %v4158_v24, %v1168_v29  ;;  %6669 = vst [vmem:[#allocation15_spill] sm:$0xff] %v4283_v50 }
  0xef   :  { %v530_v20 = vmax.f32 %v528_v30, %v529_v39  ;;  %v4165_v42 = vpop.permute.xlu2 %748  ;;  %v4167_v37 = vpop.permute.xlu1 %636  ;;  %v1169_v30 = vmul.f32 %v4220_v60, %v1168_v29  ;;  %v1173_v39 = vmul.f32 %v4150_v7, %v1168_v29 }
  0xf0   :  { %v523_v41 = vmax.f32 %v521_v62, %v522_v44  ;;  %v4169_v46 = vpop.permute.xlu0 %634  ;;  %v1174_v62 = vmul.f32 %v4142_v10, %v1168_v29  ;;  %v1211_v44 = vmul.f32 %v4142_v10, %v1205_v15 }
  0xf1   :  { %v533_v9 = vadd.f32 %v531_v43, %v530_v20  ;;  %v1210_v20 = vmul.f32 %v4150_v7, %v1205_v15 }
  0xf2   :  { %v532_v56 = vadd.f32 %v531_v43, %v523_v41  ;;  %v1208_v43 = vmul.f32 %v4238_v5, %v1205_v15  ;;  %v1209_v41 = vmul.f32 %v4158_v24, %v1205_v15 }
  0xf3   :  { %v535_v38 = vmax.f32 %v533_v9, 0.0  ;;  %v1231_v9 = vrot.slane %v1211_v44, 1  ;;  %v4311_v44 = vld [vmem:[%s6534_s0 + $0x8] sm:$0xfc] }
  0xf4   :  { %v534_v34 = vmax.f32 %v532_v56, 0.0  ;;  %v1230_v1 = vrot.slane %v1208_v43, 1  ;;  %v1228_v56 = vrot.slane %v1210_v20, 1  ;;  %v1225_v28 = vrot.slane %v1209_v41, 1  ;;  %6672 = vst [vmem:[#allocation18_spill] sm:$0xff] %v4311_v44 }
  0xf5   :  { %v538_v36 = vrot.slane %v535_v38, 7  ;;  %1148 = vrot.lane.b32.xlu2 %v1137_v57, %s3576_s28  ;;  %1146 = vrot.lane.b32.xlu1 %v1134_v16, %s3576_s28  ;;  %v1227_v57 = vrot.slane %v1207_v35, 1  ;;  %v4268_v38 = vld [vmem:[%s6534_s0 + $0x40] sm:$0x1]  ;;  %v4321_v41 = vld [vmem:[%s6534_s0] sm:$0xfc] }
  0xf6   :  { %1144 = vrot.lane.b32.xlu0 %v1131_v22, %s3576_s28  ;;  %6667 = vst [vmem:[#allocation25_spill] sm:$0xff] %v4268_v38  ;;  %v1214_v22 = vmul.f32 %v4268_v38, %v1205_v15  ;;  %v1226_v27 = vsel %vm158_vm0, %v1224_v59, %v1225_v28 }
  0xf7   :  { %v540_v53 = vsel %vm539_vm4, %v534_v34, %v538_v36  ;;  %v4185_v40 = vpop.permute.xlu2 %754  ;;  %v4187_v51 = vpop.permute.xlu1 %688  ;;  %v1232_v34 = vsel %vm158_vm0, %v1230_v1, %v1231_v9  ;;  %v1229_v36 = vsel %vm158_vm0, %v1227_v57, %v1228_v56  ;;  %6673 = vst [vmem:[#allocation19_spill] sm:$0xff] %v4321_v41 }
  0xf8   :  { %546 = vst.msk [vmem:[#allocation7] ss:$8 sm:$0x3] %vm4177_vm5, %v540_v53  ;;  %v4191_v6 = vpop.permute.xlu0 %686  ;;  %v1212_v53 = vmul.f32 %v4283_v50, %v1205_v15  ;;  %v1237_v49 = vrot.slane %v1214_v22, 1 }
  0xfa   :  { %v1233_v29 = vrot.slane %v1212_v53, 1  ;;  %v1238_v15 = vsel %vm158_vm0, %v1231_v9, %v1237_v49 }
  0xfc   :  { %v1234_v17 = vsel %vm158_vm0, %v1225_v28, %v1233_v29 }
  0xfd   :  { %1154 = vrot.lane.b32.xlu2 %v1143_v11, %s3576_s28  ;;  %1152 = vrot.lane.b32.xlu1 %v1141_v45, %s3576_s28  ;;  %v1235_v11 = vrot.slane %v1213_v55, 1 }
  0xfe   :  { %1150 = vrot.lane.b32.xlu0 %v1139_v26, %s3576_s28 }
  0xff   :  { %v4199_v21 = vpop.permute.xlu2 %785  ;;  %v4201_v18 = vpop.permute.xlu1 %694 }
 0x100   :  { %v4203_v58 = vpop.permute.xlu0 %692 }
 0x105   :  { %1185 = vrot.lane.b32.xlu2 %v1171_v23, %s3577_s7  ;;  %1183 = vrot.lane.b32.xlu1 %v1170_v63, %s3577_s7  ;;  %v1263_v23 = vstv %s3391_s15  ;;  %s3399_s15 = sld [smem:[#allocation2 + $0x383]] }
 0x106   :  { %1181 = vrot.lane.b32.xlu0 %v1169_v30, %s3577_s7  ;;  %v553_v30 = vstv %s3375_s16  ;;  %v4306_v43 = vmul.f32 %v4142_v10, %v1263_v23  ;;  %v1265_v35 = vmul.f32 %v4311_v44, %v1263_v23  ;;  %v4315_v20 = vmul.f32 %v4150_v7, %v1263_v23  ;;  %s3400_s16 = sld [smem:[#allocation2 + $0x403]] }
 0x107   :  { %v4226_v61 = vpop.permute.xlu2 %791  ;;  %v4228_v4 = vpop.permute.xlu1 %746  ;;  %v1264_v1 = vmul.f32 %v4321_v41, %v1263_v23  ;;  %v4325_v9 = vmul.f32 %v4158_v24, %v1263_v23  ;;  %v555_v57 = vmul.f32 %v4245_v31, %v553_v30  ;;  %v554_v59 = vmul.f32 %v4252_v52, %v553_v30 }
 0x108   :  { %v4230_v3 = vpop.permute.xlu0 %744  ;;  %v1289_v22 = vrot.slane %v4306_v43, 2  ;;  %v1285_v55 = vrot.slane %v1265_v35, 2 }
 0x109   :  { %v1283_v29 = vrot.slane %v4325_v9, 2  ;;  %v566_v33 = vrot.slane %v554_v59, 1  ;;  %v4353_v9 = vld [vmem:[%s6534_s0 + $0x40] sm:$0x3] }
 0x10a   :  { %6676 = vst [vmem:[#allocation22_spill] sm:$0xff] %v4353_v9 }
 0x10d   :  { %1191 = vrot.lane.b32.xlu2 %v1174_v62, %s3577_s7  ;;  %1189 = vrot.lane.b32.xlu1 %v1173_v39, %s3577_s7  ;;  %v1236_v62 = vsel %vm158_vm0, %v1228_v56, %v1235_v11  ;;  %v4302_v39 = vld [vmem:[%s6534_s0 + $0x10] sm:$0xfc]  ;;  %v557_v56 = vmul.f32 %v4150_v7, %v553_v30  ;;  %v1282_v11 = vrot.slane %v1264_v1, 2 }
 0x10e   :  { %1187 = vrot.lane.b32.xlu0 %v1172_v8, %s3577_s7  ;;  %6671 = vst [vmem:[#allocation17_spill] sm:$0xff] %v4302_v39  ;;  %v1266_v8 = vmul.f32 %v4302_v39, %v1263_v23  ;;  %v558_v39 = vmul.f32 %v4283_v50, %v553_v30 }
 0x10f   :  { %v4259_v16 = vpop.permute.xlu2 %843  ;;  %v4261_v2 = vpop.permute.xlu1 %752  ;;  %v570_v35 = vrot.slane %v557_v56, 1  ;;  %v4359_v56 = vld [vmem:[%s6534_s0 + $0x38] sm:$0x3] }
 0x110   :  { %6666 = vst [vmem:[#allocation24_spill] sm:$0xff] %v4259_v16  ;;  %v4263_v14 = vpop.permute.xlu0 %750  ;;  %v1288_v28 = vrot.slane %v1266_v8, 2  ;;  %v559_v8 = vmul.f32 %v4274_v25, %v553_v30  ;;  %v1271_v59 = vmul.f32 %v4359_v56, %v1263_v23 }
 0x111   :  { %6677 = vst [vmem:[#allocation23_spill] sm:$0xff] %v4359_v56 }
 0x112   :  { %v1290_v38 = vsel %vm190_vm1, %v1288_v28, %v1289_v22  ;;  %v1284_v28 = vsel %vm190_vm1, %v1282_v11, %v1283_v29 }
 0x115   :  { %1243 = vrot.lane.b32.xlu2 %v1232_v34, %s3577_s7  ;;  %1241 = vrot.lane.b32.xlu1 %v1229_v36, %s3577_s7  ;;  %v1286_v34 = vrot.slane %v4315_v20, 2  ;;  %v584_v36 = vstv %s3376_s23  ;;  %s3392_s23 = sld [smem:[#allocation2 + $0x3]] }
 0x116   :  { %1239 = vrot.lane.b32.xlu0 %v1226_v27, %s3577_s7  ;;  %v556_v27 = vmul.f32 %v4158_v24, %v553_v30  ;;  %v588_v20 = vmul.f32 %v4150_v7, %v584_v36  ;;  %v585_v30 = vmul.f32 %v4321_v41, %v584_v36  ;;  %v587_v25 = vmul.f32 %v4158_v24, %v584_v36 }
 0x117   :  { %v4289_v45 = vpop.permute.xlu2 %849  ;;  %v4291_v26 = vpop.permute.xlu1 %783  ;;  %v1287_v1 = vsel %vm190_vm1, %v1285_v55, %v1286_v34  ;;  %v4367_v55 = vld [vmem:[%s6534_s0 + $0x30] sm:$0x3]  ;;  %v572_v41 = vrot.slane %v558_v39, 1 }
 0x118   :  { %6670 = vst [vmem:[#allocation16_spill] sm:$0xff] %v4289_v45  ;;  %v4295_v63 = vpop.permute.xlu0 %781  ;;  %v1270_v50 = vmul.f32 %v4367_v55, %v1263_v23  ;;  %v590_v45 = vmul.f32 %v4359_v56, %v584_v36  ;;  %v589_v11 = vmul.f32 %v4367_v55, %v584_v36 }
 0x119   :  { %6678 = vst [vmem:[#allocation28_spill] sm:$0xff] %v4367_v55  ;;  %v598_v55 = vrot.slane %v587_v25, 2 }
 0x11d   :  { %1249 = vrot.lane.b32.xlu2 %v1238_v15, %s3577_s7  ;;  %1247 = vrot.lane.b32.xlu1 %v1236_v62, %s3577_s7  ;;  %v548_v15 = vstv %s4293_s1  ;;  %v569_v62 = vrot.slane %v555_v57, 1  ;;  %v1272_v57 = vmul.f32 %v4353_v9, %v1263_v23  ;;  %v601_v23 = vrot.slane %v588_v20, 2 }
 0x11e   :  { %1245 = vrot.lane.b32.xlu0 %v1234_v17, %s3577_s7  ;;  %v586_v17 = vmul.f32 %v4311_v44, %v584_v36  ;;  %v567_v44 = vrot.slane %v556_v27, 1  ;;  %v550_v9 = vmul.f32 %v4214_v12, %v548_v15  ;;  %v549_v27 = vmul.f32 %v4220_v60, %v548_v15 }
 0x11f   :  { %v4336_v53 = vpop.permute.xlu2 %901  ;;  %v4338_v49 = vpop.permute.xlu1 %789  ;;  %v571_v52 = vsel %vm158_vm0, %v569_v62, %v570_v35  ;;  %v1295_v31 = vrot.slane %v1272_v57, 2  ;;  %v552_v56 = vmul.f32 %v4150_v7, %v548_v15  ;;  %v605_v62 = vrot.slane %v590_v45, 2 }
 0x120   :  { %6674 = vst [vmem:[#allocation20_spill] sm:$0xff] %v4336_v53  ;;  %v4344_v43 = vpop.permute.xlu0 %787  ;;  %v574_v53 = vrot.slane %v559_v8, 1  ;;  %v600_v16 = vrot.slane %v586_v17, 2  ;;  %v568_v8 = vsel %vm158_vm0, %v566_v33, %v567_v44  ;;  %v597_v17 = vrot.slane %v585_v30, 2 }
 0x121   :  { %6675 = vst [vmem:[#allocation21_spill] sm:$0xff] %v4344_v43  ;;  %v1293_v43 = vrot.slane %v1271_v59, 2  ;;  %v551_v20 = vmul.f32 %v4158_v24, %v548_v15  ;;  %v573_v57 = vsel %vm158_vm0, %v567_v44, %v572_v41  ;;  %v603_v59 = vrot.slane %v589_v11, 2 }
 0x122   :  { %v1296_v33 = vsel %vm190_vm1, %v1289_v22, %v1295_v31  ;;  %v581_v7 = vadd.f32 %v571_v52, %v550_v9  ;;  %v602_v25 = vsel %vm190_vm1, %v600_v16, %v601_v23  ;;  %v599_v45 = vsel %vm190_vm1, %v597_v17, %v598_v55 }
 0x123   :  { %v1294_v30 = vsel %vm190_vm1, %v1286_v34, %v1293_v43  ;;  %v582_v15 = vadd.f32 %v573_v57, %v551_v20  ;;  %v1415_v31 = vstv %s3395_s10  ;;  %v641_v34 = vsel %vm234_vm2, %v4133_v32, %v4012_v0  ;;  %v6680_v57 = vld [vmem:[#allocation12_spill] sm:$0xff] }
 0x124   :  { %v612_v52 = vadd.f32 %v602_v25, %v581_v7  ;;  %v643_v43 = vsel %vm234_vm2, %v4167_v37, %v4059_v48  ;;  %v1418_v7 = vmul.f32 %v4208_v47, %v1415_v31  ;;  %v699_v0 = vsel %vm234_vm2, %v4187_v51, %v4110_v54 }
 0x125   :  { %1301 = vrot.lane.b32.xlu2 %v1290_v38, %s3577_s7  ;;  %1299 = vrot.lane.b32.xlu1 %v1287_v1, %s3577_s7  ;;  %v1291_v38 = vrot.slane %v1270_v50, 2  ;;  %v575_v1 = vsel %vm158_vm0, %v570_v35, %v574_v53  ;;  %v606_v53 = vsel %vm190_vm1, %v601_v23, %v605_v62  ;;  %v604_v35 = vsel %vm190_vm1, %v598_v55, %v603_v59 }
 0x126   :  { %1297 = vrot.lane.b32.xlu0 %v1284_v28, %s3577_s7  ;;  %v583_v10 = vadd.f32 %v575_v1, %v552_v56  ;;  %v613_v9 = vadd.f32 %v604_v35, %v582_v15  ;;  %v1417_v55 = vmul.f32 %v4214_v12, %v1415_v31  ;;  %v701_v48 = vsel %vm234_vm2, %v4201_v18, %v4131_v19  ;;  %v6684_v15 = vld [vmem:[#allocation14_spill] sm:$0xff] }
 0x127   :  { %v4381_v39 = vpop.permute.xlu2 %907  ;;  %v4383_v36 = vpop.permute.xlu1 %841  ;;  %v1292_v50 = vsel %vm190_vm1, %v1283_v29, %v1291_v38  ;;  %v640_v29 = vsel %vm234_vm2, %v4135_v13, %v4133_v32  ;;  %v698_v32 = vsel %vm234_vm2, %v4191_v6, %v4187_v51  ;;  %v1416_v13 = vmul.f32 %v4220_v60, %v1415_v31 }
 0x128   :  { %6679 = vst [vmem:[#allocation29_spill] sm:$0xff] %v4381_v39  ;;  %v4387_v28 = vpop.permute.xlu0 %839  ;;  %v580_v39 = vadd.f32 %v568_v8, %v549_v27  ;;  %v614_v41 = vadd.f32 %v606_v53, %v583_v10  ;;  %v642_v10 = vsel %vm234_vm2, %v4169_v46, %v4167_v37  ;;  %v649_v37 = vadd.f32 %v641_v34, %v612_v52  ;;  %v6685_v34 = vld [vmem:[#allocation24_spill] sm:$0xff] }
 0x129   :  { %v700_v11 = vsel %vm234_vm2, %v4203_v58, %v4201_v18  ;;  %v650_v23 = vadd.f32 %v642_v10, %v613_v9  ;;  %v757_v54 = vsel %vm234_vm2, %v4228_v4, %v4165_v42  ;;  %v756_v51 = vsel %vm234_vm2, %v4230_v3, %v4228_v4 }
 0x12a   :  { %v611_v44 = vadd.f32 %v599_v45, %v580_v39  ;;  %v651_v27 = vadd.f32 %v643_v43, %v614_v41  ;;  %v759_v19 = vsel %vm234_vm2, %v4261_v2, %v4185_v40  ;;  %v707_v6 = vadd.f32 %v699_v0, %v649_v37 }
 0x12b   :  { %v4443_v18 = vstv %s4399_s11  ;;  %v708_v58 = vadd.f32 %v700_v11, %v650_v23  ;;  %v758_v42 = vsel %vm234_vm2, %v4263_v14, %v4261_v2  ;;  %v794_v40 = vsel %vm388_vm3, %v4291_v26, %v4199_v21 }
 0x12c   :  { %v648_v46 = vadd.f32 %v640_v29, %v611_v44  ;;  %v709_v17 = vadd.f32 %v701_v48, %v651_v27  ;;  %v765_v4 = vadd.f32 %v757_v54, %v707_v6  ;;  %v793_v62 = vsel %vm388_vm3, %v4295_v63, %v4291_v26  ;;  %v6682_v26 = vld [vmem:[#allocation21_spill] sm:$0xff]  ;;  %v6686_v29 = vld [vmem:[#allocation16_spill] sm:$0xff] }
 0x12d   :  { %1307 = vrot.lane.b32.xlu2 %v1296_v33, %s3577_s7  ;;  %1305 = vrot.lane.b32.xlu1 %v1294_v30, %s3577_s7  ;;  %v796_v2 = vsel %vm388_vm3, %v4338_v49, %v4226_v61  ;;  %v1455_v20 = vmul.f32 %v4238_v5, %v4443_v18  ;;  %v4464_v59 = vmul.f32 %v6680_v57, %v4443_v18  ;;  %v6681_v30 = vld [vmem:[#allocation11_spill] sm:$0xff]  ;;  %v6683_v61 = vld [vmem:[#allocation13_spill] sm:$0xff] }
 0x12e   :  { %1303 = vrot.lane.b32.xlu0 %v1292_v50, %s3577_s7  ;;  %v706_v8 = vadd.f32 %v698_v32, %v648_v46  ;;  %v767_v39 = vadd.f32 %v759_v19, %v709_v17  ;;  %v766_v21 = vadd.f32 %v758_v42, %v708_v58  ;;  %v1421_v33 = vmul.f32 %v6680_v57, %v1415_v31  ;;  %v6687_v32 = vld [vmem:[#allocation20_spill] sm:$0xff] }
 0x12f   :  { %v4402_v16 = vpop.permute.xlu2 %1032  ;;  %v848_v22 = vpop.permute.xlu1 %847  ;;  %v1420_v50 = vmul.f32 %v6681_v30, %v1415_v31  ;;  %v1419_v25 = vmul.f32 %v4158_v24, %v1415_v31  ;;  %v795_v63 = vsel %vm388_vm3, %v6682_v26, %v4338_v49  ;;  %v1454_v45 = vmul.f32 %v6683_v61, %v4443_v18 }
 0x130   :  { %v846_v56 = vpop.permute.xlu0 %845  ;;  %v764_v3 = vadd.f32 %v756_v51, %v706_v8  ;;  %v4476_v53 = vmul.f32 %v6681_v30, %v4443_v18  ;;  %v1453_v35 = vmul.f32 %v6684_v15, %v4443_v18  ;;  %v802_v52 = vadd.f32 %v794_v40, %v765_v4  ;;  %v6688_v51 = vld [vmem:[#allocation29_spill] sm:$0xff] }
 0x131   :  { %v804_v41 = vadd.f32 %v796_v2, %v767_v39  ;;  %v4482_v31 = vmul.f32 %v4158_v24, %v4443_v18  ;;  %v852_v49 = vsel %vm388_vm3, %v4383_v36, %v6685_v34  ;;  %v854_v43 = vsel %vm388_vm3, %v848_v22, %v6686_v29  ;;  %v6689_v4 = vld [vmem:[#allocation25_spill] sm:$0xff] }
 0x132   :  { %v801_v44 = vadd.f32 %v793_v62, %v764_v3  ;;  %v1477_v9 = vrot.slane %v1455_v20, 1  ;;  %v1478_v10 = vrot.slane %v4464_v59, 1  ;;  %v853_v0 = vsel %vm388_vm3, %v846_v56, %v848_v22  ;;  %v6690_v62 = vld [vmem:[#allocation26_spill] sm:$0xff]  ;;  %v6691_v59 = vld [vmem:[#allocation15_spill] sm:$0xff] }
 0x133   :  { %v1475_v37 = vrot.slane %v4476_v53, 1  ;;  %v1471_v46 = vrot.slane %v1453_v35, 1  ;;  %v860_v27 = vadd.f32 %v852_v49, %v802_v52  ;;  %v862_v11 = vadd.f32 %v854_v43, %v804_v41  ;;  %v6692_v49 = vld [vmem:[#allocation17_spill] sm:$0xff] }
 0x134   :  { %v1472_v56 = vrot.slane %v4482_v31, 1  ;;  %v1479_v8 = vsel %vm158_vm0, %v1477_v9, %v1478_v10  ;;  %v1461_v3 = vmul.f32 %v6689_v4, %v4443_v18  ;;  %v1460_v2 = vmul.f32 %v6690_v62, %v4443_v18 }
 0x135   :  { %1432 = vrot.lane.b32.xlu2 %v1418_v7, %s3576_s28  ;;  %1430 = vrot.lane.b32.xlu1 %v1417_v55, %s3576_s28  ;;  %v803_v7 = vadd.f32 %v795_v63, %v766_v21  ;;  %v851_v55 = vsel %vm388_vm3, %v4387_v28, %v4383_v36  ;;  %v1459_v21 = vmul.f32 %v6691_v59, %v4443_v18 }
 0x136   :  { %1428 = vrot.lane.b32.xlu0 %v1416_v13, %s3576_s28  ;;  %v1474_v13 = vrot.slane %v1454_v45, 1  ;;  %v859_v23 = vadd.f32 %v851_v55, %v801_v44  ;;  %v1473_v20 = vsel %vm158_vm0, %v1471_v46, %v1472_v56  ;;  %v1482_v63 = vrot.slane %v1460_v2, 1  ;;  %v6693_v55 = vld [vmem:[#allocation18_spill] sm:$0xff]  ;;  %v6694_v46 = vld [vmem:[#allocation19_spill] sm:$0xff] }
 0x137   :  { %v4452_v38 = vpop.permute.xlu2 %1038  ;;  %v900_v1 = vpop.permute.xlu1 %899  ;;  %v861_v54 = vadd.f32 %v853_v0, %v803_v7  ;;  %v1510_v45 = vstv %s4500_s12  ;;  %v1480_v18 = vrot.slane %v1459_v21, 1  ;;  %v6696_v21 = vld [vmem:[#allocation23_spill] sm:$0xff]  ;;  %s3413_s12 = sld [smem:[#allocation2 + $0x185]] }
 0x138   :  { %v898_v14 = vpop.permute.xlu0 %897  ;;  %v910_v48 = vsel %vm388_vm3, %v900_v1, %v6687_v32  ;;  %v1513_v29 = vmul.f32 %v6692_v49, %v1510_v45  ;;  %v1516_v43 = vmul.f32 %v6680_v57, %v1510_v45  ;;  %v1483_v7 = vsel %vm158_vm0, %v1475_v37, %v1482_v63 }
 0x139   :  { %v909_v36 = vsel %vm388_vm3, %v898_v14, %v900_v1  ;;  %v918_v17 = vadd.f32 %v910_v48, %v860_v27  ;;  %v1476_v1 = vsel %vm158_vm0, %v1474_v13, %v1475_v37  ;;  %v1512_v0 = vmul.f32 %v6693_v55, %v1510_v45 }
 0x13a   :  { %v917_v39 = vadd.f32 %v909_v36, %v859_v23  ;;  %v1515_v32 = vmul.f32 %v6681_v30, %v1510_v45  ;;  %v1481_v13 = vsel %vm158_vm0, %v1472_v56, %v1480_v18  ;;  %v1511_v27 = vmul.f32 %v6694_v46, %v1510_v45 }
 0x13b   :  { %v1536_v23 = vrot.slane %v1516_v43, 2  ;;  %v935_v37 = vstv %s4520_s13  ;;  %s3414_s13 = sld [smem:[#allocation2 + $0x205]] }
 0x13d   :  { %1438 = vrot.lane.b32.xlu2 %v1421_v33, %s3576_s28  ;;  %1436 = vrot.lane.b32.xlu1 %v1420_v50, %s3576_s28 }
 0x13e   :  { %1434 = vrot.lane.b32.xlu0 %v1419_v25, %s3576_s28  ;;  %v1484_v25 = vrot.slane %v1461_v3, 1 }
 0x13f   :  { %v4503_v28 = vpop.permute.xlu2 %1090  ;;  %v906_v22 = vpop.permute.xlu1 %905 }
 0x140   :  { %v912_v19 = vsel %vm388_vm3, %v906_v22, %v6688_v51  ;;  %v904_v6 = vpop.permute.xlu0 %903  ;;  %v1485_v34 = vsel %vm158_vm0, %v1478_v10, %v1484_v25  ;;  %v1532_v51 = vrot.slane %v1512_v0, 2 }
 0x141   :  { %v920_v58 = vadd.f32 %v912_v19, %v862_v11  ;;  %v911_v42 = vsel %vm388_vm3, %v904_v6, %v906_v22  ;;  %v1514_v11 = vmul.f32 %v4158_v24, %v1510_v45  ;;  %v1535_v22 = vrot.slane %v1513_v29, 2 }
 0x142   :  { %v919_v40 = vadd.f32 %v911_v42, %v861_v54  ;;  %v1533_v19 = vrot.slane %v1515_v32, 2 }
 0x143   :  { %v928_v14 = vmax.f32 %v918_v17, %v920_v58  ;;  %v1529_v17 = vrot.slane %v1511_v27, 2  ;;  %v1530_v58 = vrot.slane %v1514_v11, 2 }
 0x144   :  { %v921_v33 = vmax.f32 %v917_v39, %v919_v40  ;;  %v1537_v40 = vsel %vm190_vm1, %v1535_v22, %v1536_v23  ;;  %v1534_v2 = vsel %vm190_vm1, %v1532_v51, %v1533_v19  ;;  %v1605_v51 = vstv %s3399_s15  ;;  %s5130_s15 = sld [smem:[#allocation2 + $0x4]] }
 0x145   :  { %v929_v50 = vrot.slane %v928_v14, 4  ;;  %1490 = vrot.lane.b32.xlu2 %v1479_v8, %s3576_s28  ;;  %1488 = vrot.lane.b32.xlu1 %v1476_v1, %s3576_s28  ;;  %v1531_v25 = vsel %vm190_vm1, %v1529_v17, %v1530_v58 }
 0x146   :  { %v922_v26 = vrot.slane %v921_v33, 4  ;;  %1486 = vrot.lane.b32.xlu0 %v1473_v20, %s3576_s28 }
 0x147   :  { %v930_v53 = vmax.f32 %v928_v14, %v929_v50  ;;  %v4524_v35 = vpop.permute.xlu2 %1096  ;;  %v4526_v52 = vpop.permute.xlu1 %1030  ;;  %v6695_v14 = vld [vmem:[#allocation22_spill] sm:$0xff] }
 0x148   :  { %v923_v44 = vmax.f32 %v921_v33, %v922_v26  ;;  %v4528_v41 = vpop.permute.xlu0 %1028  ;;  %v1519_v20 = vmul.f32 %v6695_v14, %v1510_v45  ;;  %v1518_v33 = vmul.f32 %v6696_v21, %v1510_v45  ;;  %v6697_v26 = vld [vmem:[#allocation28_spill] sm:$0xff] }
 0x149   :  { %v931_v31 = vrot.slane %v930_v53, 2  ;;  %v1517_v63 = vmul.f32 %v6697_v26, %v1510_v45 }
 0x14a   :  { %v924_v9 = vrot.slane %v923_v44, 2 }
 0x14b   :  { %v932_v48 = vmax.f32 %v930_v53, %v931_v31  ;;  %v1540_v31 = vrot.slane %v1518_v33, 2 }
 0x14c   :  { %v925_v10 = vmax.f32 %v923_v44, %v924_v9  ;;  %v1542_v44 = vrot.slane %v1519_v20, 2  ;;  %v1538_v9 = vrot.slane %v1517_v63, 2  ;;  %v1609_v20 = vmul.f32 %v4158_v24, %v1605_v51 }
 0x14d   :  { %v933_v36 = vrot.slane %v932_v48, 1  ;;  %1496 = vrot.lane.b32.xlu2 %v1485_v34, %s3576_s28  ;;  %1494 = vrot.lane.b32.xlu1 %v1483_v7, %s3576_s28  ;;  %v1541_v32 = vsel %vm190_vm1, %v1533_v19, %v1540_v31 }
 0x14e   :  { %v926_v54 = vrot.slane %v925_v10, 1  ;;  %1492 = vrot.lane.b32.xlu0 %v1481_v13, %s3576_s28  ;;  %v1543_v0 = vsel %vm190_vm1, %v1536_v23, %v1542_v44  ;;  %v1568_v13 = vstv %s3398_s14  ;;  %v1625_v31 = vrot.slane %v1609_v20, 1  ;;  %s5115_s14 = sld [smem:[#allocation2 + $0x84]] }
 0x14f   :  { %v934_v6 = vmax.f32 %v932_v48, %v933_v36  ;;  %v4543_v56 = vpop.permute.xlu2 %1148  ;;  %v4545_v8 = vpop.permute.xlu1 %1036  ;;  %v1539_v48 = vsel %vm190_vm1, %v1530_v58, %v1538_v9  ;;  %v1571_v36 = vmul.f32 %v4208_v47, %v1568_v13  ;;  %v1570_v22 = vmul.f32 %v4214_v12, %v1568_v13 }
 0x150   :  { %v927_v42 = vmax.f32 %v925_v10, %v926_v54  ;;  %v4547_v3 = vpop.permute.xlu0 %1034  ;;  %v1569_v23 = vmul.f32 %v4220_v60, %v1568_v13  ;;  %v1573_v17 = vmul.f32 %v6681_v30, %v1568_v13  ;;  %v1572_v58 = vmul.f32 %v4158_v24, %v1568_v13 }
 0x151   :  { %v937_v39 = vadd.f32 %v935_v37, %v934_v6  ;;  %v1574_v6 = vmul.f32 %v6680_v57, %v1568_v13  ;;  %v1614_v9 = vmul.f32 %v6689_v4, %v1605_v51 }
 0x152   :  { %v936_v1 = vadd.f32 %v935_v37, %v927_v42  ;;  %v1608_v42 = vmul.f32 %v4238_v5, %v1605_v51 }
 0x153   :  { %v939_v50 = vmax.f32 %v937_v39, 0.0  ;;  %v1611_v39 = vmul.f32 %v6680_v57, %v1605_v51 }
 0x154   :  { %v938_v18 = vmax.f32 %v936_v1, 0.0  ;;  %v1610_v1 = vmul.f32 %v6681_v30, %v1605_v51  ;;  %v1630_v33 = vrot.slane %v1608_v42, 1  ;;  %v1663_v42 = vstv %s3400_s16  ;;  %s5153_s16 = sld [smem:[#allocation2 + $0x104]] }
 0x155   :  { %v942_v53 = vrot.slane %v939_v50, 7  ;;  %1548 = vrot.lane.b32.xlu2 %v1537_v40, %s3576_s28  ;;  %1546 = vrot.lane.b32.xlu1 %v1534_v2, %s3576_s28  ;;  %v1607_v40 = vmul.f32 %v6683_v61, %v1605_v51  ;;  %v1606_v2 = vmul.f32 %v6684_v15, %v1605_v51  ;;  %v1631_v50 = vrot.slane %v1611_v39, 1 }
 0x156   :  { %1544 = vrot.lane.b32.xlu0 %v1531_v25, %s3576_s28  ;;  %v1628_v63 = vrot.slane %v1610_v1, 1  ;;  %v4628_v20 = vmul.f32 %v6680_v57, %v1663_v42 }
 0x157   :  { %v943_v34 = vsel %vm539_vm4, %v938_v18, %v942_v53  ;;  %v4559_v29 = vpop.permute.xlu2 %1154  ;;  %v4561_v43 = vpop.permute.xlu1 %1088  ;;  %v1627_v25 = vrot.slane %v1607_v40, 1  ;;  %v1624_v44 = vrot.slane %v1606_v2, 1  ;;  %v953_v40 = vstv %s3384_s17  ;;  %s5215_s17 = sld [smem:[#allocation2 + $0x285]] }
 0x158   :  { %946 = vst.msk [vmem:[#allocation7 + $0x1] ss:$8 sm:$0x3] %vm4177_vm5, %v943_v34  ;;  %v4565_v45 = vpop.permute.xlu0 %1086  ;;  %v1666_v2 = vmul.f32 %v6692_v49, %v1663_v42  ;;  %v948_v49 = vstv %s3383_s19  ;;  %s3416_s19 = sld [smem:[#allocation2 + $0x305]] }
 0x159   :  { %v1626_v13 = vsel %vm158_vm0, %v1624_v44, %v1625_v31 }
 0x15a   :  { %v1688_v57 = vrot.slane %v1666_v2, 2  ;;  %v959_v2 = vmul.f32 %v6690_v62, %v953_v40 }
 0x15d   :  { %1554 = vrot.lane.b32.xlu2 %v1543_v0, %s3576_s28  ;;  %1552 = vrot.lane.b32.xlu1 %v1541_v32, %s3576_s28  ;;  %v1613_v0 = vmul.f32 %v6690_v62, %v1605_v51  ;;  %v1632_v32 = vsel %vm158_vm0, %v1630_v33, %v1631_v50  ;;  %v1665_v33 = vmul.f32 %v6693_v55, %v1663_v42 }
 0x15e   :  { %1550 = vrot.lane.b32.xlu0 %v1539_v48, %s3576_s28  ;;  %v1629_v48 = vsel %vm158_vm0, %v1627_v25, %v1628_v63  ;;  %v4632_v25 = vmul.f32 %v6681_v30, %v1663_v42 }
 0x15f   :  { %v4573_v27 = vpop.permute.xlu2 %1185  ;;  %v4575_v11 = vpop.permute.xlu1 %1094 }
 0x160   :  { %v4577_v10 = vpop.permute.xlu0 %1092 }
 0x165   :  { %1585 = vrot.lane.b32.xlu2 %v1571_v36, %s3577_s7  ;;  %1583 = vrot.lane.b32.xlu1 %v1570_v22, %s3577_s7  ;;  %v1612_v36 = vmul.f32 %v6691_v59, %v1605_v51  ;;  %v1637_v22 = vrot.slane %v1614_v9, 1  ;;  %v1664_v9 = vmul.f32 %v6694_v46, %v1663_v42 }
 0x166   :  { %1581 = vrot.lane.b32.xlu0 %v1569_v23, %s3577_s7  ;;  %v1635_v23 = vrot.slane %v1613_v0, 1  ;;  %v4637_v0 = vmul.f32 %v4158_v24, %v1663_v42 }
 0x167   :  { %v4585_v37 = vpop.permute.xlu2 %1191  ;;  %v4587_v54 = vpop.permute.xlu1 %1146  ;;  %v1638_v51 = vsel %vm158_vm0, %v1631_v50, %v1637_v22  ;;  %v955_v50 = vmul.f32 %v6683_v61, %v953_v40  ;;  %v956_v22 = vmul.f32 %v4158_v24, %v953_v40  ;;  %v1682_v7 = vrot.slane %v1664_v9, 2 }
 0x168   :  { %v4589_v19 = vpop.permute.xlu0 %1144  ;;  %v1636_v1 = vsel %vm158_vm0, %v1628_v63, %v1635_v23  ;;  %v957_v63 = vmul.f32 %v6681_v30, %v953_v40 }
 0x16d   :  { %1591 = vrot.lane.b32.xlu2 %v1574_v6, %s3577_s7  ;;  %1589 = vrot.lane.b32.xlu1 %v1573_v17, %s3577_s7 }
 0x16e   :  { %1587 = vrot.lane.b32.xlu0 %v1572_v58, %s3577_s7  ;;  %v1633_v58 = vrot.slane %v1612_v36, 1  ;;  %v984_v36 = vstv %s3385_s18  ;;  %s5257_s18 = sld [smem:[#allocation5 + $0x3]] }
 0x16f   :  { %v4603_v53 = vpop.permute.xlu2 %1243  ;;  %v4605_v18 = vpop.permute.xlu1 %1152  ;;  %v989_v61 = vmul.f32 %v6697_v26, %v984_v36 }
 0x170   :  { %6699 = vst [vmem:[#allocation12_spill] sm:$0xff] %v4603_v53  ;;  %v4607_v34 = vpop.permute.xlu0 %1150  ;;  %v1634_v44 = vsel %vm158_vm0, %v1625_v31, %v1633_v58  ;;  %v1689_v31 = vrot.slane %v4628_v20, 2  ;;  %v967_v53 = vrot.slane %v956_v22, 1 }
 0x175   :  { %1643 = vrot.lane.b32.xlu2 %v1632_v32, %s3577_s7  ;;  %1641 = vrot.lane.b32.xlu1 %v1629_v48, %s3577_s7  ;;  %v954_v32 = vmul.f32 %v6684_v15, %v953_v40  ;;  %v1685_v48 = vrot.slane %v1665_v33, 2  ;;  %v970_v33 = vrot.slane %v957_v63, 1  ;;  %v1670_v63 = vmul.f32 %v6697_v26, %v1663_v42 }
 0x176   :  { %1639 = vrot.lane.b32.xlu0 %v1626_v13, %s3577_s7  ;;  %v1686_v13 = vrot.slane %v4632_v25, 2  ;;  %v988_v25 = vmul.f32 %v6681_v30, %v984_v36  ;;  %v950_v15 = vmul.f32 %v4214_v12, %v948_v49 }
 0x177   :  { %v4618_v6 = vpop.permute.xlu2 %1249  ;;  %v4620_v17 = vpop.permute.xlu1 %1183  ;;  %v966_v4 = vrot.slane %v954_v32, 1  ;;  %v987_v32 = vmul.f32 %v4158_v24, %v984_v36 }
 0x178   :  { %6700 = vst [vmem:[#allocation11_spill] sm:$0xff] %v4618_v6  ;;  %v4622_v39 = vpop.permute.xlu0 %1181  ;;  %v958_v6 = vmul.f32 %v6691_v59, %v953_v40  ;;  %v1687_v9 = vsel %vm190_vm1, %v1685_v48, %v1686_v13  ;;  %v974_v40 = vrot.slane %v959_v2, 1  ;;  %v949_v48 = vmul.f32 %v4220_v60, %v948_v49 }
 0x179   :  { %v968_v2 = vsel %vm158_vm0, %v966_v4, %v967_v53  ;;  %v998_v26 = vrot.slane %v987_v32, 2 }
 0x17d   :  { %1649 = vrot.lane.b32.xlu2 %v1638_v51, %s3577_s7  ;;  %1647 = vrot.lane.b32.xlu1 %v1636_v1, %s3577_s7  ;;  %v1683_v51 = vrot.slane %v4637_v0, 2  ;;  %v969_v1 = vrot.slane %v955_v50, 1  ;;  %v1672_v0 = vmul.f32 %v6695_v14, %v1663_v42  ;;  %v1671_v50 = vmul.f32 %v6696_v21, %v1663_v42 }
 0x17e   :  { %1645 = vrot.lane.b32.xlu0 %v1634_v44, %s3577_s7  ;;  %v986_v44 = vmul.f32 %v6693_v55, %v984_v36  ;;  %v985_v55 = vmul.f32 %v6694_v46, %v984_v36  ;;  %v972_v14 = vrot.slane %v958_v6, 1 }
 0x17f   :  { %v4648_v23 = vpop.permute.xlu2 %1301  ;;  %v4650_v58 = vpop.permute.xlu1 %1189  ;;  %v1684_v62 = vsel %vm190_vm1, %v1682_v7, %v1683_v51  ;;  %v971_v46 = vsel %vm158_vm0, %v969_v1, %v970_v33  ;;  %v1001_v7 = vrot.slane %v988_v25, 2  ;;  %v1695_v42 = vrot.slane %v1672_v0, 2 }
 0x180   :  { %6701 = vst [vmem:[#allocation21_spill] sm:$0xff] %v4648_v23  ;;  %v4655_v20 = vpop.permute.xlu0 %1187  ;;  %v1690_v23 = vsel %vm190_vm1, %v1688_v57, %v1689_v31  ;;  %v990_v57 = vmul.f32 %v6696_v21, %v984_v36  ;;  %v1000_v59 = vrot.slane %v986_v44, 2  ;;  %v1693_v22 = vrot.slane %v1671_v50, 2 }
 0x181   :  { %6702 = vst [vmem:[#allocation24_spill] sm:$0xff] %v4655_v20  ;;  %v997_v44 = vrot.slane %v985_v55, 2  ;;  %v952_v21 = vmul.f32 %v6681_v30, %v948_v49  ;;  %v951_v25 = vmul.f32 %v4158_v24, %v948_v49  ;;  %v973_v0 = vsel %vm158_vm0, %v967_v53, %v972_v14 }
 0x182   :  { %v1005_v1 = vrot.slane %v990_v57, 2  ;;  %v1003_v50 = vrot.slane %v989_v61, 2  ;;  %v1696_v4 = vsel %vm190_vm1, %v1689_v31, %v1695_v42  ;;  %v1694_v30 = vsel %vm190_vm1, %v1686_v13, %v1693_v22 }
 0x183   :  { %v981_v55 = vadd.f32 %v971_v46, %v950_v15  ;;  %v1002_v32 = vsel %vm190_vm1, %v1000_v59, %v1001_v7  ;;  %v982_v49 = vadd.f32 %v973_v0, %v951_v25  ;;  %v1815_v61 = vstv %s3404_s20  ;;  %s3417_s20 = sld [smem:[#allocation2 + $0x385]] }
 0x184   :  { %v1006_v24 = vsel %vm190_vm1, %v1001_v7, %v1005_v1  ;;  %v1040_v31 = vsel %vm234_vm2, %v4528_v41, %v4526_v52  ;;  %v1043_v13 = vsel %vm234_vm2, %v4545_v8, %v4452_v38  ;;  %v1817_v46 = vmul.f32 %v4214_v12, %v1815_v61 }
 0x185   :  { %1701 = vrot.lane.b32.xlu2 %v1690_v23, %s3577_s7  ;;  %1699 = vrot.lane.b32.xlu1 %v1687_v9, %s3577_s7  ;;  %v1691_v23 = vrot.slane %v1670_v63, 2  ;;  %v975_v9 = vsel %vm158_vm0, %v970_v33, %v974_v40  ;;  %v999_v33 = vsel %vm190_vm1, %v997_v44, %v998_v26  ;;  %v1004_v40 = vsel %vm190_vm1, %v998_v26, %v1003_v50 }
 0x186   :  { %1697 = vrot.lane.b32.xlu0 %v1684_v62, %s3577_s7  ;;  %v983_v20 = vadd.f32 %v975_v9, %v952_v21  ;;  %v1012_v15 = vadd.f32 %v1002_v32, %v981_v55  ;;  %v1041_v26 = vsel %vm234_vm2, %v4526_v52, %v4402_v16  ;;  %v1099_v16 = vsel %vm234_vm2, %v4561_v43, %v4503_v28  ;;  %v4763_v9 = vld [vmem:[%s6534_s0 + $0x28] sm:$0xff] }
 0x187   :  { %v4677_v6 = vpop.permute.xlu2 %1307  ;;  %v4679_v36 = vpop.permute.xlu1 %1241  ;;  %v1692_v63 = vsel %vm190_vm1, %v1683_v51, %v1691_v23  ;;  %v1013_v51 = vadd.f32 %v1004_v40, %v982_v49  ;;  %v1098_v52 = vsel %vm234_vm2, %v4565_v45, %v4561_v43  ;;  %v1101_v38 = vsel %vm234_vm2, %v4575_v11, %v4524_v35  ;;  %6704 = vst [vmem:[#allocation20_spill] sm:$0xff] %v4763_v9 }
 0x188   :  { %6703 = vst [vmem:[#allocation16_spill] sm:$0xff] %v4677_v6  ;;  %v4683_v62 = vpop.permute.xlu0 %1239  ;;  %v980_v6 = vadd.f32 %v968_v2, %v949_v48  ;;  %v1014_v21 = vadd.f32 %v1006_v24, %v983_v20  ;;  %v1042_v20 = vsel %vm234_vm2, %v4547_v3, %v4545_v8  ;;  %v1818_v48 = vmul.f32 %v4208_v47, %v1815_v61  ;;  %v6705_v0 = vld [vmem:[#allocation24_spill] sm:$0xff] }
 0x189   :  { %v1816_v41 = vmul.f32 %v4220_v60, %v1815_v61  ;;  %v1049_v8 = vadd.f32 %v1041_v26, %v1012_v15  ;;  %v1100_v12 = vsel %vm234_vm2, %v4577_v10, %v4575_v11  ;;  %v1050_v7 = vadd.f32 %v1042_v20, %v1013_v51  ;;  %v6709_v15 = vld [vmem:[#allocation11_spill] sm:$0xff]  ;;  %v6710_v20 = vld [vmem:[#allocation21_spill] sm:$0xff] }
 0x18a   :  { %v1011_v14 = vadd.f32 %v999_v33, %v980_v6  ;;  %v1051_v47 = vadd.f32 %v1043_v13, %v1014_v21  ;;  %v1157_v28 = vsel %vm234_vm2, %v4587_v54, %v4543_v56  ;;  %v1156_v43 = vsel %vm234_vm2, %v4589_v19, %v4587_v54 }
 0x18b   :  { %v1159_v60 = vsel %vm234_vm2, %v4605_v18, %v4559_v29  ;;  %v1107_v35 = vadd.f32 %v1099_v16, %v1049_v8  ;;  %v4741_v11 = vstv %s4695_s21  ;;  %v1108_v10 = vadd.f32 %v1100_v12, %v1050_v7  ;;  %s3393_s21 = sld [smem:[#allocation2 + $0x83]] }
 0x18c   :  { %v1048_v3 = vadd.f32 %v1040_v31, %v1011_v14  ;;  %v1109_v42 = vadd.f32 %v1101_v38, %v1051_v47  ;;  %v1158_v56 = vsel %vm234_vm2, %v4607_v34, %v4605_v18  ;;  %v1194_v29 = vsel %vm388_vm3, %v4620_v17, %v4573_v27 }
 0x18d   :  { %1707 = vrot.lane.b32.xlu2 %v1696_v4, %s3577_s7  ;;  %1705 = vrot.lane.b32.xlu1 %v1694_v30, %s3577_s7  ;;  %v1165_v54 = vadd.f32 %v1157_v28, %v1107_v35  ;;  %v1193_v6 = vsel %vm388_vm3, %v4622_v39, %v4620_v17  ;;  %v1196_v18 = vsel %vm388_vm3, %v4650_v58, %v4585_v37  ;;  %v4773_v37 = vld [vmem:[%s6534_s0 + $0x20] sm:$0xff] }
 0x18e   :  { %1703 = vrot.lane.b32.xlu0 %v1692_v63, %s3577_s7  ;;  %v1106_v45 = vadd.f32 %v1098_v52, %v1048_v3  ;;  %v1167_v22 = vadd.f32 %v1159_v60, %v1109_v42  ;;  %v1855_v23 = vmul.f32 %v4238_v5, %v4741_v11  ;;  %v4767_v27 = vmul.f32 %v4763_v9, %v4741_v11  ;;  %v4779_v5 = vld [vmem:[%s6534_s0 + $0x18] sm:$0xff]  ;;  %v6706_v4 = vld [vmem:[#allocation13_spill] sm:$0xff]  ;;  %v6707_v63 = vld [vmem:[#allocation14_spill] sm:$0xff] }
 0x18f   :  { %v4698_v59 = vpop.permute.xlu2 %1432  ;;  %v4700_v53 = vpop.permute.xlu1 %1247  ;;  %v1166_v1 = vadd.f32 %v1158_v56, %v1108_v10  ;;  %v1821_v17 = vmul.f32 %v4763_v9, %v1815_v61  ;;  %v1820_v39 = vmul.f32 %v4773_v37, %v1815_v61  ;;  %v1819_v25 = vmul.f32 %v4779_v5, %v1815_v61  ;;  %v6708_v61 = vld [vmem:[#allocation12_spill] sm:$0xff] }
 0x190   :  { %v1246_v57 = vpop.permute.xlu0 %1245  ;;  %v1164_v19 = vadd.f32 %v1156_v43, %v1106_v45  ;;  %v1195_v50 = vsel %vm388_vm3, %v6705_v0, %v4650_v58  ;;  %v1854_v30 = vmul.f32 %v6706_v4, %v4741_v11  ;;  %v4789_v55 = vmul.f32 %v4773_v37, %v4741_v11  ;;  %v6711_v47 = vld [vmem:[#allocation16_spill] sm:$0xff]  ;;  %v6712_v45 = vld [vmem:[#allocation25_spill] sm:$0xff] }
 0x191   :  { %v1853_v32 = vmul.f32 %v6707_v63, %v4741_v11  ;;  %v1202_v33 = vadd.f32 %v1194_v29, %v1165_v54  ;;  %v1204_v49 = vadd.f32 %v1196_v18, %v1167_v22  ;;  %v4795_v40 = vmul.f32 %v4779_v5, %v4741_v11 }
 0x192   :  { %v1201_v24 = vadd.f32 %v1193_v6, %v1164_v19  ;;  %v1252_v58 = vsel %vm388_vm3, %v4679_v36, %v6708_v61  ;;  %v1254_v14 = vsel %vm388_vm3, %v4700_v53, %v6709_v15  ;;  %v1877_v21 = vrot.slane %v1855_v23, 1  ;;  %v6713_v19 = vld [vmem:[#allocation26_spill] sm:$0xff]  ;;  %v6714_v6 = vld [vmem:[#allocation15_spill] sm:$0xff] }
 0x193   :  { %v1878_v26 = vrot.slane %v4767_v27, 1  ;;  %v1203_v31 = vadd.f32 %v1195_v50, %v1166_v1  ;;  %v1251_v13 = vsel %vm388_vm3, %v4683_v62, %v4679_v36  ;;  %v1253_v51 = vsel %vm388_vm3, %v1246_v57, %v4700_v53  ;;  %v4852_v61 = vld [vmem:[%s6534_s0 + $0x8] sm:$0xfc] }
 0x194   :  { %v1875_v16 = vrot.slane %v4789_v55, 1  ;;  %v1871_v52 = vrot.slane %v1853_v32, 1  ;;  %v1260_v38 = vadd.f32 %v1252_v58, %v1202_v33  ;;  %v1262_v36 = vadd.f32 %v1254_v14, %v1204_v49  ;;  %v6715_v32 = vld [vmem:[#allocation17_spill] sm:$0xff]  ;;  %6716 = vst [vmem:[#allocation29_spill] sm:$0xff] %v4852_v61 }
 0x195   :  { %1832 = vrot.lane.b32.xlu2 %v1818_v48, %s3576_s28  ;;  %1830 = vrot.lane.b32.xlu1 %v1817_v46, %s3576_s28  ;;  %v1874_v46 = vrot.slane %v1854_v30, 1  ;;  %v1259_v8 = vadd.f32 %v1251_v13, %v1201_v24  ;;  %v1261_v3 = vadd.f32 %v1253_v51, %v1203_v31  ;;  %v1879_v28 = vsel %vm158_vm0, %v1877_v21, %v1878_v26 }
 0x196   :  { %1828 = vrot.lane.b32.xlu0 %v1816_v41, %s3576_s28  ;;  %v1872_v41 = vrot.slane %v4795_v40, 1  ;;  %v1861_v42 = vmul.f32 %v6712_v45, %v4741_v11  ;;  %v1860_v22 = vmul.f32 %v6713_v19, %v4741_v11  ;;  %v1859_v18 = vmul.f32 %v6714_v6, %v4741_v11  ;;  %v6720_v19 = vld [vmem:[#allocation28_spill] sm:$0xff] }
 0x197   :  { %v4750_v2 = vpop.permute.xlu2 %1438  ;;  %v1300_v44 = vpop.permute.xlu1 %1299  ;;  %v1876_v54 = vsel %vm158_vm0, %v1874_v46, %v1875_v16 }
 0x198   :  { %v1298_v34 = vpop.permute.xlu0 %1297  ;;  %v1310_v48 = vsel %vm388_vm3, %v1300_v44, %v6710_v20  ;;  %v1884_v27 = vrot.slane %v1861_v42, 1  ;;  %v1880_v11 = vrot.slane %v1859_v18, 1  ;;  %v6719_v42 = vld [vmem:[#allocation23_spill] sm:$0xff] }
 0x199   :  { %v1309_v62 = vsel %vm388_vm3, %v1298_v34, %v1300_v44  ;;  %v1318_v43 = vadd.f32 %v1310_v48, %v1260_v38  ;;  %v1873_v44 = vsel %vm158_vm0, %v1871_v52, %v1872_v41 }
 0x19a   :  { %v1317_v10 = vadd.f32 %v1309_v62, %v1259_v8  ;;  %v1885_v63 = vsel %vm158_vm0, %v1878_v26, %v1884_v27  ;;  %v1881_v21 = vsel %vm158_vm0, %v1872_v41, %v1880_v11  ;;  %v4860_v26 = vld [vmem:[%s6534_s0] sm:$0xfc] }
 0x19b   :  { %6717 = vst [vmem:[#allocation18_spill] sm:$0xff] %v4860_v26 }
 0x19d   :  { %1838 = vrot.lane.b32.xlu2 %v1821_v17, %s3576_s28  ;;  %1836 = vrot.lane.b32.xlu1 %v1820_v39, %s3576_s28  ;;  %v1882_v17 = vrot.slane %v1860_v22, 1  ;;  %v1910_v39 = vstv %s4815_s26  ;;  %s3394_s26 = sld [smem:[#allocation2 + $0x103]] }
 0x19e   :  { %1834 = vrot.lane.b32.xlu0 %v1819_v25, %s3576_s28  ;;  %v1913_v33 = vmul.f32 %v6715_v32, %v1910_v39  ;;  %v1916_v24 = vmul.f32 %v4763_v9, %v1910_v39  ;;  %v1912_v58 = vmul.f32 %v4852_v61, %v1910_v39  ;;  %v1915_v15 = vmul.f32 %v4773_v37, %v1910_v39 }
 0x19f   :  { %v4818_v53 = vpop.permute.xlu2 %1490  ;;  %v1306_v57 = vpop.permute.xlu1 %1305  ;;  %v1883_v40 = vsel %vm158_vm0, %v1875_v16, %v1882_v17  ;;  %v1911_v31 = vmul.f32 %v4860_v26, %v1910_v39  ;;  %v1914_v13 = vmul.f32 %v4779_v5, %v1910_v39  ;;  %v1335_v16 = vstv %s4835_s27  ;;  %s3423_s27 = sld [smem:[#allocation2 + $0x206]] }
 0x1a0   :  { %v1312_v12 = vsel %vm388_vm3, %v1306_v57, %v6711_v47  ;;  %v1304_v7 = vpop.permute.xlu0 %1303  ;;  %v1935_v48 = vrot.slane %v1913_v33, 2  ;;  %v1936_v46 = vrot.slane %v1916_v24, 2  ;;  %v1932_v38 = vrot.slane %v1912_v58, 2  ;;  %v4907_v24 = vld [vmem:[%s6534_s0 + $0x10] sm:$0xff] }
 0x1a1   :  { %v1320_v60 = vadd.f32 %v1312_v12, %v1262_v36  ;;  %v1311_v35 = vsel %vm388_vm3, %v1304_v7, %v1306_v57  ;;  %v1933_v36 = vrot.slane %v1915_v15, 2  ;;  %v1929_v8 = vrot.slane %v1911_v31, 2  ;;  %v4919_v15 = vld [vmem:[%s6534_s0] sm:$0xff] }
 0x1a2   :  { %v1319_v56 = vadd.f32 %v1311_v35, %v1261_v3  ;;  %v1930_v3 = vrot.slane %v1914_v13, 2  ;;  %v6718_v35 = vld [vmem:[#allocation22_spill] sm:$0xff]  ;;  %v1917_v22 = vmul.f32 %v6720_v19, %v1910_v39  ;;  %v2005_v13 = vstv %s3408_s8  ;;  %v4967_v19 = vld [vmem:[%s6534_s0 + $0x40] sm:$0x1] }
 0x1a3   :  { %v1328_v29 = vmax.f32 %v1318_v43, %v1320_v60  ;;  %v1934_v60 = vsel %vm190_vm1, %v1932_v38, %v1933_v36  ;;  %v1919_v45 = vmul.f32 %v6718_v35, %v1910_v39  ;;  %v2011_v38 = vmul.f32 %v4763_v9, %v2005_v13  ;;  %6726 = vst [vmem:[#allocation12_spill] sm:$0xff] %v4967_v19 }
 0x1a4   :  { %v1321_v34 = vmax.f32 %v1317_v10, %v1319_v56  ;;  %v1918_v10 = vmul.f32 %v6719_v42, %v1910_v39 }
 0x1a5   :  { %v1329_v23 = vrot.slane %v1328_v29, 4  ;;  %1890 = vrot.lane.b32.xlu2 %v1879_v28, %s3576_s28  ;;  %1888 = vrot.lane.b32.xlu1 %v1876_v54, %s3576_s28  ;;  %v1937_v28 = vsel %vm190_vm1, %v1935_v48, %v1936_v46  ;;  %v1931_v54 = vsel %vm190_vm1, %v1929_v8, %v1930_v3  ;;  %v1942_v6 = vrot.slane %v1919_v45, 2 }
 0x1a6   :  { %v1322_v1 = vrot.slane %v1321_v34, 4  ;;  %1886 = vrot.lane.b32.xlu0 %v1873_v44, %s3576_s28  ;;  %v1940_v18 = vrot.slane %v1918_v10, 2  ;;  %v2010_v8 = vmul.f32 %v4773_v37, %v2005_v13 }
 0x1a7   :  { %v1330_v25 = vmax.f32 %v1328_v29, %v1329_v23  ;;  %v4839_v0 = vpop.permute.xlu2 %1496  ;;  %v4841_v50 = vpop.permute.xlu1 %1430 }
 0x1a8   :  { %v1323_v4 = vmax.f32 %v1321_v34, %v1322_v1  ;;  %v4843_v30 = vpop.permute.xlu0 %1428  ;;  %v1938_v1 = vrot.slane %v1917_v22, 2  ;;  %v1941_v11 = vsel %vm190_vm1, %v1933_v36, %v1940_v18  ;;  %v4944_v36 = vld [vmem:[%s6534_s0 + $0x8] sm:$0xfe]  ;;  %v2028_v35 = vrot.slane %v2010_v8, 1  ;;  %v5001_v8 = vld [vmem:[%s6534_s0 + $0x10] sm:$0xfc] }
 0x1a9   :  { %v1331_v55 = vrot.slane %v1330_v25, 2  ;;  %6723 = vst [vmem:[#allocation24_spill] sm:$0xff] %v4944_v36  ;;  %v2014_v22 = vmul.f32 %v4967_v19, %v2005_v13 }
 0x1aa   :  { %v1324_v49 = vrot.slane %v1323_v4, 2  ;;  %6731 = vst [vmem:[#allocation26_spill] sm:$0xff] %v5001_v8 }
 0x1ab   :  { %v1332_v14 = vmax.f32 %v1330_v25, %v1331_v55  ;;  %v1943_v25 = vsel %vm190_vm1, %v1936_v46, %v1942_v6  ;;  %v1968_v55 = vstv %s3407_s6 }
 0x1ac   :  { %v1325_v51 = vmax.f32 %v1323_v4, %v1324_v49  ;;  %v1939_v4 = vsel %vm190_vm1, %v1930_v3, %v1938_v1  ;;  %v1971_v49 = vmul.f32 %v4907_v24, %v1968_v55  ;;  %v1973_v48 = vmul.f32 %v4773_v37, %v1968_v55  ;;  %v4951_v3 = vld [vmem:[%s6534_s0] sm:$0xfe]  ;;  %v4982_v1 = vld [vmem:[%s6534_s0 + $0x30] sm:$0x1] }
 0x1ad   :  { %v1333_v20 = vrot.slane %v1332_v14, 1  ;;  %1896 = vrot.lane.b32.xlu2 %v1885_v63, %s3576_s28  ;;  %1894 = vrot.lane.b32.xlu1 %v1883_v40, %s3576_s28  ;;  %v4913_v40 = vld [vmem:[%s6534_s0 + $0x8] sm:$0xff]  ;;  %v1972_v46 = vmul.f32 %v4779_v5, %v1968_v55  ;;  %6724 = vst [vmem:[#allocation13_spill] sm:$0xff] %v4951_v3 }
 0x1ae   :  { %v1326_v52 = vrot.slane %v1325_v51, 1  ;;  %1892 = vrot.lane.b32.xlu0 %v1881_v21, %s3576_s28  ;;  %v1970_v58 = vmul.f32 %v4913_v40, %v1968_v55  ;;  %6728 = vst [vmem:[#allocation21_spill] sm:$0xff] %v4982_v1 }
 0x1af   :  { %v1334_v62 = vmax.f32 %v1332_v14, %v1333_v20  ;;  %v4868_v57 = vpop.permute.xlu2 %1548  ;;  %v4870_v41 = vpop.permute.xlu1 %1436  ;;  %v1969_v14 = vmul.f32 %v4919_v15, %v1968_v55  ;;  %v1974_v20 = vmul.f32 %v4763_v9, %v1968_v55  ;;  %v1353_v55 = vstv %s3393_s21  ;;  %s3418_s21 = sld [smem:[#allocation2 + $0x405]] }
 0x1b0   :  { %v1327_v47 = vmax.f32 %v1325_v51, %v1326_v52  ;;  %v4872_v12 = vpop.permute.xlu0 %1434  ;;  %v1358_v17 = vmul.f32 %v4982_v1, %v1353_v55 }
 0x1b1   :  { %v1337_v7 = vadd.f32 %v1335_v16, %v1334_v62  ;;  %v2007_v62 = vmul.f32 %v4944_v36, %v2005_v13 }
 0x1b2   :  { %v1336_v43 = vadd.f32 %v1335_v16, %v1327_v47  ;;  %v4937_v16 = vld [vmem:[%s6534_s0 + $0x10] sm:$0xfe]  ;;  %v2006_v47 = vmul.f32 %v4951_v3, %v2005_v13 }
 0x1b3   :  { %v1339_v56 = vmax.f32 %v1337_v7, 0.0  ;;  %v2008_v52 = vmul.f32 %v4937_v16, %v2005_v13  ;;  %v2009_v7 = vmul.f32 %v4779_v5, %v2005_v13 }
 0x1b4   :  { %v1338_v44 = vmax.f32 %v1336_v43, 0.0  ;;  %v2031_v43 = vrot.slane %v2011_v38, 1  ;;  %v2024_v10 = vrot.slane %v2006_v47, 1 }
 0x1b5   :  { %v1342_v29 = vrot.slane %v1339_v56, 7  ;;  %1948 = vrot.lane.b32.xlu2 %v1937_v28, %s3576_s28  ;;  %1946 = vrot.lane.b32.xlu1 %v1934_v60, %s3576_s28  ;;  %v2030_v28 = vrot.slane %v2008_v52, 1  ;;  %v2027_v60 = vrot.slane %v2007_v62, 1  ;;  %v2025_v56 = vrot.slane %v2009_v7, 1 }
 0x1b6   :  { %1944 = vrot.lane.b32.xlu0 %v1931_v54, %s3576_s28  ;;  %v1357_v52 = vmul.f32 %v4773_v37, %v1353_v55 }
 0x1b7   :  { %v1343_v34 = vsel %vm539_vm4, %v1338_v44, %v1342_v29  ;;  %v4884_v23 = vpop.permute.xlu2 %1554  ;;  %v4886_v27 = vpop.permute.xlu1 %1488  ;;  %v4973_v29 = vld [vmem:[%s6534_s0 + $0x38] sm:$0x1]  ;;  %v2032_v6 = vsel %vm158_vm0, %v2030_v28, %v2031_v43  ;;  %v2029_v18 = vsel %vm158_vm0, %v2027_v60, %v2028_v35 }
 0x1b8   :  { %1346 = vst.msk [vmem:[#allocation7 + $0x2] ss:$8 sm:$0x3] %vm4177_vm5, %v1343_v34  ;;  %v4890_v39 = vpop.permute.xlu0 %1486  ;;  %v2013_v44 = vmul.f32 %v4973_v29, %v2005_v13  ;;  %v2026_v34 = vsel %vm158_vm0, %v2024_v10, %v2025_v56  ;;  %v1384_v10 = vstv %s3394_s26  ;;  %s3422_s26 = sld [smem:[#allocation2 + $0x186]] }
 0x1b9   :  { %6727 = vst [vmem:[#allocation11_spill] sm:$0xff] %v4973_v29 }
 0x1bd   :  { %1954 = vrot.lane.b32.xlu2 %v1943_v25, %s3576_s28  ;;  %1952 = vrot.lane.b32.xlu1 %v1941_v11, %s3576_s28  ;;  %v2012_v25 = vmul.f32 %v4982_v1, %v2005_v13  ;;  %v2037_v11 = vrot.slane %v2014_v22, 1  ;;  %v1348_v13 = vstv %s3392_s23 }
 0x1be   :  { %1950 = vrot.lane.b32.xlu0 %v1939_v4, %s3576_s28  ;;  %v2035_v4 = vrot.slane %v2013_v44, 1  ;;  %v1350_v44 = vmul.f32 %v4913_v40, %v1348_v13  ;;  %v1349_v19 = vmul.f32 %v4919_v15, %v1348_v13 }
 0x1bf   :  { %v4898_v63 = vpop.permute.xlu2 %1585  ;;  %v4900_v32 = vpop.permute.xlu1 %1494  ;;  %v2038_v38 = vsel %vm158_vm0, %v2031_v43, %v2037_v11  ;;  %v1386_v11 = vmul.f32 %v4852_v61, %v1384_v10 }
 0x1c0   :  { %v4902_v33 = vpop.permute.xlu0 %1492  ;;  %v2036_v62 = vsel %vm158_vm0, %v2028_v35, %v2035_v4  ;;  %v1359_v4 = vmul.f32 %v4973_v29, %v1353_v55 }
 0x1c5   :  { %1985 = vrot.lane.b32.xlu2 %v1971_v49, %s3577_s7  ;;  %1983 = vrot.lane.b32.xlu1 %v1970_v58, %s3577_s7 }
 0x1c6   :  { %1981 = vrot.lane.b32.xlu0 %v1969_v14, %s3577_s7  ;;  %v2033_v14 = vrot.slane %v2012_v25, 1  ;;  %v1370_v25 = vrot.slane %v1357_v52, 1  ;;  %v1388_v52 = vmul.f32 %v4773_v37, %v1384_v10 }
 0x1c7   :  { %v4925_v21 = vpop.permute.xlu2 %1591  ;;  %v4927_v31 = vpop.permute.xlu1 %1546 }
 0x1c8   :  { %6722 = vst [vmem:[#allocation19_spill] sm:$0xff] %v4925_v21  ;;  %v4929_v51 = vpop.permute.xlu0 %1544  ;;  %v2034_v43 = vsel %vm158_vm0, %v2025_v56, %v2033_v14  ;;  %v1352_v21 = vmul.f32 %v4773_v37, %v1348_v13 }
 0x1cd   :  { %1991 = vrot.lane.b32.xlu2 %v1974_v20, %s3577_s7  ;;  %1989 = vrot.lane.b32.xlu1 %v1973_v48, %s3577_s7  ;;  %v2063_v20 = vstv %s3409_s22  ;;  %v1355_v48 = vmul.f32 %v4944_v36, %v1353_v55  ;;  %s3435_s22 = sld [smem:[#allocation2 + $0x387]] }
 0x1ce   :  { %1987 = vrot.lane.b32.xlu0 %v1972_v46, %s3577_s7  ;;  %v2066_v47 = vmul.f32 %v5001_v8, %v2063_v20  ;;  %v5005_v7 = vmul.f32 %v4763_v9, %v2063_v20  ;;  %v2065_v28 = vmul.f32 %v4852_v61, %v2063_v20  ;;  %v5009_v60 = vmul.f32 %v4773_v37, %v2063_v20 }
 0x1cf   :  { %v4958_v45 = vpop.permute.xlu2 %1643  ;;  %v4960_v42 = vpop.permute.xlu1 %1552  ;;  %v2064_v35 = vmul.f32 %v4860_v26, %v2063_v20  ;;  %v5014_v22 = vmul.f32 %v4779_v5, %v2063_v20 }
 0x1d0   :  { %6725 = vst [vmem:[#allocation14_spill] sm:$0xff] %v4958_v45  ;;  %v4962_v54 = vpop.permute.xlu0 %1550  ;;  %v2088_v56 = vrot.slane %v2066_v47, 2  ;;  %v2089_v14 = vrot.slane %v5005_v7, 2  ;;  %v2086_v8 = vrot.slane %v5009_v60, 2  ;;  %v1385_v47 = vmul.f32 %v4860_v26, %v1384_v10 }
 0x1d1   :  { %v1387_v7 = vmul.f32 %v4779_v5, %v1384_v10  ;;  %v1374_v60 = vrot.slane %v1359_v4, 1  ;;  %v5055_v4 = vld [vmem:[%s6534_s0 + $0x40] sm:$0x3] }
 0x1d2   :  { %6735 = vst [vmem:[#allocation23_spill] sm:$0xff] %v5055_v4  ;;  %v2072_v26 = vmul.f32 %v5055_v4, %v2063_v20  ;;  %v1351_v4 = vmul.f32 %v4779_v5, %v1348_v13 }
 0x1d3   :  { %v1375_v36 = vsel %vm158_vm0, %v1370_v25, %v1374_v60 }
 0x1d5   :  { %2043 = vrot.lane.b32.xlu2 %v2032_v6, %s3577_s7  ;;  %2041 = vrot.lane.b32.xlu1 %v2029_v18, %s3577_s7  ;;  %v1369_v6 = vrot.slane %v1355_v48, 1  ;;  %v1354_v18 = vmul.f32 %v4951_v3, %v1353_v55  ;;  %v2085_v48 = vrot.slane %v2065_v28, 2  ;;  %v1400_v3 = vrot.slane %v1386_v11, 2 }
 0x1d6   :  { %2039 = vrot.lane.b32.xlu0 %v2026_v34, %s3577_s7  ;;  %v1356_v34 = vmul.f32 %v4779_v5, %v1353_v55  ;;  %v2082_v55 = vrot.slane %v2064_v35, 2  ;;  %v5047_v35 = vld [vmem:[%s6534_s0 + $0x30] sm:$0x3] }
 0x1d7   :  { %v4988_v49 = vpop.permute.xlu2 %1649  ;;  %v4990_v58 = vpop.permute.xlu1 %1583  ;;  %v1371_v45 = vsel %vm158_vm0, %v1369_v6, %v1370_v25 }
 0x1d8   :  { %6729 = vst [vmem:[#allocation16_spill] sm:$0xff] %v4988_v49  ;;  %v4993_v46 = vpop.permute.xlu0 %1581  ;;  %v1367_v1 = vrot.slane %v1356_v34, 1  ;;  %v1372_v49 = vrot.slane %v1358_v17, 1  ;;  %v2087_v34 = vsel %vm190_vm1, %v2085_v48, %v2086_v8  ;;  %v1397_v48 = vrot.slane %v1385_v47, 2 }
 0x1d9   :  { %6730 = vst [vmem:[#allocation25_spill] sm:$0xff] %v4993_v46  ;;  %v1398_v46 = vrot.slane %v1387_v7, 2  ;;  %v1383_v7 = vadd.f32 %v1375_v36, %v1352_v21  ;;  %v1441_v21 = vsel %vm234_vm2, %v4841_v50, %v4698_v59  ;;  %v2215_v59 = vstv %s3413_s12 }
 0x1da   :  { %v1373_v6 = vsel %vm158_vm0, %v1367_v1, %v1372_v49 }
 0x1dd   :  { %2049 = vrot.lane.b32.xlu2 %v2038_v38, %s3577_s7  ;;  %2047 = vrot.lane.b32.xlu1 %v2036_v62, %s3577_s7  ;;  %v2083_v38 = vrot.slane %v5014_v22, 2  ;;  %v1366_v62 = vrot.slane %v1354_v18, 1  ;;  %v1389_v22 = vmul.f32 %v5047_v35, %v1384_v10  ;;  %v2090_v18 = vsel %vm190_vm1, %v2088_v56, %v2089_v14 }
 0x1de   :  { %2045 = vrot.lane.b32.xlu0 %v2034_v43, %s3577_s7  ;;  %v5041_v43 = vld [vmem:[%s6534_s0 + $0x38] sm:$0x3] }
 0x1df   :  { %v5029_v61 = vpop.permute.xlu2 %1701  ;;  %v5031_v29 = vpop.permute.xlu1 %1589  ;;  %v2071_v17 = vmul.f32 %v5041_v43, %v2063_v20  ;;  %v1368_v56 = vsel %vm158_vm0, %v1366_v62, %v1367_v1  ;;  %v1403_v11 = vrot.slane %v1389_v22, 2  ;;  %v1399_v1 = vsel %vm190_vm1, %v1397_v48, %v1398_v46 }
 0x1e0   :  { %6732 = vst [vmem:[#allocation15_spill] sm:$0xff] %v5029_v61  ;;  %v5036_v28 = vpop.permute.xlu0 %1587  ;;  %v1390_v61 = vmul.f32 %v5041_v43, %v1384_v10  ;;  %v2070_v10 = vmul.f32 %v5047_v35, %v2063_v20  ;;  %v2095_v20 = vrot.slane %v2072_v26, 2  ;;  %v1380_v25 = vadd.f32 %v1368_v56, %v1349_v19 }
 0x1e1   :  { %6733 = vst [vmem:[#allocation17_spill] sm:$0xff] %v5031_v29  ;;  %v1401_v29 = vrot.slane %v1388_v52, 2  ;;  %v2093_v52 = vrot.slane %v2071_v17, 2  ;;  %v1404_v26 = vsel %vm190_vm1, %v1398_v46, %v1403_v11  ;;  %v1443_v19 = vsel %vm234_vm2, %v4870_v41, %v4750_v2 }
 0x1e2   :  { %6734 = vst [vmem:[#allocation22_spill] sm:$0xff] %v5036_v28  ;;  %v2084_v28 = vsel %vm190_vm1, %v2082_v55, %v2083_v38  ;;  %v1405_v9 = vrot.slane %v1390_v61, 2  ;;  %v1381_v55 = vadd.f32 %v1371_v45, %v1350_v44  ;;  %v2091_v61 = vrot.slane %v2070_v10, 2 }
 0x1e3   :  { %v1402_v13 = vsel %vm190_vm1, %v1400_v3, %v1401_v29  ;;  %v2096_v45 = vsel %vm190_vm1, %v2089_v14, %v2095_v20  ;;  %v2094_v44 = vsel %vm190_vm1, %v2086_v8, %v2093_v52  ;;  %v1411_v36 = vadd.f32 %v1399_v1, %v1380_v25  ;;  %v6736_v52 = vld [vmem:[#allocation20_spill] sm:$0xff] }
 0x1e4   :  { %v1406_v49 = vsel %vm190_vm1, %v1401_v29, %v1405_v9  ;;  %v1412_v22 = vadd.f32 %v1402_v13, %v1381_v55  ;;  %v1440_v9 = vsel %vm234_vm2, %v4843_v30, %v4841_v50  ;;  %v1442_v46 = vsel %vm234_vm2, %v4872_v12, %v4870_v41 }
 0x1e5   :  { %2101 = vrot.lane.b32.xlu2 %v2090_v18, %s3577_s7  ;;  %2099 = vrot.lane.b32.xlu1 %v2087_v34, %s3577_s7  ;;  %v2092_v18 = vsel %vm190_vm1, %v2083_v38, %v2091_v61  ;;  %v1414_v3 = vadd.f32 %v1406_v49, %v1383_v7  ;;  %v1499_v50 = vsel %vm234_vm2, %v4886_v27, %v4818_v53  ;;  %v5113_v10 = vstv %s3414_s13  ;;  %v6738_v7 = vld [vmem:[#allocation25_spill] sm:$0xff]  ;;  %v6739_v49 = vld [vmem:[#allocation19_spill] sm:$0xff]  ;;  %s3427_s13 = sld [smem:[#allocation2 + $0x406]] }
 0x1e6   :  { %2097 = vrot.lane.b32.xlu0 %v2084_v28, %s3577_s7  ;;  %v1382_v28 = vadd.f32 %v1373_v6, %v1351_v4  ;;  %v1449_v8 = vadd.f32 %v1441_v21, %v1412_v22  ;;  %v1448_v14 = vadd.f32 %v1440_v9, %v1411_v36  ;;  %v1498_v34 = vsel %vm234_vm2, %v4890_v39, %v4886_v27  ;;  %v6742_v9 = vld [vmem:[#allocation13_spill] sm:$0xff] }
 0x1e7   :  { %v5070_v62 = vpop.permute.xlu2 %1707  ;;  %v5072_v47 = vpop.permute.xlu1 %1641  ;;  %v1451_v38 = vadd.f32 %v1443_v19, %v1414_v3  ;;  %v1501_v41 = vsel %vm234_vm2, %v4900_v32, %v4839_v0  ;;  %v2218_v17 = vmul.f32 %v4907_v24, %v2215_v59  ;;  %v2217_v53 = vmul.f32 %v4913_v40, %v2215_v59 }
 0x1e8   :  { %v5075_v60 = vpop.permute.xlu0 %1639  ;;  %v1413_v29 = vadd.f32 %v1404_v26, %v1382_v28  ;;  %v1507_v56 = vadd.f32 %v1499_v50, %v1449_v8  ;;  %v1500_v48 = vsel %vm234_vm2, %v4902_v33, %v4900_v32  ;;  %v1557_v27 = vsel %vm234_vm2, %v4927_v31, %v4868_v57  ;;  %v6740_v28 = vld [vmem:[#allocation17_spill] sm:$0xff] }
 0x1e9   :  { %v2216_v0 = vmul.f32 %v4919_v15, %v2215_v59  ;;  %v1506_v39 = vadd.f32 %v1498_v34, %v1448_v14  ;;  %v1509_v6 = vadd.f32 %v1501_v41, %v1451_v38  ;;  %v1556_v11 = vsel %vm234_vm2, %v4929_v51, %v4927_v31  ;;  %v6741_v22 = vld [vmem:[#allocation22_spill] sm:$0xff] }
 0x1ea   :  { %v1450_v4 = vadd.f32 %v1442_v46, %v1413_v29  ;;  %v1559_v20 = vsel %vm234_vm2, %v4960_v42, %v4884_v23  ;;  %v1558_v32 = vsel %vm234_vm2, %v4962_v54, %v4960_v42  ;;  %v1594_v57 = vsel %vm388_vm3, %v4990_v58, %v4898_v63  ;;  %v6737_v42 = vld [vmem:[#allocation24_spill] sm:$0xff] }
 0x1eb   :  { %v2255_v33 = vmul.f32 %v4937_v16, %v5113_v10  ;;  %v5142_v31 = vmul.f32 %v6736_v52, %v5113_v10  ;;  %v1565_v55 = vadd.f32 %v1557_v27, %v1507_v56  ;;  %v1564_v23 = vadd.f32 %v1556_v11, %v1506_v39  ;;  %v6743_v56 = vld [vmem:[#allocation14_spill] sm:$0xff]  ;;  %v6744_v27 = vld [vmem:[#allocation16_spill] sm:$0xff] }
 0x1ec   :  { %v1508_v51 = vadd.f32 %v1500_v48, %v1450_v4  ;;  %v1567_v61 = vadd.f32 %v1559_v20, %v1509_v6  ;;  %v2254_v63 = vmul.f32 %v6737_v42, %v5113_v10  ;;  %v5151_v54 = vmul.f32 %v4773_v37, %v5113_v10 }
 0x1ed   :  { %2107 = vrot.lane.b32.xlu2 %v2096_v45, %s3577_s7  ;;  %2105 = vrot.lane.b32.xlu1 %v2094_v44, %s3577_s7  ;;  %v1602_v25 = vadd.f32 %v1594_v57, %v1565_v55  ;;  %v1593_v1 = vsel %vm388_vm3, %v6738_v7, %v4990_v58  ;;  %v1596_v26 = vsel %vm388_vm3, %v6740_v28, %v6739_v49  ;;  %v2277_v36 = vrot.slane %v2255_v33, 1  ;;  %v6745_v57 = vld [vmem:[#allocation15_spill] sm:$0xff] }
 0x1ee   :  { %2103 = vrot.lane.b32.xlu0 %v2092_v18, %s3577_s7  ;;  %v1566_v13 = vadd.f32 %v1558_v32, %v1508_v51  ;;  %v1595_v18 = vsel %vm388_vm3, %v6741_v22, %v6740_v28  ;;  %v2278_v3 = vrot.slane %v5142_v31, 1  ;;  %v2253_v19 = vmul.f32 %v6742_v9, %v5113_v10 }
 0x1ef   :  { %v5101_v30 = vpop.permute.xlu2 %1832  ;;  %v5103_v2 = vpop.permute.xlu1 %1647  ;;  %v2221_v58 = vmul.f32 %v6736_v52, %v2215_v59  ;;  %v2220_v29 = vmul.f32 %v4773_v37, %v2215_v59  ;;  %v5173_v46 = vmul.f32 %v4779_v5, %v5113_v10  ;;  %v5176_v8 = vstv %s5115_s14  ;;  %s3431_s14 = sld [smem:[#allocation2 + $0x187]] }
 0x1f0   :  { %v1646_v12 = vpop.permute.xlu0 %1645  ;;  %v2219_v50 = vmul.f32 %v4779_v5, %v2215_v59  ;;  %v2274_v14 = vrot.slane %v2254_v63, 1  ;;  %v2275_v38 = vrot.slane %v5151_v54, 1  ;;  %v1755_v34 = vmul.f32 %v6737_v42, %v5176_v8  ;;  %v6746_v63 = vld [vmem:[#allocation29_spill] sm:$0xff] }
 0x1f1   :  { %v1601_v41 = vadd.f32 %v1593_v1, %v1564_v23  ;;  %v1604_v4 = vadd.f32 %v1596_v26, %v1567_v61  ;;  %v1652_v48 = vsel %vm388_vm3, %v5072_v47, %v6743_v56  ;;  %v1654_v59 = vsel %vm388_vm3, %v5103_v2, %v6744_v27  ;;  %v6747_v26 = vld [vmem:[#allocation12_spill] sm:$0xff] }
 0x1f2   :  { %v2271_v39 = vrot.slane %v2253_v19, 1  ;;  %v1651_v6 = vsel %vm388_vm3, %v5075_v60, %v5072_v47  ;;  %v1653_v11 = vsel %vm388_vm3, %v1646_v12, %v5103_v2  ;;  %v2272_v20 = vrot.slane %v5173_v46, 1 }
 0x1f3   :  { %v5204_v32 = vmul.f32 %v4773_v37, %v5176_v8  ;;  %v2276_v47 = vsel %vm158_vm0, %v2274_v14, %v2275_v38  ;;  %v1769_v60 = vrot.slane %v1755_v34, 1  ;;  %v5213_v2 = vstv %s5153_s16  ;;  %s5943_s16 = sld [smem:[#allocation2 + $0x86]] }
 0x1f4   :  { %v1660_v12 = vadd.f32 %v1652_v48, %v1602_v25  ;;  %v1662_v51 = vadd.f32 %v1654_v59, %v1604_v4  ;;  %v1659_v7 = vadd.f32 %v1651_v6, %v1601_v41  ;;  %v2261_v22 = vmul.f32 %v6747_v26, %v5113_v10  ;;  %v6749_v41 = vld [vmem:[#allocation21_spill] sm:$0xff] }
 0x1f5   :  { %2232 = vrot.lane.b32.xlu2 %v2218_v17, %s3576_s28  ;;  %2230 = vrot.lane.b32.xlu1 %v2217_v53, %s3576_s28  ;;  %v1603_v17 = vadd.f32 %v1595_v18, %v1566_v13  ;;  %v5183_v53 = vstv %s5130_s15  ;;  %v5222_v13 = vmul.f32 %v6746_v63, %v5213_v2  ;;  %v5239_v34 = vmul.f32 %v4779_v5, %v5176_v8  ;;  %s3432_s15 = sld [smem:[#allocation2 + $0x207]] }
 0x1f6   :  { %2228 = vrot.lane.b32.xlu0 %v2216_v0, %s3576_s28  ;;  %v2279_v0 = vsel %vm158_vm0, %v2277_v36, %v2278_v3  ;;  %v2259_v4 = vmul.f32 %v6749_v41, %v5113_v10  ;;  %v1750_v56 = vmul.f32 %v4913_v40, %v5183_v53  ;;  %v5247_v48 = vmul.f32 %v4773_v37, %v5213_v2 }
 0x1f7   :  { %v5161_v45 = vpop.permute.xlu2 %1838  ;;  %v1700_v44 = vpop.permute.xlu1 %1699  ;;  %v1661_v1 = vadd.f32 %v1653_v11, %v1603_v17  ;;  %v2284_v27 = vrot.slane %v2261_v22, 1  ;;  %v1749_v6 = vmul.f32 %v4919_v15, %v5183_v53 }
 0x1f8   :  { %v1698_v21 = vpop.permute.xlu0 %1697  ;;  %v1710_v33 = vsel %vm388_vm3, %v1700_v44, %v6745_v57  ;;  %v1801_v54 = vrot.slane %v5247_v48, 2  ;;  %v2615_v48 = vstv %s3422_s26  ;;  %s3436_s26 = sld [smem:[#allocation2 + $0x407]] }
 0x1f9   :  { %v1709_v55 = vsel %vm388_vm3, %v1698_v21, %v1700_v44  ;;  %v1718_v25 = vadd.f32 %v1710_v33, %v1660_v12  ;;  %v1770_v21 = vrot.slane %v5204_v32, 1  ;;  %v2310_v12 = vstv %s5215_s17  ;;  %s5959_s17 = sld [smem:[#allocation2 + $0x6]] }
 0x1fa   :  { %v1717_v36 = vadd.f32 %v1709_v55, %v1659_v7  ;;  %v1767_v55 = vrot.slane %v5239_v34, 1  ;;  %v2285_v22 = vsel %vm158_vm0, %v2278_v3, %v2284_v27  ;;  %v5289_v31 = vmul.f32 %v4773_v37, %v2310_v12 }
 0x1fd   :  { %2238 = vrot.lane.b32.xlu2 %v2221_v58, %s3576_s28  ;;  %2236 = vrot.lane.b32.xlu1 %v2220_v29, %s3576_s28  ;;  %v1754_v58 = vmul.f32 %v6742_v9, %v5176_v8  ;;  %v6748_v29 = vld [vmem:[#allocation11_spill] sm:$0xff] }
 0x1fe   :  { %2234 = vrot.lane.b32.xlu0 %v2219_v50, %s3576_s28  ;;  %v2260_v50 = vmul.f32 %v6748_v29, %v5113_v10  ;;  %v1800_v10 = vrot.slane %v5222_v13, 2  ;;  %v2280_v13 = vrot.slane %v2259_v4, 1  ;;  %v5296_v4 = vmul.f32 %v4779_v5, %v2310_v12 }
 0x1ff   :  { %v5218_v23 = vpop.permute.xlu2 %1890  ;;  %v1706_v61 = vpop.permute.xlu1 %1705  ;;  %v1766_v57 = vrot.slane %v1754_v58, 1 }
 0x200   :  { %v1712_v49 = vsel %vm388_vm3, %v1706_v61, %v5070_v62  ;;  %v1704_v28 = vpop.permute.xlu0 %1703  ;;  %v2273_v62 = vsel %vm158_vm0, %v2271_v39, %v2272_v20  ;;  %v1771_v39 = vsel %vm158_vm0, %v1769_v60, %v1770_v21  ;;  %v2282_v33 = vrot.slane %v2260_v50, 1  ;;  %v6750_v60 = vld [vmem:[#allocation18_spill] sm:$0xff] }
 0x201   :  { %v1720_v18 = vadd.f32 %v1712_v49, %v1662_v51  ;;  %v1711_v44 = vsel %vm388_vm3, %v1704_v28, %v1706_v61  ;;  %v1785_v61 = vmul.f32 %v6750_v60, %v5213_v2  ;;  %v5272_v49 = vmul.f32 %v4779_v5, %v5213_v2 }
 0x202   :  { %v1719_v19 = vadd.f32 %v1711_v44, %v1661_v1  ;;  %v6751_v44 = vld [vmem:[#allocation26_spill] sm:$0xff]  ;;  %v2283_v58 = vsel %vm158_vm0, %v2275_v38, %v2282_v33  ;;  %v2312_v50 = vmul.f32 %v6746_v63, %v2310_v12  ;;  %v1768_v38 = vsel %vm158_vm0, %v1766_v57, %v1767_v55 }
 0x203   :  { %v1728_v14 = vmax.f32 %v1718_v25, %v1720_v18  ;;  %v1797_v27 = vrot.slane %v1785_v61, 2  ;;  %v1735_v33 = vstv %s5257_s18  ;;  %v1781_v57 = vadd.f32 %v1771_v39, %v1750_v56  ;;  %s5984_s18 = sld [smem:[#allocation2 + $0x106]] }
 0x204   :  { %v1721_v17 = vmax.f32 %v1717_v36, %v1719_v19  ;;  %v2313_v36 = vmul.f32 %v6751_v44, %v2310_v12  ;;  %v5282_v19 = vmul.f32 %v6736_v52, %v2310_v12  ;;  %v6754_v34 = vrot.slane %v5272_v49, 2 }
 0x205   :  { %v1729_v59 = vrot.slane %v1728_v14, 4  ;;  %2290 = vrot.lane.b32.xlu2 %v2279_v0, %s3576_s28  ;;  %2288 = vrot.lane.b32.xlu1 %v2276_v47, %s3576_s28 }
 0x206   :  { %v1722_v11 = vrot.slane %v1721_v17, 4  ;;  %2286 = vrot.lane.b32.xlu0 %v2273_v62, %s3576_s28  ;;  %v2311_v62 = vmul.f32 %v6750_v60, %v2310_v12  ;;  %v2335_v46 = vrot.slane %v2313_v36, 2  ;;  %v1802_v36 = vsel %vm190_vm1, %v1800_v10, %v1801_v54  ;;  %v6752_v10 = vld [vmem:[#allocation23_spill] sm:$0xff] }
 0x207   :  { %v1730_v0 = vmax.f32 %v1728_v14, %v1729_v59  ;;  %v5261_v51 = vpop.permute.xlu2 %1896  ;;  %v1831_v47 = vpop.permute.xlu1 %1830  ;;  %v2281_v14 = vsel %vm158_vm0, %v2272_v20, %v2280_v13  ;;  %v2336_v20 = vrot.slane %v5282_v19, 2  ;;  %v2333_v13 = vrot.slane %v5289_v31, 2 }
 0x208   :  { %v1723_v7 = vmax.f32 %v1721_v17, %v1722_v11  ;;  %v5268_v1 = vsel %vm234_vm2, %v1831_v47, %v5101_v30  ;;  %v1829_v28 = vpop.permute.xlu0 %1828  ;;  %v6611_v11 = vrot.slane %v5272_v49, 2  ;;  %v1780_v19 = vadd.f32 %v1768_v38, %v1749_v6 }
 0x209   :  { %v1731_v25 = vrot.slane %v1730_v0, 2  ;;  %v5278_v18 = vsel %vm234_vm2, %v1829_v28, %v1831_v47  ;;  %v2332_v47 = vrot.slane %v2312_v50, 2  ;;  %v2319_v6 = vmul.f32 %v6752_v10, %v2310_v12 }
 0x20a   :  { %v1724_v30 = vrot.slane %v1723_v7, 2  ;;  %v1799_v56 = vsel %vm190_vm1, %v1797_v27, %v6611_v11  ;;  %v1758_v11 = vmul.f32 %v6749_v41, %v5176_v8 }
 0x20b   :  { %v1732_v3 = vmax.f32 %v1730_v0, %v1731_v25  ;;  %v2329_v25 = vrot.slane %v2311_v62, 2  ;;  %v2334_v62 = vsel %vm190_vm1, %v2332_v47, %v2333_v13 }
 0x20c   :  { %v1725_v17 = vmax.f32 %v1723_v7, %v1724_v30 }
 0x20d   :  { %v1733_v59 = vrot.slane %v1732_v3, 1  ;;  %2296 = vrot.lane.b32.xlu2 %v2285_v22, %s3576_s28  ;;  %2294 = vrot.lane.b32.xlu1 %v2283_v58, %s3576_s28  ;;  %v2330_v22 = vrot.slane %v5296_v4, 2  ;;  %v2318_v4 = vmul.f32 %v5041_v43, %v2310_v12 }
 0x20e   :  { %v1726_v0 = vrot.slane %v1725_v17, 1  ;;  %2292 = vrot.lane.b32.xlu0 %v2281_v14, %s3576_s28 }
 0x20f   :  { %v1734_v7 = vmax.f32 %v1732_v3, %v1733_v59  ;;  %v5309_v61 = vpop.permute.xlu2 %1948  ;;  %v1837_v28 = vpop.permute.xlu1 %1836  ;;  %v2337_v3 = vsel %vm190_vm1, %v2335_v46, %v2336_v20  ;;  %v2331_v38 = vsel %vm190_vm1, %v2329_v25, %v2330_v22  ;;  %v2317_v59 = vmul.f32 %v5047_v35, %v2310_v12 }
 0x210   :  { %v1727_v30 = vmax.f32 %v1725_v17, %v1726_v0  ;;  %v5317_v58 = vsel %vm234_vm2, %v1837_v28, %v5161_v45  ;;  %v1835_v50 = vpop.permute.xlu0 %1834  ;;  %v1812_v17 = vadd.f32 %v1802_v36, %v1781_v57  ;;  %v1811_v0 = vadd.f32 %v1799_v56, %v1780_v19 }
 0x211   :  { %v1737_v31 = vadd.f32 %v1735_v33, %v1734_v7  ;;  %v5323_v39 = vsel %vm234_vm2, %v1835_v50, %v1837_v28  ;;  %v2342_v46 = vrot.slane %v2319_v6, 2  ;;  %v2338_v12 = vrot.slane %v2317_v59, 2 }
 0x212   :  { %v1736_v14 = vadd.f32 %v1735_v33, %v1727_v30  ;;  %v2340_v33 = vrot.slane %v2318_v4, 2  ;;  %v1849_v57 = vadd.f32 %v5268_v1, %v1812_v17  ;;  %v1848_v36 = vadd.f32 %v5278_v18, %v1811_v0 }
 0x213   :  { %v1739_v45 = vmax.f32 %v1737_v31, 0.0  ;;  %v2343_v1 = vsel %vm190_vm1, %v2336_v20, %v2342_v46 }
 0x214   :  { %v1738_v7 = vmax.f32 %v1736_v14, 0.0  ;;  %v2341_v14 = vsel %vm190_vm1, %v2333_v13, %v2340_v33 }
 0x215   :  { %v1742_v27 = vrot.slane %v1739_v45, 7  ;;  %2348 = vrot.lane.b32.xlu2 %v2337_v3, %s3576_s28  ;;  %2346 = vrot.lane.b32.xlu1 %v2334_v62, %s3576_s28  ;;  %v2339_v62 = vsel %vm190_vm1, %v2330_v22, %v2338_v12 }
 0x216   :  { %2344 = vrot.lane.b32.xlu0 %v2331_v38, %s3576_s28  ;;  %v2405_v38 = vstv %s3417_s20  ;;  %s6086_s20 = sld [smem:[#allocation5 + $0x5]] }
 0x217   :  { %v1743_v47 = vsel %vm539_vm4, %v1738_v7, %v1742_v27  ;;  %v5336_v28 = vpop.permute.xlu2 %1954  ;;  %v1889_v25 = vpop.permute.xlu1 %1888  ;;  %v2408_v46 = vmul.f32 %v4937_v16, %v2405_v38  ;;  %v2411_v33 = vmul.f32 %v6736_v52, %v2405_v38  ;;  %v2409_v12 = vmul.f32 %v4779_v5, %v2405_v38 }
 0x218   :  { %1746 = vst.msk [vmem:[#allocation7 + $0x3] ss:$8 sm:$0x3] %vm4177_vm5, %v1743_v47  ;;  %v1899_v19 = vsel %vm234_vm2, %v1889_v25, %v5218_v23  ;;  %v1887_v50 = vpop.permute.xlu0 %1886  ;;  %v2368_v23 = vstv %s3416_s19  ;;  %v2407_v47 = vmul.f32 %v6737_v42, %v2405_v38  ;;  %s6044_s19 = sld [smem:[#allocation2 + $0x287]] }
 0x219   :  { %v5343_v31 = vadd.f32 %v1899_v19, %v1849_v57  ;;  %v1898_v56 = vsel %vm234_vm2, %v1887_v50, %v1889_v25  ;;  %v2371_v20 = vmul.f32 %v4907_v24, %v2368_v23  ;;  %v2370_v13 = vmul.f32 %v4913_v40, %v2368_v23 }
 0x21a   :  { %v5346_v3 = vadd.f32 %v1898_v56, %v1848_v36  ;;  %v2369_v22 = vmul.f32 %v4919_v15, %v2368_v23  ;;  %v2374_v0 = vmul.f32 %v6736_v52, %v2368_v23  ;;  %v2373_v27 = vmul.f32 %v4773_v37, %v2368_v23 }
 0x21b   :  { %v2372_v7 = vmul.f32 %v4779_v5, %v2368_v23  ;;  %v2410_v57 = vmul.f32 %v4773_v37, %v2405_v38  ;;  %v2406_v25 = vmul.f32 %v6742_v9, %v2405_v38  ;;  %v2430_v36 = vrot.slane %v2408_v46, 1 }
 0x21c   :  { %v2431_v19 = vrot.slane %v2411_v33, 1  ;;  %v2427_v50 = vrot.slane %v2407_v47, 1  ;;  %v2425_v37 = vrot.slane %v2409_v12, 1  ;;  %v2414_v5 = vmul.f32 %v6747_v26, %v2405_v38 }
 0x21d   :  { %2354 = vrot.lane.b32.xlu2 %v2343_v1, %s3576_s28  ;;  %2352 = vrot.lane.b32.xlu1 %v2341_v14, %s3576_s28  ;;  %v2428_v56 = vrot.slane %v2410_v57, 1  ;;  %v2424_v14 = vrot.slane %v2406_v25, 1  ;;  %v2413_v23 = vmul.f32 %v6748_v29, %v2405_v38  ;;  %v2463_v47 = vstv %s3418_s21  ;;  %s5671_s21 = sld [smem:[#allocation5 + $0x4]] }
 0x21e   :  { %2350 = vrot.lane.b32.xlu0 %v2339_v62, %s3576_s28  ;;  %v2466_v12 = vmul.f32 %v6751_v44, %v2463_v47  ;;  %v2464_v44 = vmul.f32 %v6750_v60, %v2463_v47 }
 0x21f   :  { %v5354_v18 = vpop.permute.xlu2 %1985  ;;  %v5356_v6 = vpop.permute.xlu1 %1894 }
 0x220   :  { %v5358_v4 = vpop.permute.xlu0 %1892 }
 0x225   :  { %2385 = vrot.lane.b32.xlu2 %v2371_v20, %s3577_s7  ;;  %2383 = vrot.lane.b32.xlu1 %v2370_v13, %s3577_s7  ;;  %v2432_v20 = vsel %vm158_vm0, %v2430_v36, %v2431_v19  ;;  %v2429_v13 = vsel %vm158_vm0, %v2427_v50, %v2428_v56  ;;  %v5411_v36 = vld [vmem:[%s6534_s0 + $0x28] sm:$0xff] }
 0x226   :  { %2381 = vrot.lane.b32.xlu0 %v2369_v22, %s3577_s7  ;;  %v2426_v22 = vsel %vm158_vm0, %v2424_v14, %v2425_v37  ;;  %v2469_v50 = vmul.f32 %v5411_v36, %v2463_v47  ;;  %v2465_v14 = vmul.f32 %v6746_v63, %v2463_v47  ;;  %v1759_v63 = vmul.f32 %v6748_v29, %v5176_v8 }
 0x227   :  { %v5366_v45 = vpop.permute.xlu2 %1991  ;;  %v5368_v17 = vpop.permute.xlu1 %1946  ;;  %v1789_v8 = vmul.f32 %v5047_v35, %v5213_v2 }
 0x228   :  { %v5370_v59 = vpop.permute.xlu0 %1944 }
 0x22d   :  { %2391 = vrot.lane.b32.xlu2 %v2374_v0, %s3577_s7  ;;  %2389 = vrot.lane.b32.xlu1 %v2373_v27, %s3577_s7  ;;  %v2412_v0 = vmul.f32 %v6749_v41, %v2405_v38  ;;  %v2437_v27 = vrot.slane %v2414_v5, 1  ;;  %v5418_v5 = vld [vmem:[%s6534_s0 + $0x20] sm:$0xff] }
 0x22e   :  { %2387 = vrot.lane.b32.xlu0 %v2372_v7, %s3577_s7  ;;  %v2435_v7 = vrot.slane %v2413_v23, 1  ;;  %v5426_v23 = vld [vmem:[%s6534_s0 + $0x18] sm:$0xff]  ;;  %v1752_v41 = vmul.f32 %v5418_v5, %v5183_v53 }
 0x22f   :  { %v5384_v1 = vpop.permute.xlu2 %2043  ;;  %v5386_v52 = vpop.permute.xlu1 %1952  ;;  %v2433_v33 = vrot.slane %v2412_v0, 1  ;;  %v2438_v25 = vsel %vm158_vm0, %v2431_v19, %v2437_v27  ;;  %v2468_v19 = vmul.f32 %v5418_v5, %v2463_v47 }
 0x230   :  { %v5388_v62 = vpop.permute.xlu0 %1950  ;;  %v2436_v38 = vsel %vm158_vm0, %v2428_v56, %v2435_v7  ;;  %v2482_v7 = vrot.slane %v2464_v44, 2  ;;  %v2470_v44 = vmul.f32 %v5047_v35, %v2463_v47  ;;  %v1751_v35 = vmul.f32 %v5426_v23, %v5183_v53 }
 0x231   :  { %v2434_v56 = vsel %vm158_vm0, %v2425_v37, %v2433_v33  ;;  %v2489_v37 = vrot.slane %v2469_v50, 2  ;;  %v2486_v60 = vrot.slane %v2468_v19, 2  ;;  %v2471_v19 = vmul.f32 %v5041_v43, %v2463_v47 }
 0x235   :  { %2443 = vrot.lane.b32.xlu2 %v2432_v20, %s3577_s7  ;;  %2441 = vrot.lane.b32.xlu1 %v2429_v13, %s3577_s7  ;;  %v2467_v20 = vmul.f32 %v5426_v23, %v2463_v47  ;;  %v2488_v13 = vrot.slane %v2466_v12, 2 }
 0x236   :  { %2439 = vrot.lane.b32.xlu0 %v2426_v22, %s3577_s7  ;;  %v2485_v22 = vrot.slane %v2465_v14, 2  ;;  %v2472_v14 = vmul.f32 %v6752_v10, %v2463_v47  ;;  %v2493_v47 = vrot.slane %v2471_v19, 2 }
 0x237   :  { %v5399_v46 = vpop.permute.xlu2 %2049  ;;  %v5401_v26 = vpop.permute.xlu1 %1983  ;;  %v2483_v33 = vrot.slane %v2467_v20, 2  ;;  %v2490_v12 = vsel %vm190_vm1, %v2488_v13, %v2489_v37  ;;  %v1772_v20 = vrot.slane %v1758_v11, 1  ;;  %v2491_v13 = vrot.slane %v2470_v44, 2 }
 0x238   :  { %v5403_v57 = vpop.permute.xlu0 %1981  ;;  %v2487_v50 = vsel %vm190_vm1, %v2485_v22, %v2486_v60  ;;  %v1803_v22 = vrot.slane %v1789_v8, 2  ;;  %v2617_v44 = vmul.f32 %v4913_v40, %v2615_v48  ;;  %v1900_v8 = vsel %vm234_vm2, %v5358_v4, %v5356_v6 }
 0x239   :  { %v1773_v32 = vsel %vm158_vm0, %v1767_v55, %v1772_v20  ;;  %v5491_v20 = vstv %s3423_s27  ;;  %v1959_v40 = vsel %vm234_vm2, %v5386_v52, %v5336_v28  ;;  %s3430_s27 = sld [smem:[#allocation2 + $0x107]] }
 0x23a   :  { %v1804_v55 = vsel %vm190_vm1, %v6754_v34, %v1803_v22  ;;  %v2653_v22 = vmul.f32 %v6742_v9, %v5491_v20 }
 0x23d   :  { %2449 = vrot.lane.b32.xlu2 %v2438_v25, %s3577_s7  ;;  %2447 = vrot.lane.b32.xlu1 %v2436_v38, %s3577_s7  ;;  %v1774_v25 = vrot.slane %v1759_v63, 1  ;;  %v1790_v38 = vmul.f32 %v5041_v43, %v5213_v2  ;;  %v2495_v63 = vrot.slane %v2472_v14, 2 }
 0x23e   :  { %2445 = vrot.lane.b32.xlu0 %v2434_v56, %s3577_s7  ;;  %v2484_v56 = vsel %vm190_vm1, %v2482_v7, %v2483_v33 }
 0x23f   :  { %v5434_v0 = vpop.permute.xlu2 %2101  ;;  %v5436_v27 = vpop.permute.xlu1 %1989  ;;  %v1775_v10 = vsel %vm158_vm0, %v1770_v21, %v1774_v25  ;;  %v1805_v43 = vrot.slane %v1790_v38, 2  ;;  %v2496_v53 = vsel %vm190_vm1, %v2489_v37, %v2495_v63  ;;  %v2494_v38 = vsel %vm190_vm1, %v2486_v60, %v2493_v47 }
 0x240   :  { %v5440_v29 = vpop.permute.xlu0 %1987  ;;  %v1783_v7 = vadd.f32 %v1775_v10, %v1752_v41  ;;  %v1901_v60 = vsel %vm234_vm2, %v5356_v6, %v5261_v51  ;;  %v1957_v41 = vsel %vm234_vm2, %v5368_v17, %v5309_v61  ;;  %v2616_v51 = vmul.f32 %v4919_v15, %v2615_v48 }
 0x241   :  { %v1806_v25 = vsel %vm190_vm1, %v1801_v54, %v1805_v43  ;;  %v1958_v6 = vsel %vm234_vm2, %v5388_v62, %v5386_v52  ;;  %v1994_v15 = vsel %vm388_vm3, %v5401_v26, %v5354_v18  ;;  %v2655_v61 = vmul.f32 %v4937_v16, %v5491_v20 }
 0x242   :  { %v1814_v14 = vadd.f32 %v1806_v25, %v1783_v7  ;;  %v1965_v28 = vadd.f32 %v1957_v41, %v5343_v31  ;;  %v2654_v18 = vmul.f32 %v6737_v42, %v5491_v20  ;;  %v5532_v16 = vmul.f32 %v5418_v5, %v5491_v20 }
 0x243   :  { %v1993_v62 = vsel %vm388_vm3, %v5403_v57, %v5401_v26  ;;  %v1995_v47 = vsel %vm388_vm3, %v5440_v29, %v5436_v27  ;;  %v2621_v26 = vmul.f32 %v5411_v36, %v2615_v48  ;;  %v2620_v57 = vmul.f32 %v5418_v5, %v2615_v48 }
 0x244   :  { %v1851_v49 = vadd.f32 %v5317_v58, %v1814_v14  ;;  %v2002_v52 = vadd.f32 %v1994_v15, %v1965_v28  ;;  %v5557_v7 = vstv %s5493_s29  ;;  %v2674_v29 = vrot.slane %v2654_v18, 1  ;;  %s3428_s29 = sld [smem:[#allocation2 + $0x7]] }
 0x245   :  { %2501 = vrot.lane.b32.xlu2 %v2490_v12, %s3577_s7  ;;  %2499 = vrot.lane.b32.xlu1 %v2487_v50, %s3577_s7  ;;  %v1782_v12 = vadd.f32 %v1773_v32, %v1751_v35  ;;  %v2492_v50 = vsel %vm190_vm1, %v2483_v33, %v2491_v13  ;;  %v2677_v13 = vrot.slane %v2655_v61, 1  ;;  %v2675_v25 = vrot.slane %v5532_v16, 1 }
 0x246   :  { %2497 = vrot.lane.b32.xlu0 %v2484_v56, %s3577_s7  ;;  %v2618_v56 = vmul.f32 %v4907_v24, %v2615_v48  ;;  %v1909_v10 = vadd.f32 %v1901_v60, %v1851_v49  ;;  %v1956_v24 = vsel %vm234_vm2, %v5370_v59, %v5368_v17 }
 0x247   :  { %v5462_v2 = vpop.permute.xlu2 %2107  ;;  %v5464_v11 = vpop.permute.xlu1 %2041  ;;  %v1813_v54 = vadd.f32 %v1804_v55, %v1782_v12  ;;  %v1964_v17 = vadd.f32 %v1956_v24, %v5346_v3  ;;  %v1996_v3 = vsel %vm388_vm3, %v5436_v27, %v5366_v45  ;;  %v5554_v45 = vmul.f32 %v5426_v23, %v5491_v20 }
 0x248   :  { %v5469_v21 = vpop.permute.xlu0 %2039  ;;  %v1967_v59 = vadd.f32 %v1959_v40, %v1909_v10  ;;  %v2619_v27 = vmul.f32 %v5426_v23, %v2615_v48  ;;  %v2052_v34 = vsel %vm388_vm3, %v5464_v11, %v5384_v1  ;;  %v2671_v48 = vrot.slane %v2653_v22, 1  ;;  %v5613_v40 = vld [vmem:[%s6534_s0 + $0x40] sm:$0x1]  ;;  %v5650_v22 = vld [vmem:[%s6534_s0 + $0x8] sm:$0xff] }
 0x249   :  { %v1850_v58 = vadd.f32 %v5323_v39, %v1813_v54  ;;  %v5521_v39 = vmul.f32 %v5411_v36, %v5491_v20  ;;  %v2672_v1 = vrot.slane %v5554_v45, 1 }
 0x24a   :  { %v2004_v9 = vadd.f32 %v1996_v3, %v1967_v59 }
 0x24b   :  { %v1908_v4 = vadd.f32 %v1900_v8, %v1850_v58  ;;  %v2678_v32 = vrot.slane %v5521_v39, 1  ;;  %v2673_v3 = vsel %vm158_vm0, %v2671_v48, %v2672_v1 }
 0x24d   :  { %2507 = vrot.lane.b32.xlu2 %v2496_v53, %s3577_s7  ;;  %2505 = vrot.lane.b32.xlu1 %v2494_v38, %s3577_s7  ;;  %v1966_v31 = vadd.f32 %v1958_v6, %v1908_v4  ;;  %v2155_v53 = vmul.f32 %v6737_v42, %v5557_v7  ;;  %v2001_v38 = vadd.f32 %v1993_v62, %v1964_v17 }
 0x24e   :  { %2503 = vrot.lane.b32.xlu0 %v2492_v50, %s3577_s7  ;;  %v5564_v50 = vstv %s5509_s30  ;;  %v2679_v14 = vsel %vm158_vm0, %v2677_v13, %v2678_v32  ;;  %v2051_v42 = vsel %vm388_vm3, %v5469_v21, %v5464_v11  ;;  %v2676_v11 = vsel %vm158_vm0, %v2674_v29, %v2675_v25 }
 0x24f   :  { %v5483_v19 = vpop.permute.xlu2 %2232  ;;  %v2048_v37 = vpop.permute.xlu1 %2047  ;;  %v2003_v12 = vadd.f32 %v1995_v47, %v1966_v31  ;;  %v2169_v21 = vrot.slane %v2155_v53, 1  ;;  %v2661_v6 = vmul.f32 %v5613_v40, %v5491_v20  ;;  %v5629_v31 = vld [vmem:[%s6534_s0 + $0x38] sm:$0x1]  ;;  %v5643_v47 = vld [vmem:[%s6534_s0 + $0x30] sm:$0x1] }
 0x250   :  { %v2046_v33 = vpop.permute.xlu0 %2045  ;;  %v2054_v55 = vsel %vm388_vm3, %v2048_v37, %v5399_v46  ;;  %v5583_v46 = vmul.f32 %v5418_v5, %v5557_v7  ;;  %v2158_v30 = vmul.f32 %v5643_v47, %v5557_v7 }
 0x251   :  { %v2053_v54 = vsel %vm388_vm3, %v2046_v33, %v2048_v37  ;;  %v5592_v37 = vstv %s5534_s4  ;;  %v2060_v33 = vadd.f32 %v2052_v34, %v2002_v52  ;;  %v2062_v49 = vadd.f32 %v2054_v55, %v2004_v9  ;;  %s3425_s4 = sld [smem:[#allocation2 + $0x306]] }
 0x252   :  { %v2061_v58 = vadd.f32 %v2053_v54, %v2003_v12  ;;  %v6615_v28 = vrot.slane %v5583_v46, 1  ;;  %v2660_v52 = vmul.f32 %v5629_v31, %v5491_v20 }
 0x254   :  { %v2682_v55 = vrot.slane %v2660_v52, 1 }
 0x255   :  { %2632 = vrot.lane.b32.xlu2 %v2618_v56, %s3576_s28  ;;  %2630 = vrot.lane.b32.xlu1 %v2617_v44, %s3576_s28 }
 0x256   :  { %2628 = vrot.lane.b32.xlu0 %v2616_v51, %s3576_s28  ;;  %v2059_v51 = vadd.f32 %v2051_v42, %v2001_v38  ;;  %v5667_v38 = vld [vmem:[%s6534_s0] sm:$0xff]  ;;  %v2683_v39 = vsel %vm158_vm0, %v2675_v25, %v2682_v55 }
 0x257   :  { %v5542_v43 = vpop.permute.xlu2 %2238  ;;  %v2100_v63 = vpop.permute.xlu1 %2099  ;;  %v2149_v9 = vmul.f32 %v5667_v38, %v5564_v50 }
 0x258   :  { %v2098_v35 = vpop.permute.xlu0 %2097  ;;  %v2110_v60 = vsel %vm388_vm3, %v2100_v63, %v5434_v0  ;;  %v5602_v0 = vld [vmem:[%s6534_s0 + $0x8] sm:$0xfc] }
 0x259   :  { %v2109_v56 = vsel %vm388_vm3, %v2098_v35, %v2100_v63  ;;  %v5606_v41 = vmul.f32 %v5602_v0, %v5592_v37  ;;  %v2118_v15 = vadd.f32 %v2110_v60, %v2060_v33  ;;  %v5638_v63 = vmul.f32 %v5426_v23, %v5557_v7 }
 0x25a   :  { %v2117_v17 = vadd.f32 %v2109_v56, %v2059_v51  ;;  %v2659_v35 = vmul.f32 %v5643_v47, %v5491_v20  ;;  %v2171_v20 = vsel %vm158_vm0, %v2169_v21, %v6615_v28 }
 0x25b   :  { %v2200_v53 = vrot.slane %v5606_v41, 2  ;;  %v6614_v60 = vrot.slane %v5638_v63, 1 }
 0x25c   :  { %v2680_v33 = vrot.slane %v2659_v35, 1 }
 0x25d   :  { %2638 = vrot.lane.b32.xlu2 %v2621_v26, %s3576_s28  ;;  %2636 = vrot.lane.b32.xlu1 %v2620_v57, %s3576_s28  ;;  %v2150_v26 = vmul.f32 %v5650_v22, %v5564_v50  ;;  %v5656_v57 = vmul.f32 %v5418_v5, %v5592_v37 }
 0x25e   :  { %2634 = vrot.lane.b32.xlu0 %v2619_v27, %s3576_s28  ;;  %v2684_v27 = vrot.slane %v2661_v6, 1 }
 0x25f   :  { %v5597_v44 = vpop.permute.xlu2 %2290  ;;  %v2106_v8 = vpop.permute.xlu1 %2105 }
 0x260   :  { %v2112_v10 = vsel %vm388_vm3, %v2106_v8, %v5462_v2  ;;  %v2104_v24 = vpop.permute.xlu0 %2103  ;;  %v5622_v2 = vld [vmem:[%s6534_s0] sm:$0xfe]  ;;  %v2685_v51 = vsel %vm158_vm0, %v2678_v32, %v2684_v27 }
 0x261   :  { %v2120_v61 = vadd.f32 %v2112_v10, %v2062_v49  ;;  %v2111_v4 = vsel %vm388_vm3, %v2104_v24, %v2106_v8  ;;  %v2154_v18 = vmul.f32 %v5622_v2, %v5557_v7  ;;  %v5693_v8 = vmul.f32 %v5426_v23, %v5592_v37  ;;  %v5704_v24 = vld [vmem:[%s6534_s0 + $0x10] sm:$0xfc] }
 0x262   :  { %v2119_v59 = vadd.f32 %v2111_v4, %v2061_v58  ;;  %6755 = vst [vmem:[#allocation28_spill] sm:$0xff] %v5704_v24 }
 0x263   :  { %v2128_v62 = vmax.f32 %v2118_v15, %v2120_v61  ;;  %v2166_v34 = vrot.slane %v2154_v18, 1  ;;  %v6613_v18 = vrot.slane %v5656_v57, 2  ;;  %v6612_v45 = vrot.slane %v5693_v8, 2 }
 0x264   :  { %v2121_v13 = vmax.f32 %v2117_v17, %v2119_v59  ;;  %v2681_v17 = vsel %vm158_vm0, %v2672_v1, %v2680_v33 }
 0x265   :  { %v2129_v29 = vrot.slane %v2128_v62, 4  ;;  %2690 = vrot.lane.b32.xlu2 %v2679_v14, %s3576_s28  ;;  %2688 = vrot.lane.b32.xlu1 %v2676_v11, %s3576_s28  ;;  %v5675_v14 = vstv %s5594_s5  ;;  %v5683_v11 = vld [vmem:[%s6534_s0] sm:$0xfc]  ;;  %v2168_v52 = vsel %vm158_vm0, %v2166_v34, %v6614_v60  ;;  %v2181_v34 = vadd.f32 %v2171_v20, %v2150_v26  ;;  %s3426_s5 = sld [smem:[#allocation2 + $0x386]] }
 0x266   :  { %v2122_v12 = vrot.slane %v2121_v13, 4  ;;  %2686 = vrot.lane.b32.xlu0 %v2673_v3, %s3576_s28  ;;  %v2185_v21 = vmul.f32 %v5683_v11, %v5592_v37  ;;  %v5710_v6 = vmul.f32 %v5411_v36, %v5675_v14  ;;  %v2712_v32 = vmul.f32 %v5602_v0, %v5675_v14 }
 0x267   :  { %v2130_v48 = vmax.f32 %v2128_v62, %v2129_v29  ;;  %v5677_v42 = vpop.permute.xlu2 %2296  ;;  %v2231_v54 = vpop.permute.xlu1 %2230  ;;  %v5719_v61 = vmul.f32 %v5418_v5, %v5675_v14  ;;  %v2711_v59 = vmul.f32 %v5683_v11, %v5675_v14  ;;  %v5728_v16 = vmul.f32 %v5426_v23, %v5675_v14 }
 0x268   :  { %v2123_v49 = vmax.f32 %v2121_v13, %v2122_v12  ;;  %v5689_v56 = vsel %vm234_vm2, %v2231_v54, %v5483_v19  ;;  %v2229_v41 = vpop.permute.xlu0 %2228  ;;  %v2713_v19 = vmul.f32 %v5704_v24, %v5675_v14  ;;  %v2197_v62 = vrot.slane %v2185_v21, 2 }
 0x269   :  { %v2131_v58 = vrot.slane %v2130_v48, 2  ;;  %v5699_v10 = vsel %vm234_vm2, %v2229_v41, %v2231_v54  ;;  %v2736_v35 = vrot.slane %v5710_v6, 2  ;;  %v2135_v13 = vstv %s5671_s21  ;;  %s3434_s21 = sld [smem:[#allocation2 + $0x307]] }
 0x26a   :  { %v2124_v15 = vrot.slane %v2123_v49, 2  ;;  %v2735_v1 = vrot.slane %v2713_v19, 2  ;;  %v2732_v29 = vrot.slane %v2712_v32, 2  ;;  %v2733_v12 = vrot.slane %v5719_v61, 2 }
 0x26b   :  { %v2132_v4 = vmax.f32 %v2130_v48, %v2131_v58  ;;  %v2729_v21 = vrot.slane %v2711_v59, 2  ;;  %v2730_v33 = vrot.slane %v5728_v16, 2  ;;  %v2202_v41 = vsel %vm190_vm1, %v2200_v53, %v6613_v18  ;;  %v5762_v53 = vld [vmem:[%s6534_s0 + $0x40] sm:$0x3]  ;;  %v5777_v16 = vld [vmem:[%s6534_s0 + $0x30] sm:$0x3] }
 0x26c   :  { %v2125_v25 = vmax.f32 %v2123_v49, %v2124_v15  ;;  %v2199_v26 = vsel %vm190_vm1, %v2197_v62, %v6612_v45  ;;  %v2737_v15 = vsel %vm190_vm1, %v2735_v1, %v2736_v35  ;;  %v2734_v32 = vsel %vm190_vm1, %v2732_v29, %v2733_v12  ;;  %6756 = vst [vmem:[#allocation20_spill] sm:$0xff] %v5762_v53 }
 0x26d   :  { %v2133_v3 = vrot.slane %v2132_v4, 1  ;;  %2696 = vrot.lane.b32.xlu2 %v2685_v51, %s3576_s28  ;;  %2694 = vrot.lane.b32.xlu1 %v2683_v39, %s3576_s28  ;;  %v2180_v51 = vadd.f32 %v2168_v52, %v2149_v9  ;;  %v5769_v9 = vld [vmem:[%s6534_s0 + $0x38] sm:$0x3]  ;;  %v2731_v59 = vsel %vm190_vm1, %v2729_v21, %v2730_v33  ;;  %6758 = vst [vmem:[#allocation25_spill] sm:$0xff] %v5777_v16 }
 0x26e   :  { %v2126_v27 = vrot.slane %v2125_v25, 1  ;;  %2692 = vrot.lane.b32.xlu0 %v2681_v17, %s3576_s28  ;;  %6757 = vst [vmem:[#allocation24_spill] sm:$0xff] %v5769_v9  ;;  %v2718_v61 = vmul.f32 %v5769_v9, %v5675_v14  ;;  %v2212_v17 = vadd.f32 %v2202_v41, %v2181_v34  ;;  %v2159_v18 = vmul.f32 %v5629_v31, %v5557_v7 }
 0x26f   :  { %v2134_v55 = vmax.f32 %v2132_v4, %v2133_v3  ;;  %v5741_v48 = vpop.permute.xlu2 %2348  ;;  %v2237_v54 = vpop.permute.xlu1 %2236  ;;  %v2211_v52 = vadd.f32 %v2199_v26, %v2180_v51  ;;  %v2189_v7 = vmul.f32 %v5777_v16, %v5592_v37 }
 0x270   :  { %v2127_v49 = vmax.f32 %v2125_v25, %v2126_v27  ;;  %v5749_v58 = vsel %vm234_vm2, %v2237_v54, %v5542_v43  ;;  %v2235_v19 = vpop.permute.xlu0 %2234  ;;  %v2719_v43 = vmul.f32 %v5762_v53, %v5675_v14  ;;  %v2717_v25 = vmul.f32 %v5777_v16, %v5675_v14 }
 0x271   :  { %v2137_v6 = vadd.f32 %v2135_v13, %v2134_v55  ;;  %v5755_v20 = vsel %vm234_vm2, %v2235_v19, %v2237_v54  ;;  %v2249_v29 = vadd.f32 %v5689_v56, %v2212_v17  ;;  %v2248_v54 = vadd.f32 %v5699_v10, %v2211_v52 }
 0x272   :  { %v2136_v39 = vadd.f32 %v2135_v13, %v2127_v49  ;;  %v2742_v1 = vrot.slane %v2719_v43, 2  ;;  %v2740_v13 = vrot.slane %v2718_v61, 2  ;;  %v2738_v14 = vrot.slane %v2717_v25, 2 }
 0x273   :  { %v2139_v4 = vmax.f32 %v2137_v6, 0.0 }
 0x274   :  { %v2138_v3 = vmax.f32 %v2136_v39, 0.0  ;;  %v2743_v56 = vsel %vm190_vm1, %v2736_v35, %v2742_v1  ;;  %v2741_v6 = vsel %vm190_vm1, %v2733_v12, %v2740_v13  ;;  %v2739_v26 = vsel %vm190_vm1, %v2730_v33, %v2738_v14  ;;  %v5813_v35 = vld [vmem:[%s6534_s0 + $0x10] sm:$0xff]  ;;  %v5840_v13 = vld [vmem:[%s6534_s0 + $0x8] sm:$0xfe] }
 0x275   :  { %v2142_v62 = vrot.slane %v2139_v4, 7  ;;  %2748 = vrot.lane.b32.xlu2 %v2737_v15, %s3576_s28  ;;  %2746 = vrot.lane.b32.xlu1 %v2734_v32, %s3576_s28  ;;  %v2805_v4 = vstv %s3426_s5  ;;  %s6365_s5 = sld [smem:[#allocation5 + $0x6]] }
 0x276   :  { %2744 = vrot.lane.b32.xlu0 %v2731_v59, %s3576_s28  ;;  %v2811_v1 = vmul.f32 %v5411_v36, %v2805_v4  ;;  %v2809_v14 = vmul.f32 %v5426_v23, %v2805_v4 }
 0x277   :  { %v2143_v27 = vsel %vm539_vm4, %v2138_v3, %v2142_v62  ;;  %v5786_v55 = vpop.permute.xlu2 %2354  ;;  %v2289_v34 = vpop.permute.xlu1 %2288  ;;  %v5833_v62 = vld [vmem:[%s6534_s0 + $0x10] sm:$0xfe] }
 0x278   :  { %2146 = vst.msk [vmem:[#allocation7 + $0x4] ss:$8 sm:$0x3] %vm4177_vm5, %v2143_v27  ;;  %v2299_v21 = vsel %vm234_vm2, %v2289_v34, %v5597_v44  ;;  %v2287_v49 = vpop.permute.xlu0 %2286  ;;  %v2768_v44 = vstv %s3425_s4  ;;  %v2808_v3 = vmul.f32 %v5833_v62, %v2805_v4  ;;  %v2807_v27 = vmul.f32 %v5840_v13, %v2805_v4 }
 0x279   :  { %v5793_v41 = vadd.f32 %v2299_v21, %v2249_v29  ;;  %v2298_v51 = vsel %vm234_vm2, %v2287_v49, %v2289_v34  ;;  %v2771_v12 = vmul.f32 %v5813_v35, %v2768_v44  ;;  %v2770_v33 = vmul.f32 %v5650_v22, %v2768_v44 }
 0x27a   :  { %v5796_v19 = vadd.f32 %v2298_v51, %v2248_v54  ;;  %v2769_v32 = vmul.f32 %v5667_v38, %v2768_v44  ;;  %v2774_v59 = vmul.f32 %v5411_v36, %v2768_v44  ;;  %v2773_v25 = vmul.f32 %v5418_v5, %v2768_v44 }
 0x27b   :  { %v2772_v52 = vmul.f32 %v5426_v23, %v2768_v44  ;;  %v2810_v29 = vmul.f32 %v5418_v5, %v2805_v4  ;;  %v2806_v34 = vmul.f32 %v5622_v2, %v2805_v4  ;;  %v2830_v54 = vrot.slane %v2808_v3, 1 }
 0x27c   :  { %v2831_v21 = vrot.slane %v2811_v1, 1  ;;  %v2827_v49 = vrot.slane %v2807_v27, 1  ;;  %v2825_v44 = vrot.slane %v2809_v14, 1  ;;  %v2812_v3 = vmul.f32 %v5643_v47, %v2805_v4 }
 0x27d   :  { %2754 = vrot.lane.b32.xlu2 %v2743_v56, %s3576_s28  ;;  %2752 = vrot.lane.b32.xlu1 %v2741_v6, %s3576_s28  ;;  %v2828_v51 = vrot.slane %v2810_v29, 1 }
 0x27e   :  { %2750 = vrot.lane.b32.xlu0 %v2739_v26, %s3576_s28  ;;  %v2824_v26 = vrot.slane %v2806_v34, 1  ;;  %v2833_v14 = vrot.slane %v2812_v3, 1 }
 0x27f   :  { %v5804_v10 = vpop.permute.xlu2 %2385  ;;  %v5806_v15 = vpop.permute.xlu1 %2294 }
 0x280   :  { %v5808_v39 = vpop.permute.xlu0 %2292 }
 0x285   :  { %2785 = vrot.lane.b32.xlu2 %v2771_v12, %s3577_s7  ;;  %2783 = vrot.lane.b32.xlu1 %v2770_v33, %s3577_s7  ;;  %v2814_v33 = vmul.f32 %v5613_v40, %v2805_v4 }
 0x286   :  { %2781 = vrot.lane.b32.xlu0 %v2769_v32, %s3577_s7  ;;  %v2813_v32 = vmul.f32 %v5629_v31, %v2805_v4 }
 0x287   :  { %v5821_v43 = vpop.permute.xlu2 %2391  ;;  %v5823_v61 = vpop.permute.xlu1 %2346  ;;  %v2837_v1 = vrot.slane %v2814_v33, 1 }
 0x288   :  { %v5825_v17 = vpop.permute.xlu0 %2344  ;;  %v2835_v27 = vrot.slane %v2813_v32, 1 }
 0x28a   :  { %v2836_v4 = vsel %vm158_vm0, %v2828_v51, %v2835_v27 }
 0x28d   :  { %2791 = vrot.lane.b32.xlu2 %v2774_v59, %s3577_s7  ;;  %2789 = vrot.lane.b32.xlu1 %v2773_v25, %s3577_s7  ;;  %v2832_v59 = vsel %vm158_vm0, %v2830_v54, %v2831_v21  ;;  %v2829_v25 = vsel %vm158_vm0, %v2827_v49, %v2828_v51  ;;  %v2863_v54 = vstv %s3427_s13  ;;  %v2838_v49 = vsel %vm158_vm0, %v2831_v21, %v2837_v1 }
 0x28e   :  { %2787 = vrot.lane.b32.xlu0 %v2772_v52, %s3577_s7  ;;  %v2826_v52 = vsel %vm158_vm0, %v2824_v26, %v2825_v44  ;;  %v2866_v26 = vmul.f32 %v5704_v24, %v2863_v54  ;;  %v2865_v33 = vmul.f32 %v5602_v0, %v2863_v54  ;;  %v2868_v32 = vmul.f32 %v5418_v5, %v2863_v54 }
 0x28f   :  { %v5849_v56 = vpop.permute.xlu2 %2443  ;;  %v5851_v6 = vpop.permute.xlu1 %2352  ;;  %v2867_v3 = vmul.f32 %v5426_v23, %v2863_v54 }
 0x290   :  { %v5853_v12 = vpop.permute.xlu0 %2350  ;;  %v2888_v21 = vrot.slane %v2866_v26, 2  ;;  %v2885_v1 = vrot.slane %v2865_v33, 2  ;;  %v2886_v27 = vrot.slane %v2868_v32, 2  ;;  %v2872_v33 = vmul.f32 %v5762_v53, %v2863_v54 }
 0x291   :  { %v2883_v28 = vrot.slane %v2867_v3, 2  ;;  %v2871_v32 = vmul.f32 %v5769_v9, %v2863_v54  ;;  %v2172_v3 = vrot.slane %v2158_v30, 1  ;;  %v2151_v30 = vmul.f32 %v5426_v23, %v5564_v50 }
 0x295   :  { %2843 = vrot.lane.b32.xlu2 %v2832_v59, %s3577_s7  ;;  %2841 = vrot.lane.b32.xlu1 %v2829_v25, %s3577_s7  ;;  %v2869_v59 = vmul.f32 %v5411_v36, %v2863_v54  ;;  %v2834_v25 = vsel %vm158_vm0, %v2825_v44, %v2833_v14 }
 0x296   :  { %2839 = vrot.lane.b32.xlu0 %v2826_v52, %s3577_s7  ;;  %v2864_v52 = vmul.f32 %v5683_v11, %v2863_v54 }
 0x297   :  { %v5864_v29 = vpop.permute.xlu2 %2449  ;;  %v5866_v34 = vpop.permute.xlu1 %2383  ;;  %v2889_v51 = vrot.slane %v2869_v59, 2  ;;  %v2887_v59 = vsel %vm190_vm1, %v2885_v1, %v2886_v27 }
 0x298   :  { %v5868_v45 = vpop.permute.xlu0 %2381  ;;  %v2882_v14 = vrot.slane %v2864_v52, 2  ;;  %v2870_v52 = vmul.f32 %v5777_v16, %v2863_v54  ;;  %v2893_v54 = vrot.slane %v2871_v32, 2  ;;  %v2203_v16 = vrot.slane %v2189_v7, 2 }
 0x299   :  { %v2890_v26 = vsel %vm190_vm1, %v2888_v21, %v2889_v51  ;;  %v6759_v21 = vrot.slane %v5583_v46, 1 }
 0x29d   :  { %2849 = vrot.lane.b32.xlu2 %v2838_v49, %s3577_s7  ;;  %2847 = vrot.lane.b32.xlu1 %v2836_v4, %s3577_s7  ;;  %v2174_v49 = vrot.slane %v2159_v18, 1  ;;  %v2190_v4 = vmul.f32 %v5769_v9, %v5592_v37  ;;  %v2152_v18 = vmul.f32 %v5418_v5, %v5564_v50 }
 0x29e   :  { %2845 = vrot.lane.b32.xlu0 %v2834_v25, %s3577_s7  ;;  %v2884_v25 = vsel %vm190_vm1, %v2882_v14, %v2883_v28  ;;  %v2895_v14 = vrot.slane %v2872_v33, 2  ;;  %v6761_v33 = vrot.slane %v5656_v57, 2  ;;  %v3015_v57 = vstv %s3431_s14 }
 0x29f   :  { %v5884_v60 = vpop.permute.xlu2 %2501  ;;  %v5886_v44 = vpop.permute.xlu1 %2389  ;;  %v2175_v1 = vsel %vm158_vm0, %v6759_v21, %v2174_v49  ;;  %v2205_v9 = vrot.slane %v2190_v4, 2 }
 0x2a0   :  { %v5890_v24 = vpop.permute.xlu0 %2387  ;;  %v2183_v4 = vadd.f32 %v2175_v1, %v2152_v18  ;;  %v2896_v50 = vsel %vm190_vm1, %v2889_v51, %v2895_v14  ;;  %v3017_v1 = vmul.f32 %v5650_v22, %v3015_v57  ;;  %v5941_v14 = vstv %s3432_s15 }
 0x2a1   :  { %v2206_v32 = vsel %vm190_vm1, %v6761_v33, %v2205_v9  ;;  %v2393_v33 = vsel %vm388_vm3, %v5868_v45, %v5866_v34  ;;  %v3021_v45 = vmul.f32 %v5411_v36, %v3015_v57 }
 0x2a2   :  { %v2214_v7 = vadd.f32 %v2206_v32, %v2183_v4 }
 0x2a5   :  { %2901 = vrot.lane.b32.xlu2 %v2890_v26, %s3577_s7  ;;  %2899 = vrot.lane.b32.xlu1 %v2887_v59, %s3577_s7  ;;  %v2891_v26 = vrot.slane %v2870_v52, 2  ;;  %v6760_v59 = vrot.slane %v5638_v63, 1  ;;  %v6762_v63 = vrot.slane %v5693_v8, 2  ;;  %v2251_v8 = vadd.f32 %v5749_v58, %v2214_v7 }
 0x2a6   :  { %2897 = vrot.lane.b32.xlu0 %v2884_v25, %s3577_s7  ;;  %v2894_v25 = vsel %vm190_vm1, %v2886_v27, %v2893_v54  ;;  %v2300_v54 = vsel %vm234_vm2, %v5808_v39, %v5806_v15  ;;  %v5971_v39 = vmul.f32 %v5411_v36, %v5941_v14  ;;  %v6007_v7 = vstv %s5943_s16 }
 0x2a7   :  { %v5912_v37 = vpop.permute.xlu2 %2507  ;;  %v5914_v53 = vpop.permute.xlu1 %2441  ;;  %v2173_v46 = vsel %vm158_vm0, %v6760_v59, %v2172_v3  ;;  %v2892_v52 = vsel %vm190_vm1, %v2883_v28, %v2891_v26  ;;  %v2204_v3 = vsel %vm190_vm1, %v6762_v63, %v2203_v16  ;;  %v2301_v28 = vsel %vm234_vm2, %v5806_v15, %v5677_v42 }
 0x2a8   :  { %v5919_v49 = vpop.permute.xlu0 %2439  ;;  %v2182_v21 = vadd.f32 %v2173_v46, %v2151_v30  ;;  %v3018_v16 = vmul.f32 %v5813_v35, %v3015_v57  ;;  %v2357_v30 = vsel %vm234_vm2, %v5823_v61, %v5741_v48  ;;  %v3016_v42 = vmul.f32 %v5667_v38, %v3015_v57 }
 0x2a9   :  { %v2309_v26 = vadd.f32 %v2301_v28, %v2251_v8  ;;  %v2356_v59 = vsel %vm234_vm2, %v5825_v17, %v5823_v61  ;;  %v2359_v46 = vsel %vm234_vm2, %v5851_v6, %v5786_v55  ;;  %v2358_v15 = vsel %vm234_vm2, %v5853_v12, %v5851_v6 }
 0x2aa   :  { %v2213_v9 = vadd.f32 %v2204_v3, %v2182_v21  ;;  %v2394_v48 = vsel %vm388_vm3, %v5866_v34, %v5804_v10  ;;  %v2365_v55 = vadd.f32 %v2357_v30, %v5793_v41  ;;  %v2364_v17 = vadd.f32 %v2356_v59, %v5796_v19 }
 0x2ab   :  { %v2367_v6 = vadd.f32 %v2359_v46, %v2309_v26  ;;  %v3054_v10 = vmul.f32 %v5840_v13, %v5941_v14  ;;  %v5982_v12 = vmul.f32 %v5418_v5, %v5941_v14  ;;  %v2396_v19 = vsel %vm388_vm3, %v5886_v44, %v5821_v43 }
 0x2ac   :  { %v2250_v58 = vadd.f32 %v5755_v20, %v2213_v9  ;;  %v3055_v20 = vmul.f32 %v5833_v62, %v5941_v14  ;;  %v2402_v4 = vadd.f32 %v2394_v48, %v2365_v55  ;;  %v3078_v63 = vrot.slane %v5971_v39, 1 }
 0x2ad   :  { %2907 = vrot.lane.b32.xlu2 %v2896_v50, %s3577_s7  ;;  %2905 = vrot.lane.b32.xlu1 %v2894_v25, %s3577_s7  ;;  %v2395_v25 = vsel %vm388_vm3, %v5890_v24, %v5886_v44  ;;  %v3053_v3 = vmul.f32 %v5622_v2, %v5941_v14  ;;  %v3020_v34 = vmul.f32 %v5418_v5, %v3015_v57  ;;  %v3074_v44 = vrot.slane %v3054_v10, 1 }
 0x2ae   :  { %2903 = vrot.lane.b32.xlu0 %v2892_v52, %s3577_s7  ;;  %v2308_v61 = vadd.f32 %v2300_v54, %v2250_v58  ;;  %v3077_v52 = vrot.slane %v3055_v20, 1  ;;  %v6004_v43 = vmul.f32 %v5426_v23, %v5941_v14  ;;  %v3019_v24 = vmul.f32 %v5426_v23, %v3015_v57 }
 0x2af   :  { %v5933_v18 = vpop.permute.xlu2 %2632  ;;  %v2448_v51 = vpop.permute.xlu1 %2447  ;;  %v3075_v9 = vrot.slane %v5982_v12, 1  ;;  %v2555_v28 = vmul.f32 %v5840_v13, %v6007_v7  ;;  %v2401_v8 = vadd.f32 %v2393_v33, %v2364_v17  ;;  %v6014_v54 = vstv %s5959_s17 }
 0x2b0   :  { %v2446_v27 = vpop.permute.xlu0 %2445  ;;  %v2366_v41 = vadd.f32 %v2358_v15, %v2308_v61  ;;  %v2452_v30 = vsel %vm388_vm3, %v5914_v53, %v5849_v56  ;;  %v3079_v57 = vsel %vm158_vm0, %v3077_v52, %v3078_v63  ;;  %v3071_v58 = vrot.slane %v3053_v3, 1 }
 0x2b1   :  { %v2451_v26 = vsel %vm388_vm3, %v5919_v49, %v5914_v53  ;;  %v2453_v59 = vsel %vm388_vm3, %v2446_v27, %v2448_v51  ;;  %v3072_v56 = vrot.slane %v6004_v43, 1  ;;  %v3076_v53 = vsel %vm158_vm0, %v3074_v44, %v3075_v9 }
 0x2b2   :  { %v2569_v49 = vrot.slane %v2555_v28, 1  ;;  %v2460_v27 = vadd.f32 %v2452_v30, %v2402_v4  ;;  %v2459_v55 = vadd.f32 %v2451_v26, %v2401_v8  ;;  %v2554_v52 = vmul.f32 %v5622_v2, %v6007_v7 }
 0x2b3   :  { %v3060_v3 = vmul.f32 %v5629_v31, %v5941_v14  ;;  %v2550_v28 = vmul.f32 %v5650_v22, %v6014_v54 }
 0x2b4   :  { %v2566_v26 = vrot.slane %v2554_v52, 1 }
 0x2b5   :  { %3032 = vrot.lane.b32.xlu2 %v3018_v16, %s3576_s28  ;;  %3030 = vrot.lane.b32.xlu1 %v3017_v1, %s3576_s28  ;;  %v2404_v16 = vadd.f32 %v2396_v19, %v2367_v6  ;;  %v2403_v1 = vadd.f32 %v2395_v25, %v2366_v41  ;;  %v3061_v41 = vmul.f32 %v5613_v40, %v5941_v14 }
 0x2b6   :  { %3028 = vrot.lane.b32.xlu0 %v3016_v42, %s3576_s28  ;;  %v2454_v42 = vsel %vm388_vm3, %v2448_v51, %v5864_v29  ;;  %v6033_v29 = vmul.f32 %v5418_v5, %v6007_v7  ;;  %v6042_v51 = vstv %s5984_s18 }
 0x2b7   :  { %v5992_v32 = vpop.permute.xlu2 %2638  ;;  %v2500_v50 = vpop.permute.xlu1 %2499  ;;  %v2462_v15 = vadd.f32 %v2454_v42, %v2404_v16  ;;  %v2461_v17 = vadd.f32 %v2453_v59, %v2403_v1  ;;  %v6076_v8 = vmul.f32 %v5418_v5, %v6042_v51  ;;  %v3084_v16 = vrot.slane %v3061_v41, 1 }
 0x2b8   :  { %v2498_v21 = vpop.permute.xlu0 %2497  ;;  %v2510_v46 = vsel %vm388_vm3, %v2500_v50, %v5884_v60  ;;  %v6051_v60 = vmul.f32 %v5602_v0, %v6042_v51  ;;  %v2549_v42 = vmul.f32 %v5667_v38, %v6014_v54  ;;  %v3082_v59 = vrot.slane %v3060_v3, 1 }
 0x2b9   :  { %v2509_v48 = vsel %vm388_vm3, %v2498_v21, %v2500_v50  ;;  %v2518_v4 = vadd.f32 %v2510_v46, %v2460_v27  ;;  %v2570_v50 = vrot.slane %v6033_v29, 1  ;;  %v3110_v46 = vstv %s6044_s19 }
 0x2ba   :  { %v2517_v25 = vadd.f32 %v2509_v48, %v2459_v55  ;;  %v6101_v55 = vmul.f32 %v5426_v23, %v6042_v51  ;;  %v6118_v39 = vmul.f32 %v5418_v5, %v3110_v46  ;;  %v3111_v3 = vmul.f32 %v5683_v11, %v3110_v46 }
 0x2bb   :  { %v2571_v30 = vsel %vm158_vm0, %v2569_v49, %v2570_v50  ;;  %v2585_v49 = vmul.f32 %v5683_v11, %v6042_v51  ;;  %v2601_v12 = vrot.slane %v6076_v8, 2 }
 0x2bc   :  { %v2598_v5 = vrot.slane %v6101_v55, 2 }
 0x2bd   :  { %3038 = vrot.lane.b32.xlu2 %v3021_v45, %s3576_s28  ;;  %3036 = vrot.lane.b32.xlu1 %v3020_v34, %s3576_s28  ;;  %v6068_v34 = vmul.f32 %v5426_v23, %v6007_v7 }
 0x2be   :  { %3034 = vrot.lane.b32.xlu0 %v3019_v24, %s3576_s28  ;;  %v3059_v24 = vmul.f32 %v5643_v47, %v5941_v14  ;;  %v2600_v14 = vrot.slane %v6051_v60, 2 }
 0x2bf   :  { %v6047_v20 = vpop.permute.xlu2 %2690  ;;  %v2506_v61 = vpop.permute.xlu1 %2505 }
 0x2c0   :  { %v2512_v6 = vsel %vm388_vm3, %v2506_v61, %v5912_v37  ;;  %v2504_v10 = vpop.permute.xlu0 %2503  ;;  %v3073_v37 = vsel %vm158_vm0, %v3071_v58, %v3072_v56  ;;  %v3080_v48 = vrot.slane %v3059_v24, 1 }
 0x2c1   :  { %v2520_v33 = vadd.f32 %v2512_v6, %v2462_v15  ;;  %v2511_v19 = vsel %vm388_vm3, %v2504_v10, %v2506_v61  ;;  %v2567_v15 = vrot.slane %v6068_v34, 1  ;;  %v3085_v6 = vsel %vm158_vm0, %v3078_v63, %v3084_v16 }
 0x2c2   :  { %v2519_v21 = vadd.f32 %v2511_v19, %v2461_v17  ;;  %v6111_v19 = vmul.f32 %v5411_v36, %v3110_v46  ;;  %v3081_v52 = vsel %vm158_vm0, %v3072_v56, %v3080_v48  ;;  %v3114_v36 = vmul.f32 %v5426_v23, %v3110_v46 }
 0x2c3   :  { %v2528_v45 = vmax.f32 %v2518_v4, %v2520_v33  ;;  %v6763_v4 = vld [vmem:[#allocation28_spill] sm:$0xff] }
 0x2c4   :  { %v2521_v44 = vmax.f32 %v2517_v25, %v2519_v21  ;;  %v3113_v33 = vmul.f32 %v6763_v4, %v3110_v46  ;;  %v3083_v25 = vsel %vm158_vm0, %v3075_v9, %v3082_v59  ;;  %v3112_v21 = vmul.f32 %v5602_v0, %v3110_v46 }
 0x2c5   :  { %v2529_v1 = vrot.slane %v2528_v45, 4  ;;  %3090 = vrot.lane.b32.xlu2 %v3079_v57, %s3576_s28  ;;  %3088 = vrot.lane.b32.xlu1 %v3076_v53, %s3576_s28  ;;  %v2568_v9 = vsel %vm158_vm0, %v2566_v26, %v2567_v15  ;;  %v3136_v56 = vrot.slane %v6111_v19, 2  ;;  %v2581_v26 = vadd.f32 %v2571_v30, %v2550_v28 }
 0x2c6   :  { %v2522_v58 = vrot.slane %v2521_v44, 4  ;;  %3086 = vrot.lane.b32.xlu0 %v3073_v37, %s3576_s28  ;;  %v2597_v37 = vrot.slane %v2585_v49, 2  ;;  %v3135_v43 = vrot.slane %v3113_v33, 2  ;;  %v3132_v16 = vrot.slane %v3112_v21, 2  ;;  %v6765_v21 = vld [vmem:[#allocation20_spill] sm:$0xff] }
 0x2c7   :  { %v2530_v57 = vmax.f32 %v2528_v45, %v2529_v1  ;;  %v6090_v27 = vpop.permute.xlu2 %2696  ;;  %v2631_v53 = vpop.permute.xlu1 %2630  ;;  %v3133_v1 = vrot.slane %v6118_v39, 2  ;;  %v3130_v49 = vrot.slane %v3114_v36, 2  ;;  %v3119_v39 = vmul.f32 %v6765_v21, %v3110_v46 }
 0x2c8   :  { %v2523_v61 = vmax.f32 %v2521_v44, %v2522_v58  ;;  %v6097_v60 = vsel %vm234_vm2, %v2631_v53, %v5933_v18  ;;  %v2629_v17 = vpop.permute.xlu0 %2628  ;;  %v2535_v44 = vstv %s6086_s20  ;;  %v2599_v28 = vsel %vm190_vm1, %v2597_v37, %v2598_v5 }
 0x2c9   :  { %v2531_v10 = vrot.slane %v2530_v57, 2  ;;  %v6107_v41 = vsel %vm234_vm2, %v2629_v17, %v2631_v53  ;;  %v3129_v53 = vrot.slane %v3111_v3, 2  ;;  %v2580_v17 = vadd.f32 %v2568_v9, %v2549_v42  ;;  %v6766_v3 = vld [vmem:[#allocation24_spill] sm:$0xff] }
 0x2ca   :  { %v2524_v18 = vrot.slane %v2523_v61, 2  ;;  %v3137_v19 = vsel %vm190_vm1, %v3135_v43, %v3136_v56  ;;  %v3118_v36 = vmul.f32 %v6766_v3, %v3110_v46  ;;  %v3142_v43 = vrot.slane %v3119_v39, 2 }
 0x2cb   :  { %v2532_v63 = vmax.f32 %v2530_v57, %v2531_v10 }
 0x2cc   :  { %v2525_v45 = vmax.f32 %v2523_v61, %v2524_v18  ;;  %v2602_v61 = vsel %vm190_vm1, %v2600_v14, %v2601_v12  ;;  %v6764_v14 = vld [vmem:[#allocation25_spill] sm:$0xff] }
 0x2cd   :  { %v2533_v24 = vrot.slane %v2532_v63, 1  ;;  %3096 = vrot.lane.b32.xlu2 %v3085_v6, %s3576_s28  ;;  %3094 = vrot.lane.b32.xlu1 %v3083_v25, %s3576_s28  ;;  %v3134_v25 = vsel %vm190_vm1, %v3132_v16, %v3133_v1  ;;  %v3117_v42 = vmul.f32 %v6764_v14, %v3110_v46  ;;  %v3140_v46 = vrot.slane %v3118_v36, 2 }
 0x2ce   :  { %v2526_v23 = vrot.slane %v2525_v45, 1  ;;  %3092 = vrot.lane.b32.xlu0 %v3081_v52, %s3576_s28  ;;  %v3131_v52 = vsel %vm190_vm1, %v3129_v53, %v3130_v49 }
 0x2cf   :  { %v2534_v58 = vmax.f32 %v2532_v63, %v2533_v24  ;;  %v6136_v59 = vpop.permute.xlu2 %2748  ;;  %v2637_v57 = vpop.permute.xlu1 %2636  ;;  %v2612_v63 = vadd.f32 %v2602_v61, %v2581_v26  ;;  %v3138_v24 = vrot.slane %v3117_v42, 2  ;;  %v3205_v42 = vstv %s3435_s22 }
 0x2d0   :  { %v2527_v48 = vmax.f32 %v2525_v45, %v2526_v23  ;;  %v6143_v6 = vsel %vm234_vm2, %v2637_v57, %v5992_v32  ;;  %v2635_v10 = vpop.permute.xlu0 %2634  ;;  %v2611_v45 = vadd.f32 %v2599_v28, %v2580_v17  ;;  %v3141_v28 = vsel %vm190_vm1, %v3133_v1, %v3140_v46 }
 0x2d1   :  { %v2537_v33 = vadd.f32 %v2535_v44, %v2534_v58  ;;  %v6149_v30 = vsel %vm234_vm2, %v2635_v10, %v2637_v57  ;;  %v2649_v23 = vadd.f32 %v6097_v60, %v2612_v63  ;;  %v3139_v60 = vsel %vm190_vm1, %v3130_v49, %v3138_v24 }
 0x2d2   :  { %v2536_v18 = vadd.f32 %v2535_v44, %v2527_v48  ;;  %v2648_v57 = vadd.f32 %v6107_v41, %v2611_v45  ;;  %v3213_v45 = vmul.f32 %v5629_v31, %v3205_v42  ;;  %v3208_v24 = vmul.f32 %v5833_v62, %v3205_v42 }
 0x2d3   :  { %v2539_v32 = vmax.f32 %v2537_v33, 0.0  ;;  %v3143_v33 = vsel %vm190_vm1, %v3136_v56, %v3142_v43  ;;  %v6189_v56 = vld [vmem:[%s6534_s0 + $0x20] sm:$0xff] }
 0x2d4   :  { %v2538_v37 = vmax.f32 %v2536_v18, 0.0  ;;  %v3210_v36 = vmul.f32 %v6189_v56, %v3205_v42 }
 0x2d5   :  { %v2542_v9 = vrot.slane %v2539_v32, 7  ;;  %3148 = vrot.lane.b32.xlu2 %v3137_v19, %s3576_s28  ;;  %3146 = vrot.lane.b32.xlu1 %v3134_v25, %s3576_s28 }
 0x2d6   :  { %3144 = vrot.lane.b32.xlu0 %v3131_v52, %s3576_s28  ;;  %v6206_v52 = vld [vmem:[%s6534_s0 + $0x18] sm:$0xff] }
 0x2d7   :  { %v2543_v44 = vsel %vm539_vm4, %v2538_v37, %v2542_v9  ;;  %v6162_v16 = vpop.permute.xlu2 %2754  ;;  %v2689_v58 = vpop.permute.xlu1 %2688  ;;  %v3507_v9 = vld [vmem:[%s6534_s0 + $0x28] sm:$0xff] }
 0x2d8   :  { %2546 = vst.msk [vmem:[#allocation7 + $0x5] ss:$8 sm:$0x3] %vm4177_vm5, %v2543_v44  ;;  %v2699_v53 = vsel %vm234_vm2, %v2689_v58, %v6047_v20  ;;  %v2687_v48 = vpop.permute.xlu0 %2686  ;;  %v3168_v20 = vstv %s3434_s21  ;;  %v3211_v43 = vmul.f32 %v3507_v9, %v3205_v42  ;;  %v3207_v44 = vmul.f32 %v5840_v13, %v3205_v42 }
 0x2d9   :  { %v6169_v61 = vadd.f32 %v2699_v53, %v2649_v23  ;;  %v2698_v17 = vsel %vm234_vm2, %v2687_v48, %v2689_v58  ;;  %v3173_v1 = vmul.f32 %v6189_v56, %v3168_v20  ;;  %v3171_v49 = vmul.f32 %v5813_v35, %v3168_v20 }
 0x2da   :  { %v6172_v10 = vadd.f32 %v2698_v17, %v2648_v57  ;;  %v3170_v25 = vmul.f32 %v5650_v22, %v3168_v20  ;;  %v3172_v22 = vmul.f32 %v6206_v52, %v3168_v20  ;;  %v3169_v35 = vmul.f32 %v5667_v38, %v3168_v20 }
 0x2db   :  { %v3174_v37 = vmul.f32 %v3507_v9, %v3168_v20  ;;  %v3228_v23 = vrot.slane %v3210_v36, 1  ;;  %v3235_v38 = vrot.slane %v3213_v45, 1  ;;  %v3230_v58 = vrot.slane %v3208_v24, 1 }
 0x2dc   :  { %v3231_v46 = vrot.slane %v3211_v43, 1  ;;  %v3227_v48 = vrot.slane %v3207_v44, 1 }
 0x2dd   :  { %3150 = vrot.lane.b32.xlu2 %v3139_v60, %s3576_s28  ;;  %3154 = vrot.lane.b32.xlu1 %v3143_v33, %s3576_s28  ;;  %v3236_v13 = vsel %vm158_vm0, %v3228_v23, %v3235_v38  ;;  %v3209_v60 = vmul.f32 %v6206_v52, %v3205_v42  ;;  %v3212_v33 = vmul.f32 %v5643_v47, %v3205_v42 }
 0x2de   :  { %3152 = vrot.lane.b32.xlu0 %v3141_v28, %s3576_s28  ;;  %v3232_v17 = vsel %vm158_vm0, %v3230_v58, %v3231_v46  ;;  %v3206_v28 = vmul.f32 %v5622_v2, %v3205_v42  ;;  %v3229_v20 = vsel %vm158_vm0, %v3227_v48, %v3228_v23  ;;  %s3578_s28 = smov [#allocation7]  }
 0x2df   :  { %v6180_v41 = vpop.permute.xlu2 %2785  ;;  %v6182_v19 = vpop.permute.xlu1 %2694  ;;  %s3353_s24 = sshll.u32 %s3578_s28, 4  ;;  %s3354_s24 = int_to_ptr.vmem [resolvable:$true] %s3353_s24 }
 0x2e0   :  { %v6184_v18 = vpop.permute.xlu0 %2692 }
 0x2e1   :  { %v2700_v8 = vsel %vm234_vm2, %v6184_v18, %v6182_v19 }
 0x2e5   :  { %3189 = vrot.lane.b32.xlu2 %v3173_v1, %s3577_s7  ;;  %3185 = vrot.lane.b32.xlu1 %v3171_v49, %s3577_s7  ;;  %v3214_v1 = vmul.f32 %v5613_v40, %v3205_v42  ;;  %v3225_v49 = vrot.slane %v3209_v60, 1 }
 0x2e6   :  { %3183 = vrot.lane.b32.xlu0 %v3170_v25, %s3577_s7  ;;  %v3233_v25 = vrot.slane %v3212_v33, 1 }
 0x2e7   :  { %v6197_v39 = vpop.permute.xlu2 %2791  ;;  %v6199_v32 = vpop.permute.xlu1 %2746 }
 0x2e8   :  { %v6201_v63 = vpop.permute.xlu0 %2744  ;;  %v3234_v42 = vsel %vm158_vm0, %v3225_v49, %v3233_v25  ;;  %v2757_v55 = vsel %vm234_vm2, %v6199_v32, %v6136_v59 }
 0x2e9   :  { %v2765_v18 = vadd.f32 %v2757_v55, %v6169_v61 }
 0x2ed   :  { %3187 = vrot.lane.b32.xlu2 %v3172_v22, %s3577_s7  ;;  %3181 = vrot.lane.b32.xlu1 %v3169_v35, %s3577_s7  ;;  %v3224_v22 = vrot.slane %v3206_v28, 1  ;;  %v3263_v35 = vstv %s3436_s26  ;;  %s3355_s26 = sshll.u32 %s6537_s3, 4  ;;  %s3356_s26 = int_to_ptr.hbm [resolvable:$true] %s3355_s26 }
 0x2ee   :  { %3191 = vrot.lane.b32.xlu0 %v3174_v37, %s3577_s7  ;;  %v3237_v37 = vrot.slane %v3214_v1, 1  ;;  %v3268_v24 = vmul.f32 %v6189_v56, %v3263_v35  ;;  %v3271_v40 = vmul.f32 %v6766_v3, %v3263_v35  ;;  %v3266_v44 = vmul.f32 %v6763_v4, %v3263_v35 }
 0x2ef   :  { %v6220_v57 = vpop.permute.xlu2 %2843  ;;  %v6222_v53 = vpop.permute.xlu1 %2752  ;;  %v3226_v43 = vsel %vm158_vm0, %v3224_v22, %v3225_v49  ;;  %v3269_v23 = vmul.f32 %v3507_v9, %v3263_v35  ;;  %v3265_v58 = vmul.f32 %v5602_v0, %v3263_v35  ;;  %v3270_v1 = vmul.f32 %v6764_v14, %v3263_v35 }
 0x2f0   :  { %v6224_v62 = vpop.permute.xlu0 %2750  ;;  %v3238_v38 = vsel %vm158_vm0, %v3231_v46, %v3237_v37  ;;  %v3286_v48 = vrot.slane %v3268_v24, 2  ;;  %v3264_v49 = vmul.f32 %v5683_v11, %v3263_v35  ;;  %v3272_v22 = vmul.f32 %v6765_v21, %v3263_v35 }
 0x2f1   :  { %v3289_v60 = vrot.slane %v3269_v23, 2  ;;  %v3285_v4 = vrot.slane %v3265_v58, 2  ;;  %v2559_v37 = vmul.f32 %v5629_v31, %v6007_v7  ;;  %v2558_v24 = vmul.f32 %v5643_v47, %v6007_v7 }
 0x2f2   :  { %v3295_v23 = vrot.slane %v3272_v22, 2  ;;  %v2590_v31 = vmul.f32 %v6766_v3, %v6042_v51  ;;  %v2589_v47 = vmul.f32 %v6764_v14, %v6042_v51  ;;  %v2551_v3 = vmul.f32 %v6206_v52, %v6014_v54 }
 0x2f3   :  { %v3287_v25 = vsel %vm190_vm1, %v3285_v4, %v3286_v48  ;;  %v2574_v21 = vrot.slane %v2559_v37, 1 }
 0x2f4   :  { %v2605_v4 = vrot.slane %v2590_v31, 2  ;;  %v2603_v14 = vrot.slane %v2589_v47, 2 }
 0x2f5   :  { %3247 = vrot.lane.b32.xlu2 %v3236_v13, %s3577_s7  ;;  %3243 = vrot.lane.b32.xlu1 %v3232_v17, %s3577_s7  ;;  %v3293_v13 = vrot.slane %v3271_v40, 2  ;;  %v3288_v17 = vrot.slane %v3266_v44, 2 }
 0x2f6   :  { %3241 = vrot.lane.b32.xlu0 %v3229_v20, %s3577_s7  ;;  %v3267_v20 = vmul.f32 %v6206_v52, %v3263_v35  ;;  %v2604_v34 = vsel %vm190_vm1, %v2598_v5, %v2603_v14  ;;  %v2759_v5 = vsel %vm234_vm2, %v6222_v53, %v6162_v16 }
 0x2f7   :  { %v6236_v36 = vpop.permute.xlu2 %2849  ;;  %v6238_v45 = vpop.permute.xlu1 %2783  ;;  %v3294_v46 = vsel %vm190_vm1, %v3286_v48, %v3293_v13  ;;  %v3290_v0 = vsel %vm190_vm1, %v3288_v17, %v3289_v60  ;;  %v2552_v48 = vmul.f32 %v6189_v56, %v6014_v54  ;;  %v3296_v13 = vsel %vm190_vm1, %v3289_v60, %v3295_v23 }
 0x2f8   :  { %v6240_v2 = vpop.permute.xlu0 %2781  ;;  %v3283_v40 = vrot.slane %v3267_v20, 2  ;;  %v2575_v17 = vsel %vm158_vm0, %v2570_v50, %v2574_v21  ;;  %v2606_v50 = vsel %vm190_vm1, %v2601_v12, %v2605_v4  ;;  %v2794_v59 = vsel %vm388_vm3, %v6238_v45, %v6180_v41  ;;  %v3508_v4 = vld [vmem:[%s6534_s0] sm:$0xfe] }
 0x2f9   :  { %v2583_v60 = vadd.f32 %v2575_v17, %v2552_v48 }
 0x2fd   :  { %3245 = vrot.lane.b32.xlu2 %v3234_v42, %s3577_s7  ;;  %3239 = vrot.lane.b32.xlu1 %v3226_v43, %s3577_s7  ;;  %v3291_v42 = vrot.slane %v3270_v1, 2  ;;  %v3282_v43 = vrot.slane %v3264_v49, 2  ;;  %v2701_v1 = vsel %vm234_vm2, %v6182_v19, %v6090_v27  ;;  %v2758_v19 = vsel %vm234_vm2, %v6224_v62, %v6222_v53 }
 0x2fe   :  { %3249 = vrot.lane.b32.xlu0 %v3238_v38, %s3577_s7  ;;  %v2572_v38 = vrot.slane %v2558_v24, 1 }
 0x2ff   :  { %v6252_v33 = vpop.permute.xlu2 %2901  ;;  %v6254_v28 = vpop.permute.xlu1 %2789  ;;  %v3292_v7 = vsel %vm190_vm1, %v3283_v40, %v3291_v42  ;;  %v3284_v58 = vsel %vm190_vm1, %v3282_v43, %v3283_v40  ;;  %v2802_v40 = vadd.f32 %v2794_v59, %v2765_v18 }
 0x300   :  { %v6256_v9 = vpop.permute.xlu0 %2787  ;;  %v2573_v51 = vsel %vm158_vm0, %v2567_v15, %v2572_v38  ;;  %v2614_v15 = vadd.f32 %v2606_v50, %v2583_v60  ;;  %v2796_v16 = vsel %vm388_vm3, %v6254_v28, %v6197_v39  ;;  %v6367_v60 = vstv %s3430_s27 }
 0x301   :  { %v2582_v54 = vadd.f32 %v2573_v51, %v2551_v3  ;;  %v6369_v50 = vstv %s3428_s29 }
 0x302   :  { %v2651_v49 = vadd.f32 %v6143_v6, %v2614_v15  ;;  %v2756_v6 = vsel %vm234_vm2, %v6201_v63, %v6199_v32  ;;  %v2793_v32 = vsel %vm388_vm3, %v6240_v2, %v6238_v45  ;;  %v2795_v63 = vsel %vm388_vm3, %v6256_v9, %v6254_v28 }
 0x303   :  { %v2613_v20 = vadd.f32 %v2604_v34, %v2582_v54  ;;  %v2764_v53 = vadd.f32 %v2756_v6, %v6172_v10  ;;  %v3510_v6 = vld [vmem:[%s6534_s0] sm:$0xff] }
 0x304   :  { %v2709_v37 = vadd.f32 %v2701_v1, %v2651_v49 }
 0x305   :  { %3305 = vrot.lane.b32.xlu2 %v3294_v46, %s3577_s7  ;;  %3301 = vrot.lane.b32.xlu1 %v3290_v0, %s3577_s7  ;;  %v2650_v22 = vadd.f32 %v6149_v30, %v2613_v20  ;;  %v2801_v45 = vadd.f32 %v2793_v32, %v2764_v53 }
 0x306   :  { %3299 = vrot.lane.b32.xlu0 %v3287_v25, %s3577_s7  ;;  %v2767_v24 = vadd.f32 %v2759_v5, %v2709_v37 }
 0x307   :  { %v6272_v11 = vpop.permute.xlu2 %2907  ;;  %v2842_v44 = vpop.permute.xlu1 %2841  ;;  %v2708_v30 = vadd.f32 %v2700_v8, %v2650_v22  ;;  %v3509_v8 = vld [vmem:[%s6534_s0] sm:$0xfc]  ;;  %v6382_v22 = vmul.f32 %v6206_v52, %v6367_v60 }
 0x308   :  { %v2840_v35 = vpop.permute.xlu0 %2839  ;;  %v2852_v41 = vsel %vm388_vm3, %v2842_v44, %v6220_v57  ;;  %v2804_v61 = vadd.f32 %v2796_v16, %v2767_v24  ;;  %v2935_v24 = vstv %s6365_s5 }
 0x309   :  { %v2766_v62 = vadd.f32 %v2758_v19, %v2708_v30  ;;  %v2851_v42 = vsel %vm388_vm3, %v2840_v35, %v2842_v44  ;;  %v2860_v10 = vadd.f32 %v2852_v41, %v2802_v40  ;;  %v2949_v19 = vmul.f32 %v3510_v6, %v6369_v50 }
 0x30a   :  { %v2998_v18 = vrot.slane %v6382_v22, 2 }
 0x30b   :  { %v2803_v2 = vadd.f32 %v2795_v63, %v2766_v62 }
 0x30d   :  { %3303 = vrot.lane.b32.xlu2 %v3292_v7, %s3577_s7  ;;  %3297 = vrot.lane.b32.xlu1 %v3284_v58, %s3577_s7 }
 0x30e   :  { %3307 = vrot.lane.b32.xlu0 %v3296_v13, %s3577_s7  ;;  %s6324_s7 = sld [smem:[#allocation2 + $0x87]] }
 0x30f   :  { %v6294_v46 = vpop.permute.xlu2 %3032  ;;  %v2848_v29 = vpop.permute.xlu1 %2847 }
 0x310   :  { %v2846_v0 = vpop.permute.xlu0 %2845  ;;  %v2854_v39 = vsel %vm388_vm3, %v2848_v29, %v6236_v36  ;;  %v2859_v36 = vadd.f32 %v2851_v42, %v2801_v45 }
 0x311   :  { %v2853_v43 = vsel %vm388_vm3, %v2846_v0, %v2848_v29  ;;  %v2862_v9 = vadd.f32 %v2854_v39, %v2804_v61 }
 0x312   :  { %v2861_v21 = vadd.f32 %v2853_v43, %v2803_v2 }
 0x317   :  { %v6309_v25 = vpop.permute.xlu2 %3038  ;;  %v2900_v12 = vpop.permute.xlu1 %2899 }
 0x318   :  { %v2898_v27 = vpop.permute.xlu0 %2897  ;;  %v2910_v28 = vsel %vm388_vm3, %v2900_v12, %v6252_v33  ;;  %v6355_v33 = vstv %s6324_s7 }
 0x319   :  { %v2909_v57 = vsel %vm388_vm3, %v2898_v27, %v2900_v12  ;;  %v2918_v35 = vadd.f32 %v2910_v28, %v2860_v10  ;;  %v2954_v3 = vmul.f32 %v3508_v4, %v6355_v33  ;;  %v2985_v12 = vmul.f32 %v3509_v8, %v6367_v60 }
 0x31a   :  { %v2917_v58 = vadd.f32 %v2909_v57, %v2859_v36 }
 0x31b   :  { %v2966_v15 = vrot.slane %v2954_v3, 1  ;;  %v2997_v16 = vrot.slane %v2985_v12, 2  ;;  %v2957_v12 = vmul.f32 %v6189_v56, %v6355_v33 }
 0x31d   :  { %v2999_v42 = vsel %vm190_vm1, %v2997_v16, %v2998_v18  ;;  %v2970_v16 = vrot.slane %v2957_v12, 1 }
 0x31f   :  { %v2906_v23 = vpop.permute.xlu1 %2905  ;;  %v6351_v38 = vpop.permute.xlu2 %3090 }
 0x320   :  { %v2912_v44 = vsel %vm388_vm3, %v2906_v23, %v6272_v11  ;;  %v2904_v31 = vpop.permute.xlu0 %2903  ;;  %v6363_v11 = vmul.f32 %v6206_v52, %v6355_v33 }
 0x321   :  { %v2920_v47 = vadd.f32 %v2912_v44, %v2862_v9  ;;  %v2911_v7 = vsel %vm388_vm3, %v2904_v31, %v2906_v23 }
 0x322   :  { %v2919_v48 = vadd.f32 %v2911_v7, %v2861_v21  ;;  %v2967_v20 = vrot.slane %v6363_v11, 1 }
 0x323   :  { %v2928_v13 = vmax.f32 %v2918_v35, %v2920_v47 }
 0x324   :  { %v2921_v17 = vmax.f32 %v2917_v58, %v2919_v48  ;;  %v2968_v59 = vsel %vm158_vm0, %v2966_v15, %v2967_v20  ;;  %v3511_v15 = vld [vmem:[%s6534_s0 + $0x30] sm:$0x1] }
 0x325   :  { %v2929_v51 = vrot.slane %v2928_v13, 4  ;;  %v2980_v41 = vadd.f32 %v2968_v59, %v2949_v19 }
 0x326   :  { %v2922_v14 = vrot.slane %v2921_v17, 4 }
 0x327   :  { %v2930_v29 = vmax.f32 %v2928_v13, %v2929_v51  ;;  %v3031_v54 = vpop.permute.xlu1 %3030  ;;  %v6385_v27 = vpop.permute.xlu2 %3096  ;;  %v3011_v28 = vadd.f32 %v2999_v42, %v2980_v41 }
 0x328   :  { %v2923_v0 = vmax.f32 %v2921_v17, %v2922_v14  ;;  %v6373_v34 = vsel %vm234_vm2, %v3031_v54, %v6294_v46  ;;  %v3029_v1 = vpop.permute.xlu0 %3028 }
 0x329   :  { %v2931_v49 = vrot.slane %v2930_v29, 2  ;;  %v3040_v55 = vsel %vm234_vm2, %v3029_v1, %v3031_v54  ;;  %v2958_v1 = vmul.f32 %v3511_v15, %v6355_v33 }
 0x32a   :  { %v2924_v46 = vrot.slane %v2923_v0, 2  ;;  %v3048_v36 = vadd.f32 %v3040_v55, %v3011_v28  ;;  %v3513_v55 = vld [vmem:[%s6534_s0 + $0x38] sm:$0x1] }
 0x32b   :  { %v2932_v5 = vmax.f32 %v2930_v29, %v2931_v49  ;;  %v3512_v49 = vld [vmem:[%s6534_s0 + $0x8] sm:$0xfe] }
 0x32c   :  { %v2925_v37 = vmax.f32 %v2923_v0, %v2924_v46  ;;  %v2955_v8 = vmul.f32 %v3512_v49, %v6355_v33  ;;  %v2959_v46 = vmul.f32 %v3513_v55, %v6355_v33  ;;  %v2988_v33 = vmul.f32 %v6189_v56, %v6367_v60 }
 0x32d   :  { %v2933_v30 = vrot.slane %v2932_v5, 1 }
 0x32e   :  { %v2926_v32 = vrot.slane %v2925_v37, 1  ;;  %v2969_v59 = vrot.slane %v2955_v8, 1 }
 0x32f   :  { %v2934_v63 = vmax.f32 %v2932_v5, %v2933_v30  ;;  %v3037_v53 = vpop.permute.xlu1 %3036  ;;  %v6406_v57 = vpop.permute.xlu2 %3148  ;;  %v2972_v5 = vrot.slane %v2958_v1, 1 }
 0x330   :  { %v2927_v62 = vmax.f32 %v2925_v37, %v2926_v32  ;;  %v6398_v39 = vsel %vm234_vm2, %v3037_v53, %v6309_v25  ;;  %v3035_v40 = vpop.permute.xlu0 %3034  ;;  %v3514_v37 = vld [vmem:[%s6534_s0 + $0x30] sm:$0x3]  ;;  %v2971_v28 = vsel %vm158_vm0, %v2969_v59, %v2970_v16 }
 0x331   :  { %v2937_v61 = vadd.f32 %v2935_v24, %v2934_v63  ;;  %v6404_v43 = vsel %vm234_vm2, %v3035_v40, %v3037_v53  ;;  %v2989_v6 = vmul.f32 %v3514_v37, %v6367_v60  ;;  %v2974_v53 = vrot.slane %v2959_v46, 1 }
 0x332   :  { %v2936_v45 = vadd.f32 %v2935_v24, %v2927_v62  ;;  %v3515_v24 = vld [vmem:[%s6534_s0 + $0x8] sm:$0xfc]  ;;  %v3516_v62 = vld [vmem:[%s6534_s0 + $0x38] sm:$0x3]  ;;  %v2951_v40 = vmul.f32 %v6206_v52, %v6369_v50 }
 0x333   :  { %v2939_v2 = vmax.f32 %v2937_v61, 0.0  ;;  %v2986_v32 = vmul.f32 %v3515_v24, %v6367_v60  ;;  %v2990_v41 = vmul.f32 %v3516_v62, %v6367_v60  ;;  %v2973_v61 = vsel %vm158_vm0, %v2967_v20, %v2972_v5 }
 0x334   :  { %v2938_v9 = vmax.f32 %v2936_v45, 0.0  ;;  %v3003_v42 = vrot.slane %v2989_v6, 2  ;;  %v3517_v45 = vld [vmem:[%s6534_s0 + $0x8] sm:$0xff]  ;;  %v2952_v60 = vmul.f32 %v6189_v56, %v6369_v50  ;;  %v2975_v52 = vsel %vm158_vm0, %v2970_v16, %v2974_v53  ;;  %s3443_s0 = sld [smem:[#allocation5 + $0x7]] }
 0x335   :  { %v2942_v10 = vrot.slane %v2939_v2, 7  ;;  %v2950_v2 = vmul.f32 %v3517_v45, %v6369_v50  ;;  %v2982_v11 = vadd.f32 %v2973_v61, %v2951_v40 }
 0x336   :  { %v3004_v20 = vsel %vm190_vm1, %v2998_v18, %v3003_v42 }
 0x337   :  { %v2943_v23 = vsel %vm539_vm4, %v2938_v9, %v2942_v10  ;;  %v6409_v25 = vpop.permute.xlu1 %3088  ;;  %v3151_v35 = vpop.permute.xlu2 %3150  ;;  %v3000_v10 = vrot.slane %v2986_v32, 2  ;;  %v3001_v9 = vrot.slane %v2988_v33, 2  ;;  %v3013_v8 = vadd.f32 %v3004_v20, %v2982_v11 }
 0x338   :  { %2946 = vst.msk [vmem:[#allocation7 + $0x6] ss:$8 sm:$0x3] %vm4177_vm5, %v2943_v23  ;;  %v3087_v21 = vpop.permute.xlu0 %3086  ;;  %v3005_v23 = vrot.slane %v2990_v41, 2  ;;  %v3099_v18 = vsel %vm234_vm2, %v6409_v25, %v6351_v38 }
 0x339   :  { %v3098_v44 = vsel %vm234_vm2, %v3087_v21, %v6409_v25  ;;  %v2981_v21 = vadd.f32 %v2971_v28, %v2950_v2  ;;  %v3002_v1 = vsel %vm190_vm1, %v3000_v10, %v3001_v9  ;;  %v3050_v46 = vadd.f32 %v6404_v43, %v3013_v8 }
 0x33a   :  { %v6415_v31 = vadd.f32 %v3098_v44, %v3048_v36  ;;  %v2983_v44 = vadd.f32 %v2975_v52, %v2952_v60  ;;  %v3006_v49 = vsel %vm190_vm1, %v3001_v9, %v3005_v23 }
 0x33b   :  { %v3012_v56 = vadd.f32 %v3002_v1, %v2981_v21 }
 0x33c   :  { %v3014_v50 = vadd.f32 %v3006_v49, %v2983_v44  ;;  %v3335_v49 = vstv %s3443_s0 }
 0x33d   :  { %v3049_v59 = vadd.f32 %v6373_v34, %v3012_v56 }
 0x33e   :  { %v3051_v16 = vadd.f32 %v6398_v39, %v3014_v50 }
 0x33f   :  { %v3095_v47 = vpop.permute.xlu1 %3094  ;;  %v6421_v13 = vpop.permute.xlu2 %3189  ;;  %v3107_v25 = vadd.f32 %v3099_v18, %v3049_v59 }
 0x340   :  { %v3093_v7 = vpop.permute.xlu0 %3092  ;;  %v3101_v5 = vsel %vm234_vm2, %v3095_v47, %v6385_v27 }
 0x341   :  { %v3100_v55 = vsel %vm234_vm2, %v3093_v7, %v3095_v47  ;;  %v3109_v47 = vadd.f32 %v3101_v5, %v3051_v16 }
 0x342   :  { %v3108_v37 = vadd.f32 %v3100_v55, %v3050_v46 }
 0x347   :  { %v6417_v58 = vpop.permute.xlu1 %3146  ;;  %v6427_v3 = vpop.permute.xlu2 %3187 }
 0x348   :  { %v6419_v48 = vpop.permute.xlu0 %3144  ;;  %v3195_v34 = vsel %vm388_vm3, %v6427_v3, %v6421_v13 }
 0x349   :  { %v3156_v43 = vsel %vm234_vm2, %v6419_v48, %v6417_v58 }
 0x34a   :  { %v3164_v48 = vadd.f32 %v3156_v43, %v6415_v31 }
 0x34f   :  { %v6423_v17 = vpop.permute.xlu1 %3154  ;;  %v6433_v29 = vpop.permute.xlu2 %3247 }
 0x350   :  { %v6425_v4 = vpop.permute.xlu0 %3152 }
 0x351   :  { %v3158_v22 = vsel %vm234_vm2, %v3151_v35, %v6425_v4  ;;  %v3157_v35 = vsel %vm234_vm2, %v6417_v58, %v6406_v57  ;;  %v3159_v38 = vsel %vm234_vm2, %v6425_v4, %v6423_v17 }
 0x352   :  { %v3166_v27 = vadd.f32 %v3158_v22, %v3108_v37  ;;  %v3165_v4 = vadd.f32 %v3157_v35, %v3107_v25  ;;  %v3167_v24 = vadd.f32 %v3159_v38, %v3109_v47 }
 0x354   :  { %v3203_v33 = vadd.f32 %v3195_v34, %v3166_v27 }
 0x357   :  { %v6429_v51 = vpop.permute.xlu1 %3185  ;;  %v3246_v19 = vpop.permute.xlu2 %3245 }
 0x358   :  { %v6431_v14 = vpop.permute.xlu0 %3183  ;;  %v3253_v3 = vsel %vm388_vm3, %v3246_v19, %v6433_v29 }
 0x359   :  { %v3194_v57 = vsel %vm388_vm3, %v6431_v14, %v6429_v51 }
 0x35a   :  { %v3202_v51 = vadd.f32 %v3194_v57, %v3165_v4 }
 0x35f   :  { %v6435_v54 = vpop.permute.xlu1 %3181  ;;  %v3306_v12 = vpop.permute.xlu2 %3305 }
 0x360   :  { %v6437_v0 = vpop.permute.xlu0 %3191  ;;  %v3193_v39 = vsel %vm388_vm3, %v6435_v54, %v6431_v14 }
 0x361   :  { %v3196_v58 = vsel %vm388_vm3, %v6421_v13, %v6437_v0  ;;  %v3201_v54 = vadd.f32 %v3193_v39, %v3164_v48  ;;  %v3261_v13 = vadd.f32 %v3253_v3, %v3203_v33 }
 0x362   :  { %v3204_v14 = vadd.f32 %v3196_v58, %v3167_v24 }
 0x367   :  { %v3244_v30 = vpop.permute.xlu1 %3243  ;;  %v3304_v17 = vpop.permute.xlu2 %3303 }
 0x368   :  { %v3242_v63 = vpop.permute.xlu0 %3241  ;;  %v3311_v62 = vsel %vm388_vm3, %v3304_v17, %v3306_v12 }
 0x369   :  { %v3252_v31 = vsel %vm388_vm3, %v3242_v63, %v3244_v30  ;;  %v3319_v2 = vadd.f32 %v3311_v62, %v3261_v13 }
 0x36a   :  { %v3260_v61 = vadd.f32 %v3252_v31, %v3202_v51 }
 0x36f   :  { %v3240_v36 = vpop.permute.xlu1 %3239 }
 0x370   :  { %v3250_v15 = vpop.permute.xlu0 %3249  ;;  %v3251_v32 = vsel %vm388_vm3, %v3240_v36, %v3242_v63 }
 0x371   :  { %v3254_v53 = vsel %vm388_vm3, %v6433_v29, %v3250_v15  ;;  %v3259_v0 = vadd.f32 %v3251_v32, %v3201_v54 }
 0x372   :  { %v3262_v19 = vadd.f32 %v3254_v53, %v3204_v14 }
 0x377   :  { %v3302_v6 = vpop.permute.xlu1 %3301 }
 0x378   :  { %v3300_v7 = vpop.permute.xlu0 %3299 }
 0x379   :  { %v3310_v41 = vsel %vm388_vm3, %v3300_v7, %v3302_v6 }
 0x37a   :  { %v3318_v63 = vadd.f32 %v3310_v41, %v3260_v61 }
 0x37f   :  { %v3298_v40 = vpop.permute.xlu1 %3297 }
 0x380   :  { %v3309_v42 = vsel %vm388_vm3, %v3298_v40, %v3300_v7  ;;  %v3308_v45 = vpop.permute.xlu0 %3307 }
 0x381   :  { %v3317_v28 = vadd.f32 %v3309_v42, %v3259_v0  ;;  %v3312_v30 = vsel %vm388_vm3, %v3306_v12, %v3308_v45 }
 0x382   :  { %v3320_v29 = vadd.f32 %v3312_v30, %v3262_v19 }
 0x383   :  { %v3321_v10 = vmax.f32 %v3317_v28, %v3319_v2 }
 0x384   :  { %v3328_v60 = vmax.f32 %v3318_v63, %v3320_v29 }
 0x385   :  { %v3322_v9 = vrot.slane %v3321_v10, 4 }
 0x386   :  { %v3329_v52 = vrot.slane %v3328_v60, 4 }
 0x387   :  { %v3323_v23 = vmax.f32 %v3321_v10, %v3322_v9 }
 0x388   :  { %v3330_v11 = vmax.f32 %v3328_v60, %v3329_v52 }
 0x389   :  { %v3324_v20 = vrot.slane %v3323_v23, 2 }
 0x38a   :  { %v3331_v36 = vrot.slane %v3330_v11, 2 }
 0x38b   :  { %v3325_v21 = vmax.f32 %v3323_v23, %v3324_v20 }
 0x38c   :  { %v3332_v44 = vmax.f32 %v3330_v11, %v3331_v36 }
 0x38d   :  { %v3326_v15 = vrot.slane %v3325_v21, 1 }
 0x38e   :  { %v3333_v1 = vrot.slane %v3332_v44, 1 }
 0x38f   :  { %v3327_v8 = vmax.f32 %v3325_v21, %v3326_v15 }
 0x390   :  { %v3334_v56 = vmax.f32 %v3332_v44, %v3333_v1 }
 0x391   :  { %v3336_v50 = vadd.f32 %v3335_v49, %v3327_v8 }
 0x392   :  { %v3337_v12 = vadd.f32 %v3335_v49, %v3334_v56 }
 0x393   :  { %v3338_v46 = vmax.f32 %v3336_v50, 0.0 }
 0x394   :  { %v3339_v55 = vmax.f32 %v3337_v12, 0.0 }
 0x396   :  { %v3342_v22 = vrot.slane %v3339_v55, 7 }
 0x398   :  { %v3343_v18 = vsel %vm539_vm4, %v3338_v46, %v3342_v22 }
 0x399   :  { %3346 = vst.msk [vmem:[#allocation7 + $0x7] ss:$8 sm:$0x3] %vm4177_vm5, %v3343_v18 }
 0x39a   :  { %3358 = dma.vmem_to_hbm [thread:$0]  %s3354_s24, 256, %s3356_s26, [#allocation3]  }
 0x39b   :  { %3570 = dma.done.wait [#allocation3], 256  }
 0x39c   :  { %3571 = vsyncadd [#allocation3], 4294967040 }
 0x39d   :  { %3363 = vsyncpa [#allocation3], 1 }
 0x39e   :  { %3364 = vsyncpa [#allocation4], 1 }
 0x39f   :  { %3365 = vsyncpa [#allocation6], 1 }

</bundles_post_ra>
